<compile_context>
chip_gen: v7x
topology: tpu7x:2x2x1
jax: 0.10.0
libtpu: 0.0.40
codegen_flags: <defaults>
</compile_context>

<pallas_src>
import jax
import jax.numpy as jnp
from jax.experimental import pallas as pl
from jax.experimental.pallas import tpu as pltpu


def _fused_model_kernel(xp_ref,
                        w1, b1, w2, b2, sb2, zb2, w3, b3, sb3, zb3,
                        v1_ref, v2_ref, v3_ref, v4_ref, v5_ref, v6_ref,
                        v8_ref, v9_ref):
    # xp_ref: (1, 3, H+2, W+2) VMEM block (input already zero-padded by 1).
    # w*/b*/sb*/zb*: flat f32 SMEM vectors (weights, biases, sigmoid(bias),
    # silu(bias)) read as scalars.
    f32 = jnp.float32
    _, _, H1, W1 = xp_ref.shape       # conv1 output spatial size
    H2, W2 = H1 + 2, W1 + 2           # conv2 output spatial size
    H3, W3 = H2 + 2, W2 + 2           # conv3 output spatial size

    def sigmoid(y):
        # Plain form is NaN-safe in f32 (exp saturates); exp runs on the EUP.
        return 1.0 / (1.0 + jnp.exp(-y))

    # -------- stage 1: conv1 (3->4) + sigmoid + SiLU (aligned full planes) ---
    x0 = xp_ref[0, 0]
    x1 = xp_ref[0, 1]
    x2 = xp_ref[0, 2]
    z1 = []                            # full (H1, W1) v3 planes kept as values
    for c in range(4):
        y = w1[3 * c + 0] * x0 + w1[3 * c + 1] * x1 + w1[3 * c + 2] * x2 + b1[c]
        s = sigmoid(y)
        z = y * s
        v1_ref[0, c] = y
        v2_ref[0, c] = s
        v3_ref[0, c] = z
        z1.append(z)

    # -------- stage 2: conv2 (4->8) + sigmoid + SiLU -------------------------
    # Ring of the (H2, W2) outputs is the per-channel constant; interior is the
    # conv applied to the full (border-carrying) v3 planes held in z1.
    for c in range(8):
        y = b2[c] + w2[4 * c + 0] * z1[0]
        for k in range(1, 4):
            y = y + w2[4 * c + k] * z1[k]
        s = sigmoid(y)
        z = y * s
        v4_ref[0, c] = jnp.full((H2, W2), b2[c], f32)
        v5_ref[0, c] = jnp.full((H2, W2), sb2[c], f32)
        v6_ref[0, c] = jnp.full((H2, W2), zb2[c], f32)
        v4_ref[0, c, 1:H1 + 1, 1:W1 + 1] = y
        v5_ref[0, c, 1:H1 + 1, 1:W1 + 1] = s
        v6_ref[0, c, 1:H1 + 1, 1:W1 + 1] = z

    # -------- stage 3: conv3 (8->1) + sigmoid + SiLU --------------------------
    # Hoisted loads: read the 8 full (H2, W2) v6 planes once.
    z2 = [v6_ref[0, k] for k in range(8)]
    y = b3[0] + w3[0] * z2[0]
    for k in range(1, 8):
        y = y + w3[k] * z2[k]
    s = sigmoid(y)
    z = y * s
    v8_ref[0, 0] = jnp.full((H3, W3), sb3[0], f32)
    v9_ref[0, 0] = jnp.full((H3, W3), zb3[0], f32)
    v8_ref[0, 0, 1:H2 + 1, 1:W2 + 1] = s
    v9_ref[0, 0, 1:H2 + 1, 1:W2 + 1] = z


def model_forward(x1, params):
    """Fused Pallas forward of the torch Model.  x1: (N, 3, H, W) float32."""
    (w1, b1), (w2, b2), (w3, b3) = params
    N, Cin, H, W = x1.shape
    assert Cin == 3
    H1, W1 = H + 2, W + 2
    H2, W2 = H + 4, W + 4
    H3, W3 = H + 6, W + 6
    f32 = jnp.float32

    # Zero-pad the input once (tiny op on 3 planes) so stage 1 produces
    # output-sized planes directly -> aligned lane-dense stores in the kernel.
    xp = jnp.pad(x1.astype(f32), ((0, 0), (0, 0), (1, 1), (1, 1)))

    # Flatten weights for SMEM scalar access: w[c, k] -> w_flat[Cin*c + k].
    w1f = w1.reshape(-1).astype(f32)
    w2f = w2.reshape(-1).astype(f32)
    w3f = w3.reshape(-1).astype(f32)
    b1f = b1.reshape(-1).astype(f32)
    b2f = b2.reshape(-1).astype(f32)
    b3f = b3.reshape(-1).astype(f32)
    # Border constants (conv over the zero ring == bias) precomputed host-side.
    sb2 = jax.nn.sigmoid(b2f)
    zb2 = b2f * sb2
    sb3 = jax.nn.sigmoid(b3f)
    zb3 = b3f * sb3

    smem = pl.BlockSpec(memory_space=pltpu.MemorySpace.SMEM)
    idx4 = lambda n: (n, 0, 0, 0)

    out_shape = (
        jax.ShapeDtypeStruct((N, 4, H1, W1), f32),   # v1
        jax.ShapeDtypeStruct((N, 4, H1, W1), f32),   # v2
        jax.ShapeDtypeStruct((N, 4, H1, W1), f32),   # v3
        jax.ShapeDtypeStruct((N, 8, H2, W2), f32),   # v4
        jax.ShapeDtypeStruct((N, 8, H2, W2), f32),   # v5
        jax.ShapeDtypeStruct((N, 8, H2, W2), f32),   # v6
        jax.ShapeDtypeStruct((N, 1, H3, W3), f32),   # v8
        jax.ShapeDtypeStruct((N, 1, H3, W3), f32),   # v9
    )
    out_specs = (
        pl.BlockSpec((1, 4, H1, W1), idx4),
        pl.BlockSpec((1, 4, H1, W1), idx4),
        pl.BlockSpec((1, 4, H1, W1), idx4),
        pl.BlockSpec((1, 8, H2, W2), idx4),
        pl.BlockSpec((1, 8, H2, W2), idx4),
        pl.BlockSpec((1, 8, H2, W2), idx4),
        pl.BlockSpec((1, 1, H3, W3), idx4),
        pl.BlockSpec((1, 1, H3, W3), idx4),
    )

    return pl.pallas_call(
        _fused_model_kernel,
        out_shape=out_shape,
        grid=(N,),
        in_specs=[
            pl.BlockSpec((1, 3, H1, W1), idx4),
            smem, smem, smem, smem, smem, smem, smem, smem, smem, smem,
        ],
        out_specs=out_specs,
        compiler_params=pltpu.CompilerParams(
            dimension_semantics=("parallel",)),
    )(xp, w1f, b1f, w2f, b2f, sb2, zb2, w3f, b3f, sb3, zb3)


def init_params(key):
    # Deterministic synthetic weights matching Conv2d(cin->cout, k=1) shapes.
    def conv_init(k, cout, cin):
        kw, kb = jax.random.split(k)
        bound = 1.0 / jnp.sqrt(cin)
        w = jax.random.uniform(kw, (cout, cin, 1, 1), jnp.float32, -bound, bound)
        b = jax.random.uniform(kb, (cout,), jnp.float32, -bound, bound)
        return w, b

    k1, k2, k3 = jax.random.split(key, 3)
    return (conv_init(k1, 4, 3), conv_init(k2, 8, 4), conv_init(k3, 1, 8))


def _reference_forward(x, params):
    # Pure-JAX reference (elementwise only; avoids MXU precision differences).
    def conv1x1_pad(x, w, b):
        xp = jnp.pad(x, ((0, 0), (0, 0), (1, 1), (1, 1)))
        cout, cin = w.shape[0], w.shape[1]
        planes = []
        for c in range(cout):
            acc = w[c, 0, 0, 0] * xp[:, 0]
            for k in range(1, cin):
                acc = acc + w[c, k, 0, 0] * xp[:, k]
            planes.append(acc + b[c])
        return jnp.stack(planes, axis=1)

    (w1, b1), (w2, b2), (w3, b3) = params
    v1 = conv1x1_pad(x, w1, b1); v2 = jax.nn.sigmoid(v1); v3 = v1 * v2
    v4 = conv1x1_pad(v3, w2, b2); v5 = jax.nn.sigmoid(v4); v6 = v4 * v5
    v7 = conv1x1_pad(v6, w3, b3); v8 = jax.nn.sigmoid(v7); v9 = v7 * v8
    return (v1, v2, v3, v4, v5, v6, v8, v9)


if __name__ == "__main__":
    key = jax.random.PRNGKey(0)
    kx, kp = jax.random.split(key)

    # Small shape consistent with the module (N, C, H, W) = (1, 3, 16, 16).
    x1 = jax.random.normal(kx, (1, 3, 16, 16), dtype=jnp.float32)
    params = init_params(kp)

    fwd = jax.jit(model_forward)
    outs = jax.block_until_ready(fwd(x1, params))

    # Shape checks (each padding=1 1x1 conv grows H, W by 2).
    assert outs[0].shape == (1, 4, 18, 18)   # v1
    assert outs[3].shape == (1, 8, 20, 20)   # v4
    assert outs[6].shape == (1, 1, 22, 22)   # v8
    assert outs[7].shape == (1, 1, 22, 22)   # v9

    # Numerical check against a pure-JAX reference.
    refs = jax.block_until_ready(_reference_forward(x1, params))
    for got, want in zip(outs, refs):
        assert got.shape == want.shape
        err = float(jnp.max(jnp.abs(got - want)))
        assert err < 1e-4, f"max abs err {err}"

    print("KERNEL_OK")
</pallas_src>

<mosaic_0001>
module attributes {stable_mosaic.version = 11 : i64} {
  func.func @_fused_model_kernel(%arg0: i32, %arg1: memref<1x3x18x18xf32, #tpu.memory_space<vmem>>, %arg2: memref<12xf32, #tpu.memory_space<smem>>, %arg3: memref<4xf32, #tpu.memory_space<smem>>, %arg4: memref<32xf32, #tpu.memory_space<smem>>, %arg5: memref<8xf32, #tpu.memory_space<smem>>, %arg6: memref<8xf32, #tpu.memory_space<smem>>, %arg7: memref<8xf32, #tpu.memory_space<smem>>, %arg8: memref<8xf32, #tpu.memory_space<smem>>, %arg9: memref<1xf32, #tpu.memory_space<smem>>, %arg10: memref<1xf32, #tpu.memory_space<smem>>, %arg11: memref<1xf32, #tpu.memory_space<smem>>, %arg12: memref<1x4x18x18xf32, #tpu.memory_space<vmem>>, %arg13: memref<1x4x18x18xf32, #tpu.memory_space<vmem>>, %arg14: memref<1x4x18x18xf32, #tpu.memory_space<vmem>>, %arg15: memref<1x8x20x20xf32, #tpu.memory_space<vmem>>, %arg16: memref<1x8x20x20xf32, #tpu.memory_space<vmem>>, %arg17: memref<1x8x20x20xf32, #tpu.memory_space<vmem>>, %arg18: memref<1x1x22x22xf32, #tpu.memory_space<vmem>>, %arg19: memref<1x1x22x22xf32, #tpu.memory_space<vmem>>) attributes {dimension_semantics = [#tpu.dimension_semantics<parallel>], iteration_bounds = array<i64: 1>, scalar_prefetch = 0 : i64, scratch_operands = 0 : i64, tpu.core_type = #tpu.core_type<tc>, window_params = [{transform_indices = @transform_0, window_bounds = array<i64: 1, 3, 18, 18>}, {transform_indices = @transform_1, window_bounds = array<i64: 12>}, {transform_indices = @transform_2, window_bounds = array<i64: 4>}, {transform_indices = @transform_3, window_bounds = array<i64: 32>}, {transform_indices = @transform_4, window_bounds = array<i64: 8>}, {transform_indices = @transform_5, window_bounds = array<i64: 8>}, {transform_indices = @transform_6, window_bounds = array<i64: 8>}, {transform_indices = @transform_7, window_bounds = array<i64: 8>}, {transform_indices = @transform_8, window_bounds = array<i64: 1>}, {transform_indices = @transform_9, window_bounds = array<i64: 1>}, {transform_indices = @transform_10, window_bounds = array<i64: 1>}, {transform_indices = @transform_11, window_bounds = array<i64: 1, 4, 18, 18>}, {transform_indices = @transform_12, window_bounds = array<i64: 1, 4, 18, 18>}, {transform_indices = @transform_13, window_bounds = array<i64: 1, 4, 18, 18>}, {transform_indices = @transform_14, window_bounds = array<i64: 1, 8, 20, 20>}, {transform_indices = @transform_15, window_bounds = array<i64: 1, 8, 20, 20>}, {transform_indices = @transform_16, window_bounds = array<i64: 1, 8, 20, 20>}, {transform_indices = @transform_17, window_bounds = array<i64: 1, 1, 22, 22>}, {transform_indices = @transform_18, window_bounds = array<i64: 1, 1, 22, 22>}]} {
    %c0 = arith.constant 0 : index
    %c0_0 = arith.constant 0 : index
    %c0_1 = arith.constant 0 : index
    %c0_2 = arith.constant 0 : index
    %0 = vector.load %arg1[%c0, %c0_0, %c0_1, %c0_2] : memref<1x3x18x18xf32, #tpu.memory_space<vmem>>, vector<1x1x18x18xf32>
    %1 = vector.shape_cast %0 : vector<1x1x18x18xf32> to vector<18x18xf32>
    %c0_3 = arith.constant 0 : index
    %c1 = arith.constant 1 : index
    %c0_4 = arith.constant 0 : index
    %c0_5 = arith.constant 0 : index
    %2 = vector.load %arg1[%c0_3, %c1, %c0_4, %c0_5] : memref<1x3x18x18xf32, #tpu.memory_space<vmem>>, vector<1x1x18x18xf32>
    %3 = vector.shape_cast %2 : vector<1x1x18x18xf32> to vector<18x18xf32>
    %c0_6 = arith.constant 0 : index
    %c2 = arith.constant 2 : index
    %c0_7 = arith.constant 0 : index
    %c0_8 = arith.constant 0 : index
    %4 = vector.load %arg1[%c0_6, %c2, %c0_7, %c0_8] : memref<1x3x18x18xf32, #tpu.memory_space<vmem>>, vector<1x1x18x18xf32>
    %5 = vector.shape_cast %4 : vector<1x1x18x18xf32> to vector<18x18xf32>
    %c0_9 = arith.constant 0 : index
    %6 = memref.load %arg2[%c0_9] : memref<12xf32, #tpu.memory_space<smem>>
    %7 = vector.broadcast %6 : f32 to vector<18x18xf32>
    %8 = arith.mulf %7, %1 : vector<18x18xf32>
    %c1_10 = arith.constant 1 : index
    %9 = memref.load %arg2[%c1_10] : memref<12xf32, #tpu.memory_space<smem>>
    %10 = vector.broadcast %9 : f32 to vector<18x18xf32>
    %11 = arith.mulf %10, %3 : vector<18x18xf32>
    %12 = arith.addf %8, %11 : vector<18x18xf32>
    %c2_11 = arith.constant 2 : index
    %13 = memref.load %arg2[%c2_11] : memref<12xf32, #tpu.memory_space<smem>>
    %14 = vector.broadcast %13 : f32 to vector<18x18xf32>
    %15 = arith.mulf %14, %5 : vector<18x18xf32>
    %16 = arith.addf %12, %15 : vector<18x18xf32>
    %c0_12 = arith.constant 0 : index
    %17 = memref.load %arg3[%c0_12] : memref<4xf32, #tpu.memory_space<smem>>
    %18 = vector.broadcast %17 : f32 to vector<18x18xf32>
    %19 = arith.addf %16, %18 : vector<18x18xf32>
    %cst = arith.constant 0.000000e+00 : f32
    %20 = vector.broadcast %cst : f32 to vector<18x18xf32>
    %21 = arith.subf %20, %19 : vector<18x18xf32>
    %22 = math.exp %21 : vector<18x18xf32>
    %cst_13 = arith.constant 1.000000e+00 : f32
    %23 = vector.broadcast %cst_13 : f32 to vector<18x18xf32>
    %24 = arith.addf %23, %22 : vector<18x18xf32>
    %cst_14 = arith.constant 1.000000e+00 : f32
    %25 = vector.broadcast %cst_14 : f32 to vector<18x18xf32>
    %26 = arith.divf %25, %24 : vector<18x18xf32>
    %27 = arith.mulf %19, %26 : vector<18x18xf32>
    %c0_15 = arith.constant 0 : index
    %c0_16 = arith.constant 0 : index
    %c0_17 = arith.constant 0 : index
    %c0_18 = arith.constant 0 : index
    %28 = vector.load %arg12[%c0_15, %c0_16, %c0_17, %c0_18] : memref<1x4x18x18xf32, #tpu.memory_space<vmem>>, vector<1x1x18x18xf32>
    %29 = vector.shape_cast %28 : vector<1x1x18x18xf32> to vector<18x18xf32>
    %30 = vector.shape_cast %19 : vector<18x18xf32> to vector<1x1x18x18xf32>
    tpu.vector_store %arg12[%c0_15, %c0_16, %c0_17, %c0_18], %30 {strides = array<i32>} : memref<1x4x18x18xf32, #tpu.memory_space<vmem>>, vector<1x1x18x18xf32>,
    %c0_19 = arith.constant 0 : index
    %c0_20 = arith.constant 0 : index
    %c0_21 = arith.constant 0 : index
    %c0_22 = arith.constant 0 : index
    %31 = vector.load %arg13[%c0_19, %c0_20, %c0_21, %c0_22] : memref<1x4x18x18xf32, #tpu.memory_space<vmem>>, vector<1x1x18x18xf32>
    %32 = vector.shape_cast %31 : vector<1x1x18x18xf32> to vector<18x18xf32>
    %33 = vector.shape_cast %26 : vector<18x18xf32> to vector<1x1x18x18xf32>
    tpu.vector_store %arg13[%c0_19, %c0_20, %c0_21, %c0_22], %33 {strides = array<i32>} : memref<1x4x18x18xf32, #tpu.memory_space<vmem>>, vector<1x1x18x18xf32>,
    %c0_23 = arith.constant 0 : index
    %c0_24 = arith.constant 0 : index
    %c0_25 = arith.constant 0 : index
    %c0_26 = arith.constant 0 : index
    %34 = vector.load %arg14[%c0_23, %c0_24, %c0_25, %c0_26] : memref<1x4x18x18xf32, #tpu.memory_space<vmem>>, vector<1x1x18x18xf32>
    %35 = vector.shape_cast %34 : vector<1x1x18x18xf32> to vector<18x18xf32>
    %36 = vector.shape_cast %27 : vector<18x18xf32> to vector<1x1x18x18xf32>
    tpu.vector_store %arg14[%c0_23, %c0_24, %c0_25, %c0_26], %36 {strides = array<i32>} : memref<1x4x18x18xf32, #tpu.memory_space<vmem>>, vector<1x1x18x18xf32>,
    %c3 = arith.constant 3 : index
    %37 = memref.load %arg2[%c3] : memref<12xf32, #tpu.memory_space<smem>>
    %38 = vector.broadcast %37 : f32 to vector<18x18xf32>
    %39 = arith.mulf %38, %1 : vector<18x18xf32>
    %c4 = arith.constant 4 : index
    %40 = memref.load %arg2[%c4] : memref<12xf32, #tpu.memory_space<smem>>
    %41 = vector.broadcast %40 : f32 to vector<18x18xf32>
    %42 = arith.mulf %41, %3 : vector<18x18xf32>
    %43 = arith.addf %39, %42 : vector<18x18xf32>
    %c5 = arith.constant 5 : index
    %44 = memref.load %arg2[%c5] : memref<12xf32, #tpu.memory_space<smem>>
    %45 = vector.broadcast %44 : f32 to vector<18x18xf32>
    %46 = arith.mulf %45, %5 : vector<18x18xf32>
    %47 = arith.addf %43, %46 : vector<18x18xf32>
    %c1_27 = arith.constant 1 : index
    %48 = memref.load %arg3[%c1_27] : memref<4xf32, #tpu.memory_space<smem>>
    %49 = vector.broadcast %48 : f32 to vector<18x18xf32>
    %50 = arith.addf %47, %49 : vector<18x18xf32>
    %cst_28 = arith.constant 0.000000e+00 : f32
    %51 = vector.broadcast %cst_28 : f32 to vector<18x18xf32>
    %52 = arith.subf %51, %50 : vector<18x18xf32>
    %53 = math.exp %52 : vector<18x18xf32>
    %cst_29 = arith.constant 1.000000e+00 : f32
    %54 = vector.broadcast %cst_29 : f32 to vector<18x18xf32>
    %55 = arith.addf %54, %53 : vector<18x18xf32>
    %cst_30 = arith.constant 1.000000e+00 : f32
    %56 = vector.broadcast %cst_30 : f32 to vector<18x18xf32>
    %57 = arith.divf %56, %55 : vector<18x18xf32>
    %58 = arith.mulf %50, %57 : vector<18x18xf32>
    %c0_31 = arith.constant 0 : index
    %c1_32 = arith.constant 1 : index
    %c0_33 = arith.constant 0 : index
    %c0_34 = arith.constant 0 : index
    %59 = vector.load %arg12[%c0_31, %c1_32, %c0_33, %c0_34] : memref<1x4x18x18xf32, #tpu.memory_space<vmem>>, vector<1x1x18x18xf32>
    %60 = vector.shape_cast %59 : vector<1x1x18x18xf32> to vector<18x18xf32>
    %61 = vector.shape_cast %50 : vector<18x18xf32> to vector<1x1x18x18xf32>
    tpu.vector_store %arg12[%c0_31, %c1_32, %c0_33, %c0_34], %61 {strides = array<i32>} : memref<1x4x18x18xf32, #tpu.memory_space<vmem>>, vector<1x1x18x18xf32>,
    %c0_35 = arith.constant 0 : index
    %c1_36 = arith.constant 1 : index
    %c0_37 = arith.constant 0 : index
    %c0_38 = arith.constant 0 : index
    %62 = vector.load %arg13[%c0_35, %c1_36, %c0_37, %c0_38] : memref<1x4x18x18xf32, #tpu.memory_space<vmem>>, vector<1x1x18x18xf32>
    %63 = vector.shape_cast %62 : vector<1x1x18x18xf32> to vector<18x18xf32>
    %64 = vector.shape_cast %57 : vector<18x18xf32> to vector<1x1x18x18xf32>
    tpu.vector_store %arg13[%c0_35, %c1_36, %c0_37, %c0_38], %64 {strides = array<i32>} : memref<1x4x18x18xf32, #tpu.memory_space<vmem>>, vector<1x1x18x18xf32>,
    %c0_39 = arith.constant 0 : index
    %c1_40 = arith.constant 1 : index
    %c0_41 = arith.constant 0 : index
    %c0_42 = arith.constant 0 : index
    %65 = vector.load %arg14[%c0_39, %c1_40, %c0_41, %c0_42] : memref<1x4x18x18xf32, #tpu.memory_space<vmem>>, vector<1x1x18x18xf32>
    %66 = vector.shape_cast %65 : vector<1x1x18x18xf32> to vector<18x18xf32>
    %67 = vector.shape_cast %58 : vector<18x18xf32> to vector<1x1x18x18xf32>
    tpu.vector_store %arg14[%c0_39, %c1_40, %c0_41, %c0_42], %67 {strides = array<i32>} : memref<1x4x18x18xf32, #tpu.memory_space<vmem>>, vector<1x1x18x18xf32>,
    %c6 = arith.constant 6 : index
    %68 = memref.load %arg2[%c6] : memref<12xf32, #tpu.memory_space<smem>>
    %69 = vector.broadcast %68 : f32 to vector<18x18xf32>
    %70 = arith.mulf %69, %1 : vector<18x18xf32>
    %c7 = arith.constant 7 : index
    %71 = memref.load %arg2[%c7] : memref<12xf32, #tpu.memory_space<smem>>
    %72 = vector.broadcast %71 : f32 to vector<18x18xf32>
    %73 = arith.mulf %72, %3 : vector<18x18xf32>
    %74 = arith.addf %70, %73 : vector<18x18xf32>
    %c8 = arith.constant 8 : index
    %75 = memref.load %arg2[%c8] : memref<12xf32, #tpu.memory_space<smem>>
    %76 = vector.broadcast %75 : f32 to vector<18x18xf32>
    %77 = arith.mulf %76, %5 : vector<18x18xf32>
    %78 = arith.addf %74, %77 : vector<18x18xf32>
    %c2_43 = arith.constant 2 : index
    %79 = memref.load %arg3[%c2_43] : memref<4xf32, #tpu.memory_space<smem>>
    %80 = vector.broadcast %79 : f32 to vector<18x18xf32>
    %81 = arith.addf %78, %80 : vector<18x18xf32>
    %cst_44 = arith.constant 0.000000e+00 : f32
    %82 = vector.broadcast %cst_44 : f32 to vector<18x18xf32>
    %83 = arith.subf %82, %81 : vector<18x18xf32>
    %84 = math.exp %83 : vector<18x18xf32>
    %cst_45 = arith.constant 1.000000e+00 : f32
    %85 = vector.broadcast %cst_45 : f32 to vector<18x18xf32>
    %86 = arith.addf %85, %84 : vector<18x18xf32>
    %cst_46 = arith.constant 1.000000e+00 : f32
    %87 = vector.broadcast %cst_46 : f32 to vector<18x18xf32>
    %88 = arith.divf %87, %86 : vector<18x18xf32>
    %89 = arith.mulf %81, %88 : vector<18x18xf32>
    %c0_47 = arith.constant 0 : index
    %c2_48 = arith.constant 2 : index
    %c0_49 = arith.constant 0 : index
    %c0_50 = arith.constant 0 : index
    %90 = vector.load %arg12[%c0_47, %c2_48, %c0_49, %c0_50] : memref<1x4x18x18xf32, #tpu.memory_space<vmem>>, vector<1x1x18x18xf32>
    %91 = vector.shape_cast %90 : vector<1x1x18x18xf32> to vector<18x18xf32>
    %92 = vector.shape_cast %81 : vector<18x18xf32> to vector<1x1x18x18xf32>
    tpu.vector_store %arg12[%c0_47, %c2_48, %c0_49, %c0_50], %92 {strides = array<i32>} : memref<1x4x18x18xf32, #tpu.memory_space<vmem>>, vector<1x1x18x18xf32>,
    %c0_51 = arith.constant 0 : index
    %c2_52 = arith.constant 2 : index
    %c0_53 = arith.constant 0 : index
    %c0_54 = arith.constant 0 : index
    %93 = vector.load %arg13[%c0_51, %c2_52, %c0_53, %c0_54] : memref<1x4x18x18xf32, #tpu.memory_space<vmem>>, vector<1x1x18x18xf32>
    %94 = vector.shape_cast %93 : vector<1x1x18x18xf32> to vector<18x18xf32>
    %95 = vector.shape_cast %88 : vector<18x18xf32> to vector<1x1x18x18xf32>
    tpu.vector_store %arg13[%c0_51, %c2_52, %c0_53, %c0_54], %95 {strides = array<i32>} : memref<1x4x18x18xf32, #tpu.memory_space<vmem>>, vector<1x1x18x18xf32>,
    %c0_55 = arith.constant 0 : index
    %c2_56 = arith.constant 2 : index
    %c0_57 = arith.constant 0 : index
    %c0_58 = arith.constant 0 : index
    %96 = vector.load %arg14[%c0_55, %c2_56, %c0_57, %c0_58] : memref<1x4x18x18xf32, #tpu.memory_space<vmem>>, vector<1x1x18x18xf32>
    %97 = vector.shape_cast %96 : vector<1x1x18x18xf32> to vector<18x18xf32>
    %98 = vector.shape_cast %89 : vector<18x18xf32> to vector<1x1x18x18xf32>
    tpu.vector_store %arg14[%c0_55, %c2_56, %c0_57, %c0_58], %98 {strides = array<i32>} : memref<1x4x18x18xf32, #tpu.memory_space<vmem>>, vector<1x1x18x18xf32>,
    %c9 = arith.constant 9 : index
    %99 = memref.load %arg2[%c9] : memref<12xf32, #tpu.memory_space<smem>>
    %100 = vector.broadcast %99 : f32 to vector<18x18xf32>
    %101 = arith.mulf %100, %1 : vector<18x18xf32>
    %c10 = arith.constant 10 : index
    %102 = memref.load %arg2[%c10] : memref<12xf32, #tpu.memory_space<smem>>
    %103 = vector.broadcast %102 : f32 to vector<18x18xf32>
    %104 = arith.mulf %103, %3 : vector<18x18xf32>
    %105 = arith.addf %101, %104 : vector<18x18xf32>
    %c11 = arith.constant 11 : index
    %106 = memref.load %arg2[%c11] : memref<12xf32, #tpu.memory_space<smem>>
    %107 = vector.broadcast %106 : f32 to vector<18x18xf32>
    %108 = arith.mulf %107, %5 : vector<18x18xf32>
    %109 = arith.addf %105, %108 : vector<18x18xf32>
    %c3_59 = arith.constant 3 : index
    %110 = memref.load %arg3[%c3_59] : memref<4xf32, #tpu.memory_space<smem>>
    %111 = vector.broadcast %110 : f32 to vector<18x18xf32>
    %112 = arith.addf %109, %111 : vector<18x18xf32>
    %cst_60 = arith.constant 0.000000e+00 : f32
    %113 = vector.broadcast %cst_60 : f32 to vector<18x18xf32>
    %114 = arith.subf %113, %112 : vector<18x18xf32>
    %115 = math.exp %114 : vector<18x18xf32>
    %cst_61 = arith.constant 1.000000e+00 : f32
    %116 = vector.broadcast %cst_61 : f32 to vector<18x18xf32>
    %117 = arith.addf %116, %115 : vector<18x18xf32>
    %cst_62 = arith.constant 1.000000e+00 : f32
    %118 = vector.broadcast %cst_62 : f32 to vector<18x18xf32>
    %119 = arith.divf %118, %117 : vector<18x18xf32>
    %120 = arith.mulf %112, %119 : vector<18x18xf32>
    %c0_63 = arith.constant 0 : index
    %c3_64 = arith.constant 3 : index
    %c0_65 = arith.constant 0 : index
    %c0_66 = arith.constant 0 : index
    %121 = vector.load %arg12[%c0_63, %c3_64, %c0_65, %c0_66] : memref<1x4x18x18xf32, #tpu.memory_space<vmem>>, vector<1x1x18x18xf32>
    %122 = vector.shape_cast %121 : vector<1x1x18x18xf32> to vector<18x18xf32>
    %123 = vector.shape_cast %112 : vector<18x18xf32> to vector<1x1x18x18xf32>
    tpu.vector_store %arg12[%c0_63, %c3_64, %c0_65, %c0_66], %123 {strides = array<i32>} : memref<1x4x18x18xf32, #tpu.memory_space<vmem>>, vector<1x1x18x18xf32>,
    %c0_67 = arith.constant 0 : index
    %c3_68 = arith.constant 3 : index
    %c0_69 = arith.constant 0 : index
    %c0_70 = arith.constant 0 : index
    %124 = vector.load %arg13[%c0_67, %c3_68, %c0_69, %c0_70] : memref<1x4x18x18xf32, #tpu.memory_space<vmem>>, vector<1x1x18x18xf32>
    %125 = vector.shape_cast %124 : vector<1x1x18x18xf32> to vector<18x18xf32>
    %126 = vector.shape_cast %119 : vector<18x18xf32> to vector<1x1x18x18xf32>
    tpu.vector_store %arg13[%c0_67, %c3_68, %c0_69, %c0_70], %126 {strides = array<i32>} : memref<1x4x18x18xf32, #tpu.memory_space<vmem>>, vector<1x1x18x18xf32>,
    %c0_71 = arith.constant 0 : index
    %c3_72 = arith.constant 3 : index
    %c0_73 = arith.constant 0 : index
    %c0_74 = arith.constant 0 : index
    %127 = vector.load %arg14[%c0_71, %c3_72, %c0_73, %c0_74] : memref<1x4x18x18xf32, #tpu.memory_space<vmem>>, vector<1x1x18x18xf32>
    %128 = vector.shape_cast %127 : vector<1x1x18x18xf32> to vector<18x18xf32>
    %129 = vector.shape_cast %120 : vector<18x18xf32> to vector<1x1x18x18xf32>
    tpu.vector_store %arg14[%c0_71, %c3_72, %c0_73, %c0_74], %129 {strides = array<i32>} : memref<1x4x18x18xf32, #tpu.memory_space<vmem>>, vector<1x1x18x18xf32>,
    %c0_75 = arith.constant 0 : index
    %130 = memref.load %arg5[%c0_75] : memref<8xf32, #tpu.memory_space<smem>>
    %c0_76 = arith.constant 0 : index
    %131 = memref.load %arg4[%c0_76] : memref<32xf32, #tpu.memory_space<smem>>
    %132 = vector.broadcast %131 : f32 to vector<18x18xf32>
    %133 = arith.mulf %132, %27 : vector<18x18xf32>
    %134 = vector.broadcast %130 : f32 to vector<18x18xf32>
    %135 = arith.addf %134, %133 : vector<18x18xf32>
    %c1_77 = arith.constant 1 : index
    %136 = memref.load %arg4[%c1_77] : memref<32xf32, #tpu.memory_space<smem>>
    %137 = vector.broadcast %136 : f32 to vector<18x18xf32>
    %138 = arith.mulf %137, %58 : vector<18x18xf32>
    %139 = arith.addf %135, %138 : vector<18x18xf32>
    %c2_78 = arith.constant 2 : index
    %140 = memref.load %arg4[%c2_78] : memref<32xf32, #tpu.memory_space<smem>>
    %141 = vector.broadcast %140 : f32 to vector<18x18xf32>
    %142 = arith.mulf %141, %89 : vector<18x18xf32>
    %143 = arith.addf %139, %142 : vector<18x18xf32>
    %c3_79 = arith.constant 3 : index
    %144 = memref.load %arg4[%c3_79] : memref<32xf32, #tpu.memory_space<smem>>
    %145 = vector.broadcast %144 : f32 to vector<18x18xf32>
    %146 = arith.mulf %145, %120 : vector<18x18xf32>
    %147 = arith.addf %143, %146 : vector<18x18xf32>
    %cst_80 = arith.constant 0.000000e+00 : f32
    %148 = vector.broadcast %cst_80 : f32 to vector<18x18xf32>
    %149 = arith.subf %148, %147 : vector<18x18xf32>
    %150 = math.exp %149 : vector<18x18xf32>
    %cst_81 = arith.constant 1.000000e+00 : f32
    %151 = vector.broadcast %cst_81 : f32 to vector<18x18xf32>
    %152 = arith.addf %151, %150 : vector<18x18xf32>
    %cst_82 = arith.constant 1.000000e+00 : f32
    %153 = vector.broadcast %cst_82 : f32 to vector<18x18xf32>
    %154 = arith.divf %153, %152 : vector<18x18xf32>
    %155 = arith.mulf %147, %154 : vector<18x18xf32>
    %c0_83 = arith.constant 0 : index
    %156 = memref.load %arg5[%c0_83] : memref<8xf32, #tpu.memory_space<smem>>
    %157 = vector.broadcast %156 : f32 to vector<20x20xf32>
    %c0_84 = arith.constant 0 : index
    %c0_85 = arith.constant 0 : index
    %c0_86 = arith.constant 0 : index
    %c0_87 = arith.constant 0 : index
    %158 = vector.load %arg15[%c0_84, %c0_85, %c0_86, %c0_87] : memref<1x8x20x20xf32, #tpu.memory_space<vmem>>, vector<1x1x20x20xf32>
    %159 = vector.shape_cast %158 : vector<1x1x20x20xf32> to vector<20x20xf32>
    %160 = vector.shape_cast %157 : vector<20x20xf32> to vector<1x1x20x20xf32>
    tpu.vector_store %arg15[%c0_84, %c0_85, %c0_86, %c0_87], %160 {strides = array<i32>} : memref<1x8x20x20xf32, #tpu.memory_space<vmem>>, vector<1x1x20x20xf32>,
    %c0_88 = arith.constant 0 : index
    %161 = memref.load %arg6[%c0_88] : memref<8xf32, #tpu.memory_space<smem>>
    %162 = vector.broadcast %161 : f32 to vector<20x20xf32>
    %c0_89 = arith.constant 0 : index
    %c0_90 = arith.constant 0 : index
    %c0_91 = arith.constant 0 : index
    %c0_92 = arith.constant 0 : index
    %163 = vector.load %arg16[%c0_89, %c0_90, %c0_91, %c0_92] : memref<1x8x20x20xf32, #tpu.memory_space<vmem>>, vector<1x1x20x20xf32>
    %164 = vector.shape_cast %163 : vector<1x1x20x20xf32> to vector<20x20xf32>
    %165 = vector.shape_cast %162 : vector<20x20xf32> to vector<1x1x20x20xf32>
    tpu.vector_store %arg16[%c0_89, %c0_90, %c0_91, %c0_92], %165 {strides = array<i32>} : memref<1x8x20x20xf32, #tpu.memory_space<vmem>>, vector<1x1x20x20xf32>,
    %c0_93 = arith.constant 0 : index
    %166 = memref.load %arg7[%c0_93] : memref<8xf32, #tpu.memory_space<smem>>
    %167 = vector.broadcast %166 : f32 to vector<20x20xf32>
    %c0_94 = arith.constant 0 : index
    %c0_95 = arith.constant 0 : index
    %c0_96 = arith.constant 0 : index
    %c0_97 = arith.constant 0 : index
    %168 = vector.load %arg17[%c0_94, %c0_95, %c0_96, %c0_97] : memref<1x8x20x20xf32, #tpu.memory_space<vmem>>, vector<1x1x20x20xf32>
    %169 = vector.shape_cast %168 : vector<1x1x20x20xf32> to vector<20x20xf32>
    %170 = vector.shape_cast %167 : vector<20x20xf32> to vector<1x1x20x20xf32>
    tpu.vector_store %arg17[%c0_94, %c0_95, %c0_96, %c0_97], %170 {strides = array<i32>} : memref<1x8x20x20xf32, #tpu.memory_space<vmem>>, vector<1x1x20x20xf32>,
    %c0_98 = arith.constant 0 : index
    %c0_99 = arith.constant 0 : index
    %c1_100 = arith.constant 1 : index
    %c1_101 = arith.constant 1 : index
    %171 = vector.load %arg15[%c0_98, %c0_99, %c1_100, %c1_101] : memref<1x8x20x20xf32, #tpu.memory_space<vmem>>, vector<1x1x18x18xf32>
    %172 = vector.shape_cast %171 : vector<1x1x18x18xf32> to vector<18x18xf32>
    %173 = vector.shape_cast %147 : vector<18x18xf32> to vector<1x1x18x18xf32>
    tpu.vector_store %arg15[%c0_98, %c0_99, %c1_100, %c1_101], %173 {strides = array<i32>} : memref<1x8x20x20xf32, #tpu.memory_space<vmem>>, vector<1x1x18x18xf32>,
    %c0_102 = arith.constant 0 : index
    %c0_103 = arith.constant 0 : index
    %c1_104 = arith.constant 1 : index
    %c1_105 = arith.constant 1 : index
    %174 = vector.load %arg16[%c0_102, %c0_103, %c1_104, %c1_105] : memref<1x8x20x20xf32, #tpu.memory_space<vmem>>, vector<1x1x18x18xf32>
    %175 = vector.shape_cast %174 : vector<1x1x18x18xf32> to vector<18x18xf32>
    %176 = vector.shape_cast %154 : vector<18x18xf32> to vector<1x1x18x18xf32>
    tpu.vector_store %arg16[%c0_102, %c0_103, %c1_104, %c1_105], %176 {strides = array<i32>} : memref<1x8x20x20xf32, #tpu.memory_space<vmem>>, vector<1x1x18x18xf32>,
    %c0_106 = arith.constant 0 : index
    %c0_107 = arith.constant 0 : index
    %c1_108 = arith.constant 1 : index
    %c1_109 = arith.constant 1 : index
    %177 = vector.load %arg17[%c0_106, %c0_107, %c1_108, %c1_109] : memref<1x8x20x20xf32, #tpu.memory_space<vmem>>, vector<1x1x18x18xf32>
    %178 = vector.shape_cast %177 : vector<1x1x18x18xf32> to vector<18x18xf32>
    %179 = vector.shape_cast %155 : vector<18x18xf32> to vector<1x1x18x18xf32>
    tpu.vector_store %arg17[%c0_106, %c0_107, %c1_108, %c1_109], %179 {strides = array<i32>} : memref<1x8x20x20xf32, #tpu.memory_space<vmem>>, vector<1x1x18x18xf32>,
    %c1_110 = arith.constant 1 : index
    %180 = memref.load %arg5[%c1_110] : memref<8xf32, #tpu.memory_space<smem>>
    %c4_111 = arith.constant 4 : index
    %181 = memref.load %arg4[%c4_111] : memref<32xf32, #tpu.memory_space<smem>>
    %182 = vector.broadcast %181 : f32 to vector<18x18xf32>
    %183 = arith.mulf %182, %27 : vector<18x18xf32>
    %184 = vector.broadcast %180 : f32 to vector<18x18xf32>
    %185 = arith.addf %184, %183 : vector<18x18xf32>
    %c5_112 = arith.constant 5 : index
    %186 = memref.load %arg4[%c5_112] : memref<32xf32, #tpu.memory_space<smem>>
    %187 = vector.broadcast %186 : f32 to vector<18x18xf32>
    %188 = arith.mulf %187, %58 : vector<18x18xf32>
    %189 = arith.addf %185, %188 : vector<18x18xf32>
    %c6_113 = arith.constant 6 : index
    %190 = memref.load %arg4[%c6_113] : memref<32xf32, #tpu.memory_space<smem>>
    %191 = vector.broadcast %190 : f32 to vector<18x18xf32>
    %192 = arith.mulf %191, %89 : vector<18x18xf32>
    %193 = arith.addf %189, %192 : vector<18x18xf32>
    %c7_114 = arith.constant 7 : index
    %194 = memref.load %arg4[%c7_114] : memref<32xf32, #tpu.memory_space<smem>>
    %195 = vector.broadcast %194 : f32 to vector<18x18xf32>
    %196 = arith.mulf %195, %120 : vector<18x18xf32>
    %197 = arith.addf %193, %196 : vector<18x18xf32>
    %cst_115 = arith.constant 0.000000e+00 : f32
    %198 = vector.broadcast %cst_115 : f32 to vector<18x18xf32>
    %199 = arith.subf %198, %197 : vector<18x18xf32>
    %200 = math.exp %199 : vector<18x18xf32>
    %cst_116 = arith.constant 1.000000e+00 : f32
    %201 = vector.broadcast %cst_116 : f32 to vector<18x18xf32>
    %202 = arith.addf %201, %200 : vector<18x18xf32>
    %cst_117 = arith.constant 1.000000e+00 : f32
    %203 = vector.broadcast %cst_117 : f32 to vector<18x18xf32>
    %204 = arith.divf %203, %202 : vector<18x18xf32>
    %205 = arith.mulf %197, %204 : vector<18x18xf32>
    %c1_118 = arith.constant 1 : index
    %206 = memref.load %arg5[%c1_118] : memref<8xf32, #tpu.memory_space<smem>>
    %207 = vector.broadcast %206 : f32 to vector<20x20xf32>
    %c0_119 = arith.constant 0 : index
    %c1_120 = arith.constant 1 : index
    %c0_121 = arith.constant 0 : index
    %c0_122 = arith.constant 0 : index
    %208 = vector.load %arg15[%c0_119, %c1_120, %c0_121, %c0_122] : memref<1x8x20x20xf32, #tpu.memory_space<vmem>>, vector<1x1x20x20xf32>
    %209 = vector.shape_cast %208 : vector<1x1x20x20xf32> to vector<20x20xf32>
    %210 = vector.shape_cast %207 : vector<20x20xf32> to vector<1x1x20x20xf32>
    tpu.vector_store %arg15[%c0_119, %c1_120, %c0_121, %c0_122], %210 {strides = array<i32>} : memref<1x8x20x20xf32, #tpu.memory_space<vmem>>, vector<1x1x20x20xf32>,
    %c1_123 = arith.constant 1 : index
    %211 = memref.load %arg6[%c1_123] : memref<8xf32, #tpu.memory_space<smem>>
    %212 = vector.broadcast %211 : f32 to vector<20x20xf32>
    %c0_124 = arith.constant 0 : index
    %c1_125 = arith.constant 1 : index
    %c0_126 = arith.constant 0 : index
    %c0_127 = arith.constant 0 : index
    %213 = vector.load %arg16[%c0_124, %c1_125, %c0_126, %c0_127] : memref<1x8x20x20xf32, #tpu.memory_space<vmem>>, vector<1x1x20x20xf32>
    %214 = vector.shape_cast %213 : vector<1x1x20x20xf32> to vector<20x20xf32>
    %215 = vector.shape_cast %212 : vector<20x20xf32> to vector<1x1x20x20xf32>
    tpu.vector_store %arg16[%c0_124, %c1_125, %c0_126, %c0_127], %215 {strides = array<i32>} : memref<1x8x20x20xf32, #tpu.memory_space<vmem>>, vector<1x1x20x20xf32>,
    %c1_128 = arith.constant 1 : index
    %216 = memref.load %arg7[%c1_128] : memref<8xf32, #tpu.memory_space<smem>>
    %217 = vector.broadcast %216 : f32 to vector<20x20xf32>
    %c0_129 = arith.constant 0 : index
    %c1_130 = arith.constant 1 : index
    %c0_131 = arith.constant 0 : index
    %c0_132 = arith.constant 0 : index
    %218 = vector.load %arg17[%c0_129, %c1_130, %c0_131, %c0_132] : memref<1x8x20x20xf32, #tpu.memory_space<vmem>>, vector<1x1x20x20xf32>
    %219 = vector.shape_cast %218 : vector<1x1x20x20xf32> to vector<20x20xf32>
    %220 = vector.shape_cast %217 : vector<20x20xf32> to vector<1x1x20x20xf32>
    tpu.vector_store %arg17[%c0_129, %c1_130, %c0_131, %c0_132], %220 {strides = array<i32>} : memref<1x8x20x20xf32, #tpu.memory_space<vmem>>, vector<1x1x20x20xf32>,
    %c0_133 = arith.constant 0 : index
    %c1_134 = arith.constant 1 : index
    %c1_135 = arith.constant 1 : index
    %c1_136 = arith.constant 1 : index
    %221 = vector.load %arg15[%c0_133, %c1_134, %c1_135, %c1_136] : memref<1x8x20x20xf32, #tpu.memory_space<vmem>>, vector<1x1x18x18xf32>
    %222 = vector.shape_cast %221 : vector<1x1x18x18xf32> to vector<18x18xf32>
    %223 = vector.shape_cast %197 : vector<18x18xf32> to vector<1x1x18x18xf32>
    tpu.vector_store %arg15[%c0_133, %c1_134, %c1_135, %c1_136], %223 {strides = array<i32>} : memref<1x8x20x20xf32, #tpu.memory_space<vmem>>, vector<1x1x18x18xf32>,
    %c0_137 = arith.constant 0 : index
    %c1_138 = arith.constant 1 : index
    %c1_139 = arith.constant 1 : index
    %c1_140 = arith.constant 1 : index
    %224 = vector.load %arg16[%c0_137, %c1_138, %c1_139, %c1_140] : memref<1x8x20x20xf32, #tpu.memory_space<vmem>>, vector<1x1x18x18xf32>
    %225 = vector.shape_cast %224 : vector<1x1x18x18xf32> to vector<18x18xf32>
    %226 = vector.shape_cast %204 : vector<18x18xf32> to vector<1x1x18x18xf32>
    tpu.vector_store %arg16[%c0_137, %c1_138, %c1_139, %c1_140], %226 {strides = array<i32>} : memref<1x8x20x20xf32, #tpu.memory_space<vmem>>, vector<1x1x18x18xf32>,
    %c0_141 = arith.constant 0 : index
    %c1_142 = arith.constant 1 : index
    %c1_143 = arith.constant 1 : index
    %c1_144 = arith.constant 1 : index
    %227 = vector.load %arg17[%c0_141, %c1_142, %c1_143, %c1_144] : memref<1x8x20x20xf32, #tpu.memory_space<vmem>>, vector<1x1x18x18xf32>
    %228 = vector.shape_cast %227 : vector<1x1x18x18xf32> to vector<18x18xf32>
    %229 = vector.shape_cast %205 : vector<18x18xf32> to vector<1x1x18x18xf32>
    tpu.vector_store %arg17[%c0_141, %c1_142, %c1_143, %c1_144], %229 {strides = array<i32>} : memref<1x8x20x20xf32, #tpu.memory_space<vmem>>, vector<1x1x18x18xf32>,
    %c2_145 = arith.constant 2 : index
    %230 = memref.load %arg5[%c2_145] : memref<8xf32, #tpu.memory_space<smem>>
    %c8_146 = arith.constant 8 : index
    %231 = memref.load %arg4[%c8_146] : memref<32xf32, #tpu.memory_space<smem>>
    %232 = vector.broadcast %231 : f32 to vector<18x18xf32>
    %233 = arith.mulf %232, %27 : vector<18x18xf32>
    %234 = vector.broadcast %230 : f32 to vector<18x18xf32>
    %235 = arith.addf %234, %233 : vector<18x18xf32>
    %c9_147 = arith.constant 9 : index
    %236 = memref.load %arg4[%c9_147] : memref<32xf32, #tpu.memory_space<smem>>
    %237 = vector.broadcast %236 : f32 to vector<18x18xf32>
    %238 = arith.mulf %237, %58 : vector<18x18xf32>
    %239 = arith.addf %235, %238 : vector<18x18xf32>
    %c10_148 = arith.constant 10 : index
    %240 = memref.load %arg4[%c10_148] : memref<32xf32, #tpu.memory_space<smem>>
    %241 = vector.broadcast %240 : f32 to vector<18x18xf32>
    %242 = arith.mulf %241, %89 : vector<18x18xf32>
    %243 = arith.addf %239, %242 : vector<18x18xf32>
    %c11_149 = arith.constant 11 : index
    %244 = memref.load %arg4[%c11_149] : memref<32xf32, #tpu.memory_space<smem>>
    %245 = vector.broadcast %244 : f32 to vector<18x18xf32>
    %246 = arith.mulf %245, %120 : vector<18x18xf32>
    %247 = arith.addf %243, %246 : vector<18x18xf32>
    %cst_150 = arith.constant 0.000000e+00 : f32
    %248 = vector.broadcast %cst_150 : f32 to vector<18x18xf32>
    %249 = arith.subf %248, %247 : vector<18x18xf32>
    %250 = math.exp %249 : vector<18x18xf32>
    %cst_151 = arith.constant 1.000000e+00 : f32
    %251 = vector.broadcast %cst_151 : f32 to vector<18x18xf32>
    %252 = arith.addf %251, %250 : vector<18x18xf32>
    %cst_152 = arith.constant 1.000000e+00 : f32
    %253 = vector.broadcast %cst_152 : f32 to vector<18x18xf32>
    %254 = arith.divf %253, %252 : vector<18x18xf32>
    %255 = arith.mulf %247, %254 : vector<18x18xf32>
    %c2_153 = arith.constant 2 : index
    %256 = memref.load %arg5[%c2_153] : memref<8xf32, #tpu.memory_space<smem>>
    %257 = vector.broadcast %256 : f32 to vector<20x20xf32>
    %c0_154 = arith.constant 0 : index
    %c2_155 = arith.constant 2 : index
    %c0_156 = arith.constant 0 : index
    %c0_157 = arith.constant 0 : index
    %258 = vector.load %arg15[%c0_154, %c2_155, %c0_156, %c0_157] : memref<1x8x20x20xf32, #tpu.memory_space<vmem>>, vector<1x1x20x20xf32>
    %259 = vector.shape_cast %258 : vector<1x1x20x20xf32> to vector<20x20xf32>
    %260 = vector.shape_cast %257 : vector<20x20xf32> to vector<1x1x20x20xf32>
    tpu.vector_store %arg15[%c0_154, %c2_155, %c0_156, %c0_157], %260 {strides = array<i32>} : memref<1x8x20x20xf32, #tpu.memory_space<vmem>>, vector<1x1x20x20xf32>,
    %c2_158 = arith.constant 2 : index
    %261 = memref.load %arg6[%c2_158] : memref<8xf32, #tpu.memory_space<smem>>
    %262 = vector.broadcast %261 : f32 to vector<20x20xf32>
    %c0_159 = arith.constant 0 : index
    %c2_160 = arith.constant 2 : index
    %c0_161 = arith.constant 0 : index
    %c0_162 = arith.constant 0 : index
    %263 = vector.load %arg16[%c0_159, %c2_160, %c0_161, %c0_162] : memref<1x8x20x20xf32, #tpu.memory_space<vmem>>, vector<1x1x20x20xf32>
    %264 = vector.shape_cast %263 : vector<1x1x20x20xf32> to vector<20x20xf32>
    %265 = vector.shape_cast %262 : vector<20x20xf32> to vector<1x1x20x20xf32>
    tpu.vector_store %arg16[%c0_159, %c2_160, %c0_161, %c0_162], %265 {strides = array<i32>} : memref<1x8x20x20xf32, #tpu.memory_space<vmem>>, vector<1x1x20x20xf32>,
    %c2_163 = arith.constant 2 : index
    %266 = memref.load %arg7[%c2_163] : memref<8xf32, #tpu.memory_space<smem>>
    %267 = vector.broadcast %266 : f32 to vector<20x20xf32>
    %c0_164 = arith.constant 0 : index
    %c2_165 = arith.constant 2 : index
    %c0_166 = arith.constant 0 : index
    %c0_167 = arith.constant 0 : index
    %268 = vector.load %arg17[%c0_164, %c2_165, %c0_166, %c0_167] : memref<1x8x20x20xf32, #tpu.memory_space<vmem>>, vector<1x1x20x20xf32>
    %269 = vector.shape_cast %268 : vector<1x1x20x20xf32> to vector<20x20xf32>
    %270 = vector.shape_cast %267 : vector<20x20xf32> to vector<1x1x20x20xf32>
    tpu.vector_store %arg17[%c0_164, %c2_165, %c0_166, %c0_167], %270 {strides = array<i32>} : memref<1x8x20x20xf32, #tpu.memory_space<vmem>>, vector<1x1x20x20xf32>,
    %c0_168 = arith.constant 0 : index
    %c2_169 = arith.constant 2 : index
    %c1_170 = arith.constant 1 : index
    %c1_171 = arith.constant 1 : index
    %271 = vector.load %arg15[%c0_168, %c2_169, %c1_170, %c1_171] : memref<1x8x20x20xf32, #tpu.memory_space<vmem>>, vector<1x1x18x18xf32>
    %272 = vector.shape_cast %271 : vector<1x1x18x18xf32> to vector<18x18xf32>
    %273 = vector.shape_cast %247 : vector<18x18xf32> to vector<1x1x18x18xf32>
    tpu.vector_store %arg15[%c0_168, %c2_169, %c1_170, %c1_171], %273 {strides = array<i32>} : memref<1x8x20x20xf32, #tpu.memory_space<vmem>>, vector<1x1x18x18xf32>,
    %c0_172 = arith.constant 0 : index
    %c2_173 = arith.constant 2 : index
    %c1_174 = arith.constant 1 : index
    %c1_175 = arith.constant 1 : index
    %274 = vector.load %arg16[%c0_172, %c2_173, %c1_174, %c1_175] : memref<1x8x20x20xf32, #tpu.memory_space<vmem>>, vector<1x1x18x18xf32>
    %275 = vector.shape_cast %274 : vector<1x1x18x18xf32> to vector<18x18xf32>
    %276 = vector.shape_cast %254 : vector<18x18xf32> to vector<1x1x18x18xf32>
    tpu.vector_store %arg16[%c0_172, %c2_173, %c1_174, %c1_175], %276 {strides = array<i32>} : memref<1x8x20x20xf32, #tpu.memory_space<vmem>>, vector<1x1x18x18xf32>,
    %c0_176 = arith.constant 0 : index
    %c2_177 = arith.constant 2 : index
    %c1_178 = arith.constant 1 : index
    %c1_179 = arith.constant 1 : index
    %277 = vector.load %arg17[%c0_176, %c2_177, %c1_178, %c1_179] : memref<1x8x20x20xf32, #tpu.memory_space<vmem>>, vector<1x1x18x18xf32>
    %278 = vector.shape_cast %277 : vector<1x1x18x18xf32> to vector<18x18xf32>
    %279 = vector.shape_cast %255 : vector<18x18xf32> to vector<1x1x18x18xf32>
    tpu.vector_store %arg17[%c0_176, %c2_177, %c1_178, %c1_179], %279 {strides = array<i32>} : memref<1x8x20x20xf32, #tpu.memory_space<vmem>>, vector<1x1x18x18xf32>,
    %c3_180 = arith.constant 3 : index
    %280 = memref.load %arg5[%c3_180] : memref<8xf32, #tpu.memory_space<smem>>
    %c12 = arith.constant 12 : index
    %281 = memref.load %arg4[%c12] : memref<32xf32, #tpu.memory_space<smem>>
    %282 = vector.broadcast %281 : f32 to vector<18x18xf32>
    %283 = arith.mulf %282, %27 : vector<18x18xf32>
    %284 = vector.broadcast %280 : f32 to vector<18x18xf32>
    %285 = arith.addf %284, %283 : vector<18x18xf32>
    %c13 = arith.constant 13 : index
    %286 = memref.load %arg4[%c13] : memref<32xf32, #tpu.memory_space<smem>>
    %287 = vector.broadcast %286 : f32 to vector<18x18xf32>
    %288 = arith.mulf %287, %58 : vector<18x18xf32>
    %289 = arith.addf %285, %288 : vector<18x18xf32>
    %c14 = arith.constant 14 : index
    %290 = memref.load %arg4[%c14] : memref<32xf32, #tpu.memory_space<smem>>
    %291 = vector.broadcast %290 : f32 to vector<18x18xf32>
    %292 = arith.mulf %291, %89 : vector<18x18xf32>
    %293 = arith.addf %289, %292 : vector<18x18xf32>
    %c15 = arith.constant 15 : index
    %294 = memref.load %arg4[%c15] : memref<32xf32, #tpu.memory_space<smem>>
    %295 = vector.broadcast %294 : f32 to vector<18x18xf32>
    %296 = arith.mulf %295, %120 : vector<18x18xf32>
    %297 = arith.addf %293, %296 : vector<18x18xf32>
    %cst_181 = arith.constant 0.000000e+00 : f32
    %298 = vector.broadcast %cst_181 : f32 to vector<18x18xf32>
    %299 = arith.subf %298, %297 : vector<18x18xf32>
    %300 = math.exp %299 : vector<18x18xf32>
    %cst_182 = arith.constant 1.000000e+00 : f32
    %301 = vector.broadcast %cst_182 : f32 to vector<18x18xf32>
    %302 = arith.addf %301, %300 : vector<18x18xf32>
    %cst_183 = arith.constant 1.000000e+00 : f32
    %303 = vector.broadcast %cst_183 : f32 to vector<18x18xf32>
    %304 = arith.divf %303, %302 : vector<18x18xf32>
    %305 = arith.mulf %297, %304 : vector<18x18xf32>
    %c3_184 = arith.constant 3 : index
    %306 = memref.load %arg5[%c3_184] : memref<8xf32, #tpu.memory_space<smem>>
    %307 = vector.broadcast %306 : f32 to vector<20x20xf32>
    %c0_185 = arith.constant 0 : index
    %c3_186 = arith.constant 3 : index
    %c0_187 = arith.constant 0 : index
    %c0_188 = arith.constant 0 : index
    %308 = vector.load %arg15[%c0_185, %c3_186, %c0_187, %c0_188] : memref<1x8x20x20xf32, #tpu.memory_space<vmem>>, vector<1x1x20x20xf32>
    %309 = vector.shape_cast %308 : vector<1x1x20x20xf32> to vector<20x20xf32>
    %310 = vector.shape_cast %307 : vector<20x20xf32> to vector<1x1x20x20xf32>
    tpu.vector_store %arg15[%c0_185, %c3_186, %c0_187, %c0_188], %310 {strides = array<i32>} : memref<1x8x20x20xf32, #tpu.memory_space<vmem>>, vector<1x1x20x20xf32>,
    %c3_189 = arith.constant 3 : index
    %311 = memref.load %arg6[%c3_189] : memref<8xf32, #tpu.memory_space<smem>>
    %312 = vector.broadcast %311 : f32 to vector<20x20xf32>
    %c0_190 = arith.constant 0 : index
    %c3_191 = arith.constant 3 : index
    %c0_192 = arith.constant 0 : index
    %c0_193 = arith.constant 0 : index
    %313 = vector.load %arg16[%c0_190, %c3_191, %c0_192, %c0_193] : memref<1x8x20x20xf32, #tpu.memory_space<vmem>>, vector<1x1x20x20xf32>
    %314 = vector.shape_cast %313 : vector<1x1x20x20xf32> to vector<20x20xf32>
    %315 = vector.shape_cast %312 : vector<20x20xf32> to vector<1x1x20x20xf32>
    tpu.vector_store %arg16[%c0_190, %c3_191, %c0_192, %c0_193], %315 {strides = array<i32>} : memref<1x8x20x20xf32, #tpu.memory_space<vmem>>, vector<1x1x20x20xf32>,
    %c3_194 = arith.constant 3 : index
    %316 = memref.load %arg7[%c3_194] : memref<8xf32, #tpu.memory_space<smem>>
    %317 = vector.broadcast %316 : f32 to vector<20x20xf32>
    %c0_195 = arith.constant 0 : index
    %c3_196 = arith.constant 3 : index
    %c0_197 = arith.constant 0 : index
    %c0_198 = arith.constant 0 : index
    %318 = vector.load %arg17[%c0_195, %c3_196, %c0_197, %c0_198] : memref<1x8x20x20xf32, #tpu.memory_space<vmem>>, vector<1x1x20x20xf32>
    %319 = vector.shape_cast %318 : vector<1x1x20x20xf32> to vector<20x20xf32>
    %320 = vector.shape_cast %317 : vector<20x20xf32> to vector<1x1x20x20xf32>
    tpu.vector_store %arg17[%c0_195, %c3_196, %c0_197, %c0_198], %320 {strides = array<i32>} : memref<1x8x20x20xf32, #tpu.memory_space<vmem>>, vector<1x1x20x20xf32>,
    %c0_199 = arith.constant 0 : index
    %c3_200 = arith.constant 3 : index
    %c1_201 = arith.constant 1 : index
    %c1_202 = arith.constant 1 : index
    %321 = vector.load %arg15[%c0_199, %c3_200, %c1_201, %c1_202] : memref<1x8x20x20xf32, #tpu.memory_space<vmem>>, vector<1x1x18x18xf32>
    %322 = vector.shape_cast %321 : vector<1x1x18x18xf32> to vector<18x18xf32>
    %323 = vector.shape_cast %297 : vector<18x18xf32> to vector<1x1x18x18xf32>
    tpu.vector_store %arg15[%c0_199, %c3_200, %c1_201, %c1_202], %323 {strides = array<i32>} : memref<1x8x20x20xf32, #tpu.memory_space<vmem>>, vector<1x1x18x18xf32>,
    %c0_203 = arith.constant 0 : index
    %c3_204 = arith.constant 3 : index
    %c1_205 = arith.constant 1 : index
    %c1_206 = arith.constant 1 : index
    %324 = vector.load %arg16[%c0_203, %c3_204, %c1_205, %c1_206] : memref<1x8x20x20xf32, #tpu.memory_space<vmem>>, vector<1x1x18x18xf32>
    %325 = vector.shape_cast %324 : vector<1x1x18x18xf32> to vector<18x18xf32>
    %326 = vector.shape_cast %304 : vector<18x18xf32> to vector<1x1x18x18xf32>
    tpu.vector_store %arg16[%c0_203, %c3_204, %c1_205, %c1_206], %326 {strides = array<i32>} : memref<1x8x20x20xf32, #tpu.memory_space<vmem>>, vector<1x1x18x18xf32>,
    %c0_207 = arith.constant 0 : index
    %c3_208 = arith.constant 3 : index
    %c1_209 = arith.constant 1 : index
    %c1_210 = arith.constant 1 : index
    %327 = vector.load %arg17[%c0_207, %c3_208, %c1_209, %c1_210] : memref<1x8x20x20xf32, #tpu.memory_space<vmem>>, vector<1x1x18x18xf32>
    %328 = vector.shape_cast %327 : vector<1x1x18x18xf32> to vector<18x18xf32>
    %329 = vector.shape_cast %305 : vector<18x18xf32> to vector<1x1x18x18xf32>
    tpu.vector_store %arg17[%c0_207, %c3_208, %c1_209, %c1_210], %329 {strides = array<i32>} : memref<1x8x20x20xf32, #tpu.memory_space<vmem>>, vector<1x1x18x18xf32>,
    %c4_211 = arith.constant 4 : index
    %330 = memref.load %arg5[%c4_211] : memref<8xf32, #tpu.memory_space<smem>>
    %c16 = arith.constant 16 : index
    %331 = memref.load %arg4[%c16] : memref<32xf32, #tpu.memory_space<smem>>
    %332 = vector.broadcast %331 : f32 to vector<18x18xf32>
    %333 = arith.mulf %332, %27 : vector<18x18xf32>
    %334 = vector.broadcast %330 : f32 to vector<18x18xf32>
    %335 = arith.addf %334, %333 : vector<18x18xf32>
    %c17 = arith.constant 17 : index
    %336 = memref.load %arg4[%c17] : memref<32xf32, #tpu.memory_space<smem>>
    %337 = vector.broadcast %336 : f32 to vector<18x18xf32>
    %338 = arith.mulf %337, %58 : vector<18x18xf32>
    %339 = arith.addf %335, %338 : vector<18x18xf32>
    %c18 = arith.constant 18 : index
    %340 = memref.load %arg4[%c18] : memref<32xf32, #tpu.memory_space<smem>>
    %341 = vector.broadcast %340 : f32 to vector<18x18xf32>
    %342 = arith.mulf %341, %89 : vector<18x18xf32>
    %343 = arith.addf %339, %342 : vector<18x18xf32>
    %c19 = arith.constant 19 : index
    %344 = memref.load %arg4[%c19] : memref<32xf32, #tpu.memory_space<smem>>
    %345 = vector.broadcast %344 : f32 to vector<18x18xf32>
    %346 = arith.mulf %345, %120 : vector<18x18xf32>
    %347 = arith.addf %343, %346 : vector<18x18xf32>
    %cst_212 = arith.constant 0.000000e+00 : f32
    %348 = vector.broadcast %cst_212 : f32 to vector<18x18xf32>
    %349 = arith.subf %348, %347 : vector<18x18xf32>
    %350 = math.exp %349 : vector<18x18xf32>
    %cst_213 = arith.constant 1.000000e+00 : f32
    %351 = vector.broadcast %cst_213 : f32 to vector<18x18xf32>
    %352 = arith.addf %351, %350 : vector<18x18xf32>
    %cst_214 = arith.constant 1.000000e+00 : f32
    %353 = vector.broadcast %cst_214 : f32 to vector<18x18xf32>
    %354 = arith.divf %353, %352 : vector<18x18xf32>
    %355 = arith.mulf %347, %354 : vector<18x18xf32>
    %c4_215 = arith.constant 4 : index
    %356 = memref.load %arg5[%c4_215] : memref<8xf32, #tpu.memory_space<smem>>
    %357 = vector.broadcast %356 : f32 to vector<20x20xf32>
    %c0_216 = arith.constant 0 : index
    %c4_217 = arith.constant 4 : index
    %c0_218 = arith.constant 0 : index
    %c0_219 = arith.constant 0 : index
    %358 = vector.load %arg15[%c0_216, %c4_217, %c0_218, %c0_219] : memref<1x8x20x20xf32, #tpu.memory_space<vmem>>, vector<1x1x20x20xf32>
    %359 = vector.shape_cast %358 : vector<1x1x20x20xf32> to vector<20x20xf32>
    %360 = vector.shape_cast %357 : vector<20x20xf32> to vector<1x1x20x20xf32>
    tpu.vector_store %arg15[%c0_216, %c4_217, %c0_218, %c0_219], %360 {strides = array<i32>} : memref<1x8x20x20xf32, #tpu.memory_space<vmem>>, vector<1x1x20x20xf32>,
    %c4_220 = arith.constant 4 : index
    %361 = memref.load %arg6[%c4_220] : memref<8xf32, #tpu.memory_space<smem>>
    %362 = vector.broadcast %361 : f32 to vector<20x20xf32>
    %c0_221 = arith.constant 0 : index
    %c4_222 = arith.constant 4 : index
    %c0_223 = arith.constant 0 : index
    %c0_224 = arith.constant 0 : index
    %363 = vector.load %arg16[%c0_221, %c4_222, %c0_223, %c0_224] : memref<1x8x20x20xf32, #tpu.memory_space<vmem>>, vector<1x1x20x20xf32>
    %364 = vector.shape_cast %363 : vector<1x1x20x20xf32> to vector<20x20xf32>
    %365 = vector.shape_cast %362 : vector<20x20xf32> to vector<1x1x20x20xf32>
    tpu.vector_store %arg16[%c0_221, %c4_222, %c0_223, %c0_224], %365 {strides = array<i32>} : memref<1x8x20x20xf32, #tpu.memory_space<vmem>>, vector<1x1x20x20xf32>,
    %c4_225 = arith.constant 4 : index
    %366 = memref.load %arg7[%c4_225] : memref<8xf32, #tpu.memory_space<smem>>
    %367 = vector.broadcast %366 : f32 to vector<20x20xf32>
    %c0_226 = arith.constant 0 : index
    %c4_227 = arith.constant 4 : index
    %c0_228 = arith.constant 0 : index
    %c0_229 = arith.constant 0 : index
    %368 = vector.load %arg17[%c0_226, %c4_227, %c0_228, %c0_229] : memref<1x8x20x20xf32, #tpu.memory_space<vmem>>, vector<1x1x20x20xf32>
    %369 = vector.shape_cast %368 : vector<1x1x20x20xf32> to vector<20x20xf32>
    %370 = vector.shape_cast %367 : vector<20x20xf32> to vector<1x1x20x20xf32>
    tpu.vector_store %arg17[%c0_226, %c4_227, %c0_228, %c0_229], %370 {strides = array<i32>} : memref<1x8x20x20xf32, #tpu.memory_space<vmem>>, vector<1x1x20x20xf32>,
    %c0_230 = arith.constant 0 : index
    %c4_231 = arith.constant 4 : index
    %c1_232 = arith.constant 1 : index
    %c1_233 = arith.constant 1 : index
    %371 = vector.load %arg15[%c0_230, %c4_231, %c1_232, %c1_233] : memref<1x8x20x20xf32, #tpu.memory_space<vmem>>, vector<1x1x18x18xf32>
    %372 = vector.shape_cast %371 : vector<1x1x18x18xf32> to vector<18x18xf32>
    %373 = vector.shape_cast %347 : vector<18x18xf32> to vector<1x1x18x18xf32>
    tpu.vector_store %arg15[%c0_230, %c4_231, %c1_232, %c1_233], %373 {strides = array<i32>} : memref<1x8x20x20xf32, #tpu.memory_space<vmem>>, vector<1x1x18x18xf32>,
    %c0_234 = arith.constant 0 : index
    %c4_235 = arith.constant 4 : index
    %c1_236 = arith.constant 1 : index
    %c1_237 = arith.constant 1 : index
    %374 = vector.load %arg16[%c0_234, %c4_235, %c1_236, %c1_237] : memref<1x8x20x20xf32, #tpu.memory_space<vmem>>, vector<1x1x18x18xf32>
    %375 = vector.shape_cast %374 : vector<1x1x18x18xf32> to vector<18x18xf32>
    %376 = vector.shape_cast %354 : vector<18x18xf32> to vector<1x1x18x18xf32>
    tpu.vector_store %arg16[%c0_234, %c4_235, %c1_236, %c1_237], %376 {strides = array<i32>} : memref<1x8x20x20xf32, #tpu.memory_space<vmem>>, vector<1x1x18x18xf32>,
    %c0_238 = arith.constant 0 : index
    %c4_239 = arith.constant 4 : index
    %c1_240 = arith.constant 1 : index
    %c1_241 = arith.constant 1 : index
    %377 = vector.load %arg17[%c0_238, %c4_239, %c1_240, %c1_241] : memref<1x8x20x20xf32, #tpu.memory_space<vmem>>, vector<1x1x18x18xf32>
    %378 = vector.shape_cast %377 : vector<1x1x18x18xf32> to vector<18x18xf32>
    %379 = vector.shape_cast %355 : vector<18x18xf32> to vector<1x1x18x18xf32>
    tpu.vector_store %arg17[%c0_238, %c4_239, %c1_240, %c1_241], %379 {strides = array<i32>} : memref<1x8x20x20xf32, #tpu.memory_space<vmem>>, vector<1x1x18x18xf32>,
    %c5_242 = arith.constant 5 : index
    %380 = memref.load %arg5[%c5_242] : memref<8xf32, #tpu.memory_space<smem>>
    %c20 = arith.constant 20 : index
    %381 = memref.load %arg4[%c20] : memref<32xf32, #tpu.memory_space<smem>>
    %382 = vector.broadcast %381 : f32 to vector<18x18xf32>
    %383 = arith.mulf %382, %27 : vector<18x18xf32>
    %384 = vector.broadcast %380 : f32 to vector<18x18xf32>
    %385 = arith.addf %384, %383 : vector<18x18xf32>
    %c21 = arith.constant 21 : index
    %386 = memref.load %arg4[%c21] : memref<32xf32, #tpu.memory_space<smem>>
    %387 = vector.broadcast %386 : f32 to vector<18x18xf32>
    %388 = arith.mulf %387, %58 : vector<18x18xf32>
    %389 = arith.addf %385, %388 : vector<18x18xf32>
    %c22 = arith.constant 22 : index
    %390 = memref.load %arg4[%c22] : memref<32xf32, #tpu.memory_space<smem>>
    %391 = vector.broadcast %390 : f32 to vector<18x18xf32>
    %392 = arith.mulf %391, %89 : vector<18x18xf32>
    %393 = arith.addf %389, %392 : vector<18x18xf32>
    %c23 = arith.constant 23 : index
    %394 = memref.load %arg4[%c23] : memref<32xf32, #tpu.memory_space<smem>>
    %395 = vector.broadcast %394 : f32 to vector<18x18xf32>
    %396 = arith.mulf %395, %120 : vector<18x18xf32>
    %397 = arith.addf %393, %396 : vector<18x18xf32>
    %cst_243 = arith.constant 0.000000e+00 : f32
    %398 = vector.broadcast %cst_243 : f32 to vector<18x18xf32>
    %399 = arith.subf %398, %397 : vector<18x18xf32>
    %400 = math.exp %399 : vector<18x18xf32>
    %cst_244 = arith.constant 1.000000e+00 : f32
    %401 = vector.broadcast %cst_244 : f32 to vector<18x18xf32>
    %402 = arith.addf %401, %400 : vector<18x18xf32>
    %cst_245 = arith.constant 1.000000e+00 : f32
    %403 = vector.broadcast %cst_245 : f32 to vector<18x18xf32>
    %404 = arith.divf %403, %402 : vector<18x18xf32>
    %405 = arith.mulf %397, %404 : vector<18x18xf32>
    %c5_246 = arith.constant 5 : index
    %406 = memref.load %arg5[%c5_246] : memref<8xf32, #tpu.memory_space<smem>>
    %407 = vector.broadcast %406 : f32 to vector<20x20xf32>
    %c0_247 = arith.constant 0 : index
    %c5_248 = arith.constant 5 : index
    %c0_249 = arith.constant 0 : index
    %c0_250 = arith.constant 0 : index
    %408 = vector.load %arg15[%c0_247, %c5_248, %c0_249, %c0_250] : memref<1x8x20x20xf32, #tpu.memory_space<vmem>>, vector<1x1x20x20xf32>
    %409 = vector.shape_cast %408 : vector<1x1x20x20xf32> to vector<20x20xf32>
    %410 = vector.shape_cast %407 : vector<20x20xf32> to vector<1x1x20x20xf32>
    tpu.vector_store %arg15[%c0_247, %c5_248, %c0_249, %c0_250], %410 {strides = array<i32>} : memref<1x8x20x20xf32, #tpu.memory_space<vmem>>, vector<1x1x20x20xf32>,
    %c5_251 = arith.constant 5 : index
    %411 = memref.load %arg6[%c5_251] : memref<8xf32, #tpu.memory_space<smem>>
    %412 = vector.broadcast %411 : f32 to vector<20x20xf32>
    %c0_252 = arith.constant 0 : index
    %c5_253 = arith.constant 5 : index
    %c0_254 = arith.constant 0 : index
    %c0_255 = arith.constant 0 : index
    %413 = vector.load %arg16[%c0_252, %c5_253, %c0_254, %c0_255] : memref<1x8x20x20xf32, #tpu.memory_space<vmem>>, vector<1x1x20x20xf32>
    %414 = vector.shape_cast %413 : vector<1x1x20x20xf32> to vector<20x20xf32>
    %415 = vector.shape_cast %412 : vector<20x20xf32> to vector<1x1x20x20xf32>
    tpu.vector_store %arg16[%c0_252, %c5_253, %c0_254, %c0_255], %415 {strides = array<i32>} : memref<1x8x20x20xf32, #tpu.memory_space<vmem>>, vector<1x1x20x20xf32>,
    %c5_256 = arith.constant 5 : index
    %416 = memref.load %arg7[%c5_256] : memref<8xf32, #tpu.memory_space<smem>>
    %417 = vector.broadcast %416 : f32 to vector<20x20xf32>
    %c0_257 = arith.constant 0 : index
    %c5_258 = arith.constant 5 : index
    %c0_259 = arith.constant 0 : index
    %c0_260 = arith.constant 0 : index
    %418 = vector.load %arg17[%c0_257, %c5_258, %c0_259, %c0_260] : memref<1x8x20x20xf32, #tpu.memory_space<vmem>>, vector<1x1x20x20xf32>
    %419 = vector.shape_cast %418 : vector<1x1x20x20xf32> to vector<20x20xf32>
    %420 = vector.shape_cast %417 : vector<20x20xf32> to vector<1x1x20x20xf32>
    tpu.vector_store %arg17[%c0_257, %c5_258, %c0_259, %c0_260], %420 {strides = array<i32>} : memref<1x8x20x20xf32, #tpu.memory_space<vmem>>, vector<1x1x20x20xf32>,
    %c0_261 = arith.constant 0 : index
    %c5_262 = arith.constant 5 : index
    %c1_263 = arith.constant 1 : index
    %c1_264 = arith.constant 1 : index
    %421 = vector.load %arg15[%c0_261, %c5_262, %c1_263, %c1_264] : memref<1x8x20x20xf32, #tpu.memory_space<vmem>>, vector<1x1x18x18xf32>
    %422 = vector.shape_cast %421 : vector<1x1x18x18xf32> to vector<18x18xf32>
    %423 = vector.shape_cast %397 : vector<18x18xf32> to vector<1x1x18x18xf32>
    tpu.vector_store %arg15[%c0_261, %c5_262, %c1_263, %c1_264], %423 {strides = array<i32>} : memref<1x8x20x20xf32, #tpu.memory_space<vmem>>, vector<1x1x18x18xf32>,
    %c0_265 = arith.constant 0 : index
    %c5_266 = arith.constant 5 : index
    %c1_267 = arith.constant 1 : index
    %c1_268 = arith.constant 1 : index
    %424 = vector.load %arg16[%c0_265, %c5_266, %c1_267, %c1_268] : memref<1x8x20x20xf32, #tpu.memory_space<vmem>>, vector<1x1x18x18xf32>
    %425 = vector.shape_cast %424 : vector<1x1x18x18xf32> to vector<18x18xf32>
    %426 = vector.shape_cast %404 : vector<18x18xf32> to vector<1x1x18x18xf32>
    tpu.vector_store %arg16[%c0_265, %c5_266, %c1_267, %c1_268], %426 {strides = array<i32>} : memref<1x8x20x20xf32, #tpu.memory_space<vmem>>, vector<1x1x18x18xf32>,
    %c0_269 = arith.constant 0 : index
    %c5_270 = arith.constant 5 : index
    %c1_271 = arith.constant 1 : index
    %c1_272 = arith.constant 1 : index
    %427 = vector.load %arg17[%c0_269, %c5_270, %c1_271, %c1_272] : memref<1x8x20x20xf32, #tpu.memory_space<vmem>>, vector<1x1x18x18xf32>
    %428 = vector.shape_cast %427 : vector<1x1x18x18xf32> to vector<18x18xf32>
    %429 = vector.shape_cast %405 : vector<18x18xf32> to vector<1x1x18x18xf32>
    tpu.vector_store %arg17[%c0_269, %c5_270, %c1_271, %c1_272], %429 {strides = array<i32>} : memref<1x8x20x20xf32, #tpu.memory_space<vmem>>, vector<1x1x18x18xf32>,
    %c6_273 = arith.constant 6 : index
    %430 = memref.load %arg5[%c6_273] : memref<8xf32, #tpu.memory_space<smem>>
    %c24 = arith.constant 24 : index
    %431 = memref.load %arg4[%c24] : memref<32xf32, #tpu.memory_space<smem>>
    %432 = vector.broadcast %431 : f32 to vector<18x18xf32>
    %433 = arith.mulf %432, %27 : vector<18x18xf32>
    %434 = vector.broadcast %430 : f32 to vector<18x18xf32>
    %435 = arith.addf %434, %433 : vector<18x18xf32>
    %c25 = arith.constant 25 : index
    %436 = memref.load %arg4[%c25] : memref<32xf32, #tpu.memory_space<smem>>
    %437 = vector.broadcast %436 : f32 to vector<18x18xf32>
    %438 = arith.mulf %437, %58 : vector<18x18xf32>
    %439 = arith.addf %435, %438 : vector<18x18xf32>
    %c26 = arith.constant 26 : index
    %440 = memref.load %arg4[%c26] : memref<32xf32, #tpu.memory_space<smem>>
    %441 = vector.broadcast %440 : f32 to vector<18x18xf32>
    %442 = arith.mulf %441, %89 : vector<18x18xf32>
    %443 = arith.addf %439, %442 : vector<18x18xf32>
    %c27 = arith.constant 27 : index
    %444 = memref.load %arg4[%c27] : memref<32xf32, #tpu.memory_space<smem>>
    %445 = vector.broadcast %444 : f32 to vector<18x18xf32>
    %446 = arith.mulf %445, %120 : vector<18x18xf32>
    %447 = arith.addf %443, %446 : vector<18x18xf32>
    %cst_274 = arith.constant 0.000000e+00 : f32
    %448 = vector.broadcast %cst_274 : f32 to vector<18x18xf32>
    %449 = arith.subf %448, %447 : vector<18x18xf32>
    %450 = math.exp %449 : vector<18x18xf32>
    %cst_275 = arith.constant 1.000000e+00 : f32
    %451 = vector.broadcast %cst_275 : f32 to vector<18x18xf32>
    %452 = arith.addf %451, %450 : vector<18x18xf32>
    %cst_276 = arith.constant 1.000000e+00 : f32
    %453 = vector.broadcast %cst_276 : f32 to vector<18x18xf32>
    %454 = arith.divf %453, %452 : vector<18x18xf32>
    %455 = arith.mulf %447, %454 : vector<18x18xf32>
    %c6_277 = arith.constant 6 : index
    %456 = memref.load %arg5[%c6_277] : memref<8xf32, #tpu.memory_space<smem>>
    %457 = vector.broadcast %456 : f32 to vector<20x20xf32>
    %c0_278 = arith.constant 0 : index
    %c6_279 = arith.constant 6 : index
    %c0_280 = arith.constant 0 : index
    %c0_281 = arith.constant 0 : index
    %458 = vector.load %arg15[%c0_278, %c6_279, %c0_280, %c0_281] : memref<1x8x20x20xf32, #tpu.memory_space<vmem>>, vector<1x1x20x20xf32>
    %459 = vector.shape_cast %458 : vector<1x1x20x20xf32> to vector<20x20xf32>
    %460 = vector.shape_cast %457 : vector<20x20xf32> to vector<1x1x20x20xf32>
    tpu.vector_store %arg15[%c0_278, %c6_279, %c0_280, %c0_281], %460 {strides = array<i32>} : memref<1x8x20x20xf32, #tpu.memory_space<vmem>>, vector<1x1x20x20xf32>,
    %c6_282 = arith.constant 6 : index
    %461 = memref.load %arg6[%c6_282] : memref<8xf32, #tpu.memory_space<smem>>
    %462 = vector.broadcast %461 : f32 to vector<20x20xf32>
    %c0_283 = arith.constant 0 : index
    %c6_284 = arith.constant 6 : index
    %c0_285 = arith.constant 0 : index
    %c0_286 = arith.constant 0 : index
    %463 = vector.load %arg16[%c0_283, %c6_284, %c0_285, %c0_286] : memref<1x8x20x20xf32, #tpu.memory_space<vmem>>, vector<1x1x20x20xf32>
    %464 = vector.shape_cast %463 : vector<1x1x20x20xf32> to vector<20x20xf32>
    %465 = vector.shape_cast %462 : vector<20x20xf32> to vector<1x1x20x20xf32>
    tpu.vector_store %arg16[%c0_283, %c6_284, %c0_285, %c0_286], %465 {strides = array<i32>} : memref<1x8x20x20xf32, #tpu.memory_space<vmem>>, vector<1x1x20x20xf32>,
    %c6_287 = arith.constant 6 : index
    %466 = memref.load %arg7[%c6_287] : memref<8xf32, #tpu.memory_space<smem>>
    %467 = vector.broadcast %466 : f32 to vector<20x20xf32>
    %c0_288 = arith.constant 0 : index
    %c6_289 = arith.constant 6 : index
    %c0_290 = arith.constant 0 : index
    %c0_291 = arith.constant 0 : index
    %468 = vector.load %arg17[%c0_288, %c6_289, %c0_290, %c0_291] : memref<1x8x20x20xf32, #tpu.memory_space<vmem>>, vector<1x1x20x20xf32>
    %469 = vector.shape_cast %468 : vector<1x1x20x20xf32> to vector<20x20xf32>
    %470 = vector.shape_cast %467 : vector<20x20xf32> to vector<1x1x20x20xf32>
    tpu.vector_store %arg17[%c0_288, %c6_289, %c0_290, %c0_291], %470 {strides = array<i32>} : memref<1x8x20x20xf32, #tpu.memory_space<vmem>>, vector<1x1x20x20xf32>,
    %c0_292 = arith.constant 0 : index
    %c6_293 = arith.constant 6 : index
    %c1_294 = arith.constant 1 : index
    %c1_295 = arith.constant 1 : index
    %471 = vector.load %arg15[%c0_292, %c6_293, %c1_294, %c1_295] : memref<1x8x20x20xf32, #tpu.memory_space<vmem>>, vector<1x1x18x18xf32>
    %472 = vector.shape_cast %471 : vector<1x1x18x18xf32> to vector<18x18xf32>
    %473 = vector.shape_cast %447 : vector<18x18xf32> to vector<1x1x18x18xf32>
    tpu.vector_store %arg15[%c0_292, %c6_293, %c1_294, %c1_295], %473 {strides = array<i32>} : memref<1x8x20x20xf32, #tpu.memory_space<vmem>>, vector<1x1x18x18xf32>,
    %c0_296 = arith.constant 0 : index
    %c6_297 = arith.constant 6 : index
    %c1_298 = arith.constant 1 : index
    %c1_299 = arith.constant 1 : index
    %474 = vector.load %arg16[%c0_296, %c6_297, %c1_298, %c1_299] : memref<1x8x20x20xf32, #tpu.memory_space<vmem>>, vector<1x1x18x18xf32>
    %475 = vector.shape_cast %474 : vector<1x1x18x18xf32> to vector<18x18xf32>
    %476 = vector.shape_cast %454 : vector<18x18xf32> to vector<1x1x18x18xf32>
    tpu.vector_store %arg16[%c0_296, %c6_297, %c1_298, %c1_299], %476 {strides = array<i32>} : memref<1x8x20x20xf32, #tpu.memory_space<vmem>>, vector<1x1x18x18xf32>,
    %c0_300 = arith.constant 0 : index
    %c6_301 = arith.constant 6 : index
    %c1_302 = arith.constant 1 : index
    %c1_303 = arith.constant 1 : index
    %477 = vector.load %arg17[%c0_300, %c6_301, %c1_302, %c1_303] : memref<1x8x20x20xf32, #tpu.memory_space<vmem>>, vector<1x1x18x18xf32>
    %478 = vector.shape_cast %477 : vector<1x1x18x18xf32> to vector<18x18xf32>
    %479 = vector.shape_cast %455 : vector<18x18xf32> to vector<1x1x18x18xf32>
    tpu.vector_store %arg17[%c0_300, %c6_301, %c1_302, %c1_303], %479 {strides = array<i32>} : memref<1x8x20x20xf32, #tpu.memory_space<vmem>>, vector<1x1x18x18xf32>,
    %c7_304 = arith.constant 7 : index
    %480 = memref.load %arg5[%c7_304] : memref<8xf32, #tpu.memory_space<smem>>
    %c28 = arith.constant 28 : index
    %481 = memref.load %arg4[%c28] : memref<32xf32, #tpu.memory_space<smem>>
    %482 = vector.broadcast %481 : f32 to vector<18x18xf32>
    %483 = arith.mulf %482, %27 : vector<18x18xf32>
    %484 = vector.broadcast %480 : f32 to vector<18x18xf32>
    %485 = arith.addf %484, %483 : vector<18x18xf32>
    %c29 = arith.constant 29 : index
    %486 = memref.load %arg4[%c29] : memref<32xf32, #tpu.memory_space<smem>>
    %487 = vector.broadcast %486 : f32 to vector<18x18xf32>
    %488 = arith.mulf %487, %58 : vector<18x18xf32>
    %489 = arith.addf %485, %488 : vector<18x18xf32>
    %c30 = arith.constant 30 : index
    %490 = memref.load %arg4[%c30] : memref<32xf32, #tpu.memory_space<smem>>
    %491 = vector.broadcast %490 : f32 to vector<18x18xf32>
    %492 = arith.mulf %491, %89 : vector<18x18xf32>
    %493 = arith.addf %489, %492 : vector<18x18xf32>
    %c31 = arith.constant 31 : index
    %494 = memref.load %arg4[%c31] : memref<32xf32, #tpu.memory_space<smem>>
    %495 = vector.broadcast %494 : f32 to vector<18x18xf32>
    %496 = arith.mulf %495, %120 : vector<18x18xf32>
    %497 = arith.addf %493, %496 : vector<18x18xf32>
    %cst_305 = arith.constant 0.000000e+00 : f32
    %498 = vector.broadcast %cst_305 : f32 to vector<18x18xf32>
    %499 = arith.subf %498, %497 : vector<18x18xf32>
    %500 = math.exp %499 : vector<18x18xf32>
    %cst_306 = arith.constant 1.000000e+00 : f32
    %501 = vector.broadcast %cst_306 : f32 to vector<18x18xf32>
    %502 = arith.addf %501, %500 : vector<18x18xf32>
    %cst_307 = arith.constant 1.000000e+00 : f32
    %503 = vector.broadcast %cst_307 : f32 to vector<18x18xf32>
    %504 = arith.divf %503, %502 : vector<18x18xf32>
    %505 = arith.mulf %497, %504 : vector<18x18xf32>
    %c7_308 = arith.constant 7 : index
    %506 = memref.load %arg5[%c7_308] : memref<8xf32, #tpu.memory_space<smem>>
    %507 = vector.broadcast %506 : f32 to vector<20x20xf32>
    %c0_309 = arith.constant 0 : index
    %c7_310 = arith.constant 7 : index
    %c0_311 = arith.constant 0 : index
    %c0_312 = arith.constant 0 : index
    %508 = vector.load %arg15[%c0_309, %c7_310, %c0_311, %c0_312] : memref<1x8x20x20xf32, #tpu.memory_space<vmem>>, vector<1x1x20x20xf32>
    %509 = vector.shape_cast %508 : vector<1x1x20x20xf32> to vector<20x20xf32>
    %510 = vector.shape_cast %507 : vector<20x20xf32> to vector<1x1x20x20xf32>
    tpu.vector_store %arg15[%c0_309, %c7_310, %c0_311, %c0_312], %510 {strides = array<i32>} : memref<1x8x20x20xf32, #tpu.memory_space<vmem>>, vector<1x1x20x20xf32>,
    %c7_313 = arith.constant 7 : index
    %511 = memref.load %arg6[%c7_313] : memref<8xf32, #tpu.memory_space<smem>>
    %512 = vector.broadcast %511 : f32 to vector<20x20xf32>
    %c0_314 = arith.constant 0 : index
    %c7_315 = arith.constant 7 : index
    %c0_316 = arith.constant 0 : index
    %c0_317 = arith.constant 0 : index
    %513 = vector.load %arg16[%c0_314, %c7_315, %c0_316, %c0_317] : memref<1x8x20x20xf32, #tpu.memory_space<vmem>>, vector<1x1x20x20xf32>
    %514 = vector.shape_cast %513 : vector<1x1x20x20xf32> to vector<20x20xf32>
    %515 = vector.shape_cast %512 : vector<20x20xf32> to vector<1x1x20x20xf32>
    tpu.vector_store %arg16[%c0_314, %c7_315, %c0_316, %c0_317], %515 {strides = array<i32>} : memref<1x8x20x20xf32, #tpu.memory_space<vmem>>, vector<1x1x20x20xf32>,
    %c7_318 = arith.constant 7 : index
    %516 = memref.load %arg7[%c7_318] : memref<8xf32, #tpu.memory_space<smem>>
    %517 = vector.broadcast %516 : f32 to vector<20x20xf32>
    %c0_319 = arith.constant 0 : index
    %c7_320 = arith.constant 7 : index
    %c0_321 = arith.constant 0 : index
    %c0_322 = arith.constant 0 : index
    %518 = vector.load %arg17[%c0_319, %c7_320, %c0_321, %c0_322] : memref<1x8x20x20xf32, #tpu.memory_space<vmem>>, vector<1x1x20x20xf32>
    %519 = vector.shape_cast %518 : vector<1x1x20x20xf32> to vector<20x20xf32>
    %520 = vector.shape_cast %517 : vector<20x20xf32> to vector<1x1x20x20xf32>
    tpu.vector_store %arg17[%c0_319, %c7_320, %c0_321, %c0_322], %520 {strides = array<i32>} : memref<1x8x20x20xf32, #tpu.memory_space<vmem>>, vector<1x1x20x20xf32>,
    %c0_323 = arith.constant 0 : index
    %c7_324 = arith.constant 7 : index
    %c1_325 = arith.constant 1 : index
    %c1_326 = arith.constant 1 : index
    %521 = vector.load %arg15[%c0_323, %c7_324, %c1_325, %c1_326] : memref<1x8x20x20xf32, #tpu.memory_space<vmem>>, vector<1x1x18x18xf32>
    %522 = vector.shape_cast %521 : vector<1x1x18x18xf32> to vector<18x18xf32>
    %523 = vector.shape_cast %497 : vector<18x18xf32> to vector<1x1x18x18xf32>
    tpu.vector_store %arg15[%c0_323, %c7_324, %c1_325, %c1_326], %523 {strides = array<i32>} : memref<1x8x20x20xf32, #tpu.memory_space<vmem>>, vector<1x1x18x18xf32>,
    %c0_327 = arith.constant 0 : index
    %c7_328 = arith.constant 7 : index
    %c1_329 = arith.constant 1 : index
    %c1_330 = arith.constant 1 : index
    %524 = vector.load %arg16[%c0_327, %c7_328, %c1_329, %c1_330] : memref<1x8x20x20xf32, #tpu.memory_space<vmem>>, vector<1x1x18x18xf32>
    %525 = vector.shape_cast %524 : vector<1x1x18x18xf32> to vector<18x18xf32>
    %526 = vector.shape_cast %504 : vector<18x18xf32> to vector<1x1x18x18xf32>
    tpu.vector_store %arg16[%c0_327, %c7_328, %c1_329, %c1_330], %526 {strides = array<i32>} : memref<1x8x20x20xf32, #tpu.memory_space<vmem>>, vector<1x1x18x18xf32>,
    %c0_331 = arith.constant 0 : index
    %c7_332 = arith.constant 7 : index
    %c1_333 = arith.constant 1 : index
    %c1_334 = arith.constant 1 : index
    %527 = vector.load %arg17[%c0_331, %c7_332, %c1_333, %c1_334] : memref<1x8x20x20xf32, #tpu.memory_space<vmem>>, vector<1x1x18x18xf32>
    %528 = vector.shape_cast %527 : vector<1x1x18x18xf32> to vector<18x18xf32>
    %529 = vector.shape_cast %505 : vector<18x18xf32> to vector<1x1x18x18xf32>
    tpu.vector_store %arg17[%c0_331, %c7_332, %c1_333, %c1_334], %529 {strides = array<i32>} : memref<1x8x20x20xf32, #tpu.memory_space<vmem>>, vector<1x1x18x18xf32>,
    %c0_335 = arith.constant 0 : index
    %c0_336 = arith.constant 0 : index
    %c0_337 = arith.constant 0 : index
    %c0_338 = arith.constant 0 : index
    %530 = vector.load %arg17[%c0_335, %c0_336, %c0_337, %c0_338] : memref<1x8x20x20xf32, #tpu.memory_space<vmem>>, vector<1x1x20x20xf32>
    %531 = vector.shape_cast %530 : vector<1x1x20x20xf32> to vector<20x20xf32>
    %c0_339 = arith.constant 0 : index
    %c1_340 = arith.constant 1 : index
    %c0_341 = arith.constant 0 : index
    %c0_342 = arith.constant 0 : index
    %532 = vector.load %arg17[%c0_339, %c1_340, %c0_341, %c0_342] : memref<1x8x20x20xf32, #tpu.memory_space<vmem>>, vector<1x1x20x20xf32>
    %533 = vector.shape_cast %532 : vector<1x1x20x20xf32> to vector<20x20xf32>
    %c0_343 = arith.constant 0 : index
    %c2_344 = arith.constant 2 : index
    %c0_345 = arith.constant 0 : index
    %c0_346 = arith.constant 0 : index
    %534 = vector.load %arg17[%c0_343, %c2_344, %c0_345, %c0_346] : memref<1x8x20x20xf32, #tpu.memory_space<vmem>>, vector<1x1x20x20xf32>
    %535 = vector.shape_cast %534 : vector<1x1x20x20xf32> to vector<20x20xf32>
    %c0_347 = arith.constant 0 : index
    %c3_348 = arith.constant 3 : index
    %c0_349 = arith.constant 0 : index
    %c0_350 = arith.constant 0 : index
    %536 = vector.load %arg17[%c0_347, %c3_348, %c0_349, %c0_350] : memref<1x8x20x20xf32, #tpu.memory_space<vmem>>, vector<1x1x20x20xf32>
    %537 = vector.shape_cast %536 : vector<1x1x20x20xf32> to vector<20x20xf32>
    %c0_351 = arith.constant 0 : index
    %c4_352 = arith.constant 4 : index
    %c0_353 = arith.constant 0 : index
    %c0_354 = arith.constant 0 : index
    %538 = vector.load %arg17[%c0_351, %c4_352, %c0_353, %c0_354] : memref<1x8x20x20xf32, #tpu.memory_space<vmem>>, vector<1x1x20x20xf32>
    %539 = vector.shape_cast %538 : vector<1x1x20x20xf32> to vector<20x20xf32>
    %c0_355 = arith.constant 0 : index
    %c5_356 = arith.constant 5 : index
    %c0_357 = arith.constant 0 : index
    %c0_358 = arith.constant 0 : index
    %540 = vector.load %arg17[%c0_355, %c5_356, %c0_357, %c0_358] : memref<1x8x20x20xf32, #tpu.memory_space<vmem>>, vector<1x1x20x20xf32>
    %541 = vector.shape_cast %540 : vector<1x1x20x20xf32> to vector<20x20xf32>
    %c0_359 = arith.constant 0 : index
    %c6_360 = arith.constant 6 : index
    %c0_361 = arith.constant 0 : index
    %c0_362 = arith.constant 0 : index
    %542 = vector.load %arg17[%c0_359, %c6_360, %c0_361, %c0_362] : memref<1x8x20x20xf32, #tpu.memory_space<vmem>>, vector<1x1x20x20xf32>
    %543 = vector.shape_cast %542 : vector<1x1x20x20xf32> to vector<20x20xf32>
    %c0_363 = arith.constant 0 : index
    %c7_364 = arith.constant 7 : index
    %c0_365 = arith.constant 0 : index
    %c0_366 = arith.constant 0 : index
    %544 = vector.load %arg17[%c0_363, %c7_364, %c0_365, %c0_366] : memref<1x8x20x20xf32, #tpu.memory_space<vmem>>, vector<1x1x20x20xf32>
    %545 = vector.shape_cast %544 : vector<1x1x20x20xf32> to vector<20x20xf32>
    %c0_367 = arith.constant 0 : index
    %546 = memref.load %arg9[%c0_367] : memref<1xf32, #tpu.memory_space<smem>>
    %c0_368 = arith.constant 0 : index
    %547 = memref.load %arg8[%c0_368] : memref<8xf32, #tpu.memory_space<smem>>
    %548 = vector.broadcast %547 : f32 to vector<20x20xf32>
    %549 = arith.mulf %548, %531 : vector<20x20xf32>
    %550 = vector.broadcast %546 : f32 to vector<20x20xf32>
    %551 = arith.addf %550, %549 : vector<20x20xf32>
    %c1_369 = arith.constant 1 : index
    %552 = memref.load %arg8[%c1_369] : memref<8xf32, #tpu.memory_space<smem>>
    %553 = vector.broadcast %552 : f32 to vector<20x20xf32>
    %554 = arith.mulf %553, %533 : vector<20x20xf32>
    %555 = arith.addf %551, %554 : vector<20x20xf32>
    %c2_370 = arith.constant 2 : index
    %556 = memref.load %arg8[%c2_370] : memref<8xf32, #tpu.memory_space<smem>>
    %557 = vector.broadcast %556 : f32 to vector<20x20xf32>
    %558 = arith.mulf %557, %535 : vector<20x20xf32>
    %559 = arith.addf %555, %558 : vector<20x20xf32>
    %c3_371 = arith.constant 3 : index
    %560 = memref.load %arg8[%c3_371] : memref<8xf32, #tpu.memory_space<smem>>
    %561 = vector.broadcast %560 : f32 to vector<20x20xf32>
    %562 = arith.mulf %561, %537 : vector<20x20xf32>
    %563 = arith.addf %559, %562 : vector<20x20xf32>
    %c4_372 = arith.constant 4 : index
    %564 = memref.load %arg8[%c4_372] : memref<8xf32, #tpu.memory_space<smem>>
    %565 = vector.broadcast %564 : f32 to vector<20x20xf32>
    %566 = arith.mulf %565, %539 : vector<20x20xf32>
    %567 = arith.addf %563, %566 : vector<20x20xf32>
    %c5_373 = arith.constant 5 : index
    %568 = memref.load %arg8[%c5_373] : memref<8xf32, #tpu.memory_space<smem>>
    %569 = vector.broadcast %568 : f32 to vector<20x20xf32>
    %570 = arith.mulf %569, %541 : vector<20x20xf32>
    %571 = arith.addf %567, %570 : vector<20x20xf32>
    %c6_374 = arith.constant 6 : index
    %572 = memref.load %arg8[%c6_374] : memref<8xf32, #tpu.memory_space<smem>>
    %573 = vector.broadcast %572 : f32 to vector<20x20xf32>
    %574 = arith.mulf %573, %543 : vector<20x20xf32>
    %575 = arith.addf %571, %574 : vector<20x20xf32>
    %c7_375 = arith.constant 7 : index
    %576 = memref.load %arg8[%c7_375] : memref<8xf32, #tpu.memory_space<smem>>
    %577 = vector.broadcast %576 : f32 to vector<20x20xf32>
    %578 = arith.mulf %577, %545 : vector<20x20xf32>
    %579 = arith.addf %575, %578 : vector<20x20xf32>
    %cst_376 = arith.constant 0.000000e+00 : f32
    %580 = vector.broadcast %cst_376 : f32 to vector<20x20xf32>
    %581 = arith.subf %580, %579 : vector<20x20xf32>
    %582 = math.exp %581 : vector<20x20xf32>
    %cst_377 = arith.constant 1.000000e+00 : f32
    %583 = vector.broadcast %cst_377 : f32 to vector<20x20xf32>
    %584 = arith.addf %583, %582 : vector<20x20xf32>
    %cst_378 = arith.constant 1.000000e+00 : f32
    %585 = vector.broadcast %cst_378 : f32 to vector<20x20xf32>
    %586 = arith.divf %585, %584 : vector<20x20xf32>
    %587 = arith.mulf %579, %586 : vector<20x20xf32>
    %c0_379 = arith.constant 0 : index
    %588 = memref.load %arg10[%c0_379] : memref<1xf32, #tpu.memory_space<smem>>
    %589 = vector.broadcast %588 : f32 to vector<22x22xf32>
    %c0_380 = arith.constant 0 : index
    %c0_381 = arith.constant 0 : index
    %c0_382 = arith.constant 0 : index
    %c0_383 = arith.constant 0 : index
    %590 = vector.load %arg18[%c0_380, %c0_381, %c0_382, %c0_383] : memref<1x1x22x22xf32, #tpu.memory_space<vmem>>, vector<1x1x22x22xf32>
    %591 = vector.shape_cast %590 : vector<1x1x22x22xf32> to vector<22x22xf32>
    %592 = vector.shape_cast %589 : vector<22x22xf32> to vector<1x1x22x22xf32>
    tpu.vector_store %arg18[%c0_380, %c0_381, %c0_382, %c0_383], %592 {strides = array<i32>} : memref<1x1x22x22xf32, #tpu.memory_space<vmem>>, vector<1x1x22x22xf32>,
    %c0_384 = arith.constant 0 : index
    %593 = memref.load %arg11[%c0_384] : memref<1xf32, #tpu.memory_space<smem>>
    %594 = vector.broadcast %593 : f32 to vector<22x22xf32>
    %c0_385 = arith.constant 0 : index
    %c0_386 = arith.constant 0 : index
    %c0_387 = arith.constant 0 : index
    %c0_388 = arith.constant 0 : index
    %595 = vector.load %arg19[%c0_385, %c0_386, %c0_387, %c0_388] : memref<1x1x22x22xf32, #tpu.memory_space<vmem>>, vector<1x1x22x22xf32>
    %596 = vector.shape_cast %595 : vector<1x1x22x22xf32> to vector<22x22xf32>
    %597 = vector.shape_cast %594 : vector<22x22xf32> to vector<1x1x22x22xf32>
    tpu.vector_store %arg19[%c0_385, %c0_386, %c0_387, %c0_388], %597 {strides = array<i32>} : memref<1x1x22x22xf32, #tpu.memory_space<vmem>>, vector<1x1x22x22xf32>,
    %c0_389 = arith.constant 0 : index
    %c0_390 = arith.constant 0 : index
    %c1_391 = arith.constant 1 : index
    %c1_392 = arith.constant 1 : index
    %598 = vector.load %arg18[%c0_389, %c0_390, %c1_391, %c1_392] : memref<1x1x22x22xf32, #tpu.memory_space<vmem>>, vector<1x1x20x20xf32>
    %599 = vector.shape_cast %598 : vector<1x1x20x20xf32> to vector<20x20xf32>
    %600 = vector.shape_cast %586 : vector<20x20xf32> to vector<1x1x20x20xf32>
    tpu.vector_store %arg18[%c0_389, %c0_390, %c1_391, %c1_392], %600 {strides = array<i32>} : memref<1x1x22x22xf32, #tpu.memory_space<vmem>>, vector<1x1x20x20xf32>,
    %c0_393 = arith.constant 0 : index
    %c0_394 = arith.constant 0 : index
    %c1_395 = arith.constant 1 : index
    %c1_396 = arith.constant 1 : index
    %601 = vector.load %arg19[%c0_393, %c0_394, %c1_395, %c1_396] : memref<1x1x22x22xf32, #tpu.memory_space<vmem>>, vector<1x1x20x20xf32>
    %602 = vector.shape_cast %601 : vector<1x1x20x20xf32> to vector<20x20xf32>
    %603 = vector.shape_cast %587 : vector<20x20xf32> to vector<1x1x20x20xf32>
    tpu.vector_store %arg19[%c0_393, %c0_394, %c1_395, %c1_396], %603 {strides = array<i32>} : memref<1x1x22x22xf32, #tpu.memory_space<vmem>>, vector<1x1x20x20xf32>,
    return
  }
  func.func @transform_0(%arg0: i32) -> (i32, i32, i32, i32) {
    %c0_i32 = arith.constant 0 : i32
    %c0_i32_0 = arith.constant 0 : i32
    %c0_i32_1 = arith.constant 0 : i32
    %c0_i32_2 = arith.constant 0 : i32
    return %arg0, %c0_i32, %c0_i32_0, %c0_i32_1 : i32, i32, i32, i32
  }
  func.func @transform_1(%arg0: i32) -> i32 {
    %c0_i32 = arith.constant 0 : i32
    %c0_i32_0 = arith.constant 0 : i32
    return %c0_i32 : i32
  }
  func.func @transform_2(%arg0: i32) -> i32 {
    %c0_i32 = arith.constant 0 : i32
    %c0_i32_0 = arith.constant 0 : i32
    return %c0_i32 : i32
  }
  func.func @transform_3(%arg0: i32) -> i32 {
    %c0_i32 = arith.constant 0 : i32
    %c0_i32_0 = arith.constant 0 : i32
    return %c0_i32 : i32
  }
  func.func @transform_4(%arg0: i32) -> i32 {
    %c0_i32 = arith.constant 0 : i32
    %c0_i32_0 = arith.constant 0 : i32
    return %c0_i32 : i32
  }
  func.func @transform_5(%arg0: i32) -> i32 {
    %c0_i32 = arith.constant 0 : i32
    %c0_i32_0 = arith.constant 0 : i32
    return %c0_i32 : i32
  }
  func.func @transform_6(%arg0: i32) -> i32 {
    %c0_i32 = arith.constant 0 : i32
    %c0_i32_0 = arith.constant 0 : i32
    return %c0_i32 : i32
  }
  func.func @transform_7(%arg0: i32) -> i32 {
    %c0_i32 = arith.constant 0 : i32
    %c0_i32_0 = arith.constant 0 : i32
    return %c0_i32 : i32
  }
  func.func @transform_8(%arg0: i32) -> i32 {
    %c0_i32 = arith.constant 0 : i32
    %c0_i32_0 = arith.constant 0 : i32
    return %c0_i32 : i32
  }
  func.func @transform_9(%arg0: i32) -> i32 {
    %c0_i32 = arith.constant 0 : i32
    %c0_i32_0 = arith.constant 0 : i32
    return %c0_i32 : i32
  }
  func.func @transform_10(%arg0: i32) -> i32 {
    %c0_i32 = arith.constant 0 : i32
    %c0_i32_0 = arith.constant 0 : i32
    return %c0_i32 : i32
  }
  func.func @transform_11(%arg0: i32) -> (i32, i32, i32, i32) {
    %c0_i32 = arith.constant 0 : i32
    %c0_i32_0 = arith.constant 0 : i32
    %c0_i32_1 = arith.constant 0 : i32
    %c0_i32_2 = arith.constant 0 : i32
    return %arg0, %c0_i32, %c0_i32_0, %c0_i32_1 : i32, i32, i32, i32
  }
  func.func @transform_12(%arg0: i32) -> (i32, i32, i32, i32) {
    %c0_i32 = arith.constant 0 : i32
    %c0_i32_0 = arith.constant 0 : i32
    %c0_i32_1 = arith.constant 0 : i32
    %c0_i32_2 = arith.constant 0 : i32
    return %arg0, %c0_i32, %c0_i32_0, %c0_i32_1 : i32, i32, i32, i32
  }
  func.func @transform_13(%arg0: i32) -> (i32, i32, i32, i32) {
    %c0_i32 = arith.constant 0 : i32
    %c0_i32_0 = arith.constant 0 : i32
    %c0_i32_1 = arith.constant 0 : i32
    %c0_i32_2 = arith.constant 0 : i32
    return %arg0, %c0_i32, %c0_i32_0, %c0_i32_1 : i32, i32, i32, i32
  }
  func.func @transform_14(%arg0: i32) -> (i32, i32, i32, i32) {
    %c0_i32 = arith.constant 0 : i32
    %c0_i32_0 = arith.constant 0 : i32
    %c0_i32_1 = arith.constant 0 : i32
    %c0_i32_2 = arith.constant 0 : i32
    return %arg0, %c0_i32, %c0_i32_0, %c0_i32_1 : i32, i32, i32, i32
  }
  func.func @transform_15(%arg0: i32) -> (i32, i32, i32, i32) {
    %c0_i32 = arith.constant 0 : i32
    %c0_i32_0 = arith.constant 0 : i32
    %c0_i32_1 = arith.constant 0 : i32
    %c0_i32_2 = arith.constant 0 : i32
    return %arg0, %c0_i32, %c0_i32_0, %c0_i32_1 : i32, i32, i32, i32
  }
  func.func @transform_16(%arg0: i32) -> (i32, i32, i32, i32) {
    %c0_i32 = arith.constant 0 : i32
    %c0_i32_0 = arith.constant 0 : i32
    %c0_i32_1 = arith.constant 0 : i32
    %c0_i32_2 = arith.constant 0 : i32
    return %arg0, %c0_i32, %c0_i32_0, %c0_i32_1 : i32, i32, i32, i32
  }
  func.func @transform_17(%arg0: i32) -> (i32, i32, i32, i32) {
    %c0_i32 = arith.constant 0 : i32
    %c0_i32_0 = arith.constant 0 : i32
    %c0_i32_1 = arith.constant 0 : i32
    %c0_i32_2 = arith.constant 0 : i32
    return %arg0, %c0_i32, %c0_i32_0, %c0_i32_1 : i32, i32, i32, i32
  }
  func.func @transform_18(%arg0: i32) -> (i32, i32, i32, i32) {
    %c0_i32 = arith.constant 0 : i32
    %c0_i32_0 = arith.constant 0 : i32
    %c0_i32_1 = arith.constant 0 : i32
    %c0_i32_2 = arith.constant 0 : i32
    return %arg0, %c0_i32, %c0_i32_0, %c0_i32_1 : i32, i32, i32, i32
  }
}

</mosaic_0001>

<bundles_post_ra>
// kernel: model_forward.1
= control target key start
LH: loop header
LB: loop body
LE: loop exit
PB: predicated region body
PF: predicated region fallthrough
CT: control target
= control target key end

     0   :  { %s3940_s0 = inlined_call_operand.vmem [shape: f32[1,3,18,18], index: 0, kind: input, shape index: {}]   ;;  %s3941_s1 = inlined_call_operand.vmem [shape: f32[12], index: 1, kind: input, shape index: {}]   ;;  %s3942_s2 = inlined_call_operand.vmem [shape: f32[4], index: 2, kind: input, shape index: {}]   ;;  %s3943_s3 = inlined_call_operand.vmem [shape: f32[32], index: 3, kind: input, shape index: {}]   ;;  %s3944_s4 = inlined_call_operand.vmem [shape: f32[8], index: 4, kind: input, shape index: {}]   ;;  %s3945_s5 = inlined_call_operand.vmem [shape: f32[8], index: 5, kind: input, shape index: {}]   ;;  %s3946_s6 = inlined_call_operand.vmem [shape: f32[8], index: 6, kind: input, shape index: {}]   ;;  %s3947_s7 = inlined_call_operand.vmem [shape: f32[8], index: 7, kind: input, shape index: {}]   ;;  %s3948_s8 = inlined_call_operand.<no memory space> [shape: f32[1], index: 8, kind: input, shape index: {}]   ;;  %s3949_s9 = inlined_call_operand.<no memory space> [shape: f32[1], index: 9, kind: input, shape index: {}]   ;;  %s3950_s10 = inlined_call_operand.<no memory space> [shape: f32[1], index: 10, kind: input, shape index: {}]   ;;  %s3951_s11 = inlined_call_operand.vmem [shape: f32[1,4,18,18], index: 11, kind: output, shape index: {0}]   ;;  %s3952_s12 = inlined_call_operand.vmem [shape: f32[1,4,18,18], index: 12, kind: output, shape index: {1}]   ;;  %s3953_s13 = inlined_call_operand.vmem [shape: f32[1,4,18,18], index: 13, kind: output, shape index: {2}]   ;;  %s3954_s14 = inlined_call_operand.vmem [shape: f32[1,8,20,20], index: 14, kind: output, shape index: {3}]   ;;  %s3955_s15 = inlined_call_operand.vmem [shape: f32[1,8,20,20], index: 15, kind: output, shape index: {4}]   ;;  %s3956_s16 = inlined_call_operand.vmem [shape: f32[1,8,20,20], index: 16, kind: output, shape index: {5}]   ;;  %s3957_s17 = inlined_call_operand.vmem [shape: f32[1,1,22,22], index: 17, kind: output, shape index: {6}]   ;;  %s3958_s18 = inlined_call_operand.vmem [shape: f32[1,1,22,22], index: 18, kind: output, shape index: {7}]  }
   0x1   :  { %3968 = sst [smem:[#allocation28_spill]] %s3940_s0 }
   0x2   :  { %3969 = sst [smem:[#allocation29_spill]] %s3941_s1 }
   0x3   :  { %3970 = sst [smem:[#allocation30_spill]] %s3942_s2 }
   0x4   :  { %27 = vsyncpa [#allocation6], 0 }
   0x5   :  { %28 = vsyncpa [#allocation8], 0 }
   0x6   :  { %29 = vsyncpa [#allocation11], 0  ;;  %s3971_s29 = sld [smem:[#allocation30_spill]] }
   0xc   :  { %s49_s30 = sshll.u32 %s3971_s29, 4  ;;  %s50_s30 = int_to_ptr.vmem [resolvable:$true] %s49_s30 }
   0xd   :  { %30 = vsyncpa [#allocation14], 0  ;;  %s69_s1 = sshll.u32 %s3944_s4, 4  ;;  %s1914_s20 = scalar_lea.vmem %s50_s30, 16  ;;  %s70_s1 = int_to_ptr.vmem [resolvable:$true] %s69_s1 }
   0xe   :  { %p1915_p0 = scmp.ne.s32.totalorder %s50_s30, %s1914_s20  ;;  %p1919_p1 = scmp.lt.s32.totalorder %s50_s30, %s50_s30 }
   0xf   :  { %p1920_p2 = scmp.lt.s32.totalorder %s1914_s20, %s1914_s20 }
  0x11   :  { %p1921_p3 = por %p1920_p2, %p1919_p1 }
  0x13   :  { %p1922_p4 = pnand %p1921_p3, %p1915_p0 }
  0x15   :  { %1925 = shalt.err (!%p1922_p4)
}
  0x16   :  { %s2006_s21 = smov [#allocation7]   ;;  %s1926_s22 = scalar_lea.vmem %s70_s1, 16 }
  0x17   :  { %52 = dma.vmem_to_smem %s50_s30, 16, %s2006_s21, [#allocation8]  }
  0x18   :  { %p1927_p5 = scmp.ne.s32.totalorder %s70_s1, %s1926_s22  ;;  %p1931_p6 = scmp.lt.s32.totalorder %s70_s1, %s70_s1 }
  0x19   :  { %p1932_p7 = scmp.lt.s32.totalorder %s1926_s22, %s1926_s22 }
  0x1b   :  { %p1933_p8 = por %p1932_p7, %p1931_p6 }
  0x1d   :  { %p1934_p9 = pnand %p1933_p8, %p1927_p5 }
  0x1f   :  { %1937 = shalt.err (!%p1934_p9)
}
  0x20   :  { %s2007_s2 = smov [#allocation10]   ;;  %s89_s24 = sshll.u32 %s3946_s6, 4  ;;  %s90_s24 = int_to_ptr.vmem [resolvable:$true] %s89_s24 }
  0x21   :  { %72 = dma.vmem_to_smem %s70_s1, 16, %s2007_s2, [#allocation11]  }
  0x22   :  { %s3972_s27 = sld [smem:[#allocation29_spill]]  ;;  %s1938_s29 = scalar_lea.vmem %s90_s24, 16 }
  0x23   :  { %p1939_p10 = scmp.ne.s32.totalorder %s90_s24, %s1938_s29  ;;  %p1943_p11 = scmp.lt.s32.totalorder %s90_s24, %s90_s24 }
  0x24   :  { %p1944_p12 = scmp.lt.s32.totalorder %s1938_s29, %s1938_s29 }
  0x26   :  { %p1945_p13 = por %p1944_p12, %p1943_p11 }
  0x28   :  { %s39_s28 = sshll.u32 %s3972_s27, 4  ;;  %p1946_p0 = pnand %p1945_p13, %p1939_p10  ;;  %s40_s28 = int_to_ptr.vmem [resolvable:$true] %s39_s28 }
  0x2a   :  { %1949 = shalt.err (!%p1946_p0)
}
  0x2b   :  { %s2008_s30 = smov [#allocation13]   ;;  %s1950_s0 = scalar_lea.vmem %s40_s28, 16 }
  0x2c   :  { %92 = dma.vmem_to_smem %s90_s24, 16, %s2008_s30, [#allocation14]  }
  0x2d   :  { %p1951_p1 = scmp.ne.s32.totalorder %s40_s28, %s1950_s0  ;;  %p1955_p2 = scmp.lt.s32.totalorder %s40_s28, %s40_s28 }
  0x2e   :  { %p1956_p3 = scmp.lt.s32.totalorder %s1950_s0, %s1950_s0 }
  0x30   :  { %p1957_p4 = por %p1956_p3, %p1955_p2 }
  0x32   :  { %p1958_p5 = pnand %p1957_p4, %p1951_p1 }
  0x34   :  { %1961 = shalt.err (!%p1958_p5)
}
  0x35   :  { %s2009_s6 = smov [#allocation5]   ;;  %s59_s20 = sshll.u32 %s3943_s3, 4  ;;  %s60_s20 = int_to_ptr.vmem [resolvable:$true] %s59_s20 }
  0x36   :  { %42 = dma.vmem_to_smem %s40_s28, 16, %s2009_s6, [#allocation6]  }
  0x37   :  { %s79_s2 = sshll.u32 %s3945_s5, 4  ;;  %s1962_s4 = scalar_lea.vmem %s60_s20, 16  ;;  %s80_s2 = int_to_ptr.vmem [resolvable:$true] %s79_s2 }
  0x38   :  { %p1963_p6 = scmp.ne.s32.totalorder %s60_s20, %s1962_s4  ;;  %p1967_p7 = scmp.lt.s32.totalorder %s60_s20, %s60_s20 }
  0x39   :  { %p1968_p8 = scmp.lt.s32.totalorder %s1962_s4, %s1962_s4 }
  0x3b   :  { %p1969_p9 = por %p1968_p8, %p1967_p7 }
  0x3d   :  { %p1970_p10 = pnand %p1969_p9, %p1963_p6 }
  0x3f   :  { %1973 = shalt.err (!%p1970_p10)
}
  0x40   :  { %s2010_s23 = smov [#allocation9]   ;;  %s1974_s24 = scalar_lea.vmem %s80_s2, 16 }
  0x41   :  { %62 = dma.vmem_to_smem %s60_s20, 16, %s2010_s23, [#allocation8]  }
  0x42   :  { %p1975_p11 = scmp.ne.s32.totalorder %s80_s2, %s1974_s24  ;;  %p1979_p12 = scmp.lt.s32.totalorder %s80_s2, %s80_s2 }
  0x43   :  { %p1980_p13 = scmp.lt.s32.totalorder %s1974_s24, %s1974_s24 }
  0x45   :  { %p1981_p0 = por %p1980_p13, %p1979_p12 }
  0x47   :  { %p1982_p1 = pnand %p1981_p0, %p1975_p11 }
  0x49   :  { %1985 = shalt.err (!%p1982_p1)
}
  0x4a   :  { %s2011_s3 = smov [#allocation12]   ;;  %s99_s26 = sshll.u32 %s3947_s7, 4  ;;  %s100_s26 = int_to_ptr.vmem [resolvable:$true] %s99_s26 }
  0x4b   :  { %82 = dma.vmem_to_smem %s80_s2, 16, %s2011_s3, [#allocation11]  }
  0x4c   :  { %s1986_s27 = scalar_lea.vmem %s100_s26, 16  ;;  %p1991_p3 = scmp.lt.s32.totalorder %s100_s26, %s100_s26 }
  0x4d   :  { %p1987_p2 = scmp.ne.s32.totalorder %s100_s26, %s1986_s27  ;;  %p1992_p4 = scmp.lt.s32.totalorder %s1986_s27, %s1986_s27 }
  0x4f   :  { %p1993_p5 = por %p1992_p4, %p1991_p3 }
  0x51   :  { %p1994_p6 = pnand %p1993_p5, %p1987_p2 }
  0x53   :  { %1997 = shalt.err (!%p1994_p6)
}
  0x54   :  { %s2012_s28 = smov [#allocation15]  }
  0x55   :  { %102 = dma.vmem_to_smem %s100_s26, 16, %s2012_s28, [#allocation14]  }
  0x56   :  { %1998 = dma.done.wait [#allocation6], 16  }
  0x57   :  { %1999 = vsyncadd [#allocation6], 4294967280 }
  0x58   :  { %2000 = dma.done.wait [#allocation8], 32  }
  0x59   :  { %2001 = vsyncadd [#allocation8], 4294967264 }
  0x5a   :  { %2002 = dma.done.wait [#allocation11], 32  }
  0x5b   :  { %2003 = vsyncadd [#allocation11], 4294967264 }
  0x5c   :  { %2004 = dma.done.wait [#allocation14], 32  }
  0x5d   :  { %2005 = vsyncadd [#allocation14], 4294967264 }
  0x5e   :  { %130 = sfence }
  0x5f   :  { %s142_s7 = sld [smem:[#allocation5]]  ;;  %s1503_s29 = sld [smem:[#allocation5 + $0x1]]  ;;  %vm189_vm0 = vcmask 146432   ;;  %vm192_vm1 = vcmask 140288   ;;  %vm432_vm2 = vcmask 162816   ;;  %vm435_vm3 = vcmask 158720  }
  0x60   :  { %s1504_s30 = sld [smem:[#allocation5 + $0x2]]  ;;  %s163_s0 = sld [smem:[#allocation7]]  ;;  %vm459_vm4 = vcmask 154632   ;;  %vm462_vm5 = vcmask 148488   ;;  %vm1419_vm6 = vcmask 179200   ;;  %vm1422_vm7 = vcmask 177152  }
  0x61   :  { %s1505_s6 = sld [smem:[#allocation5 + $0x3]]  ;;  %s1506_s19 = sld [smem:[#allocation5 + $0x4]]  ;;  %vm1441_vm8 = vcmask 171016   ;;  %vm1444_vm9 = vcmask 166920  }
  0x62   :  { %s1507_s1 = sld [smem:[#allocation5 + $0x5]]  ;;  %s2133_s2 = sld [smem:[#allocation7 + $0x1]] }
  0x63   :  { %s3973_s22 = sld [smem:[#allocation28_spill]]  ;;  %s2135_s4 = sld [smem:[#allocation5 + $0x6]] }
  0x64   :  { %s2148_s27 = sld [smem:[#allocation5 + $0x7]]  ;;  %s2150_s28 = sld [smem:[#allocation5 + $0x8]] }
  0x65   :  { %v2152_v4 = vstv %s142_s7  ;;  %s2154_s20 = sld [smem:[#allocation7 + $0x2]]  ;;  %s2156_s21 = sld [smem:[#allocation5 + $0x9]]  ;;  %v2164_v7 = vstv %s1503_s29 }
  0x66   :  { %v2166_v8 = vstv %s1504_s30  ;;  %s2168_s3 = sld [smem:[#allocation5 + $0xa]]  ;;  %s2170_s7 = sld [smem:[#allocation5 + $0xb]]  ;;  %v2176_v12 = vstv %s163_s0 }
  0x67   :  { %v2178_v13 = vstv %s1505_s6  ;;  %s2180_s29 = sld [smem:[#allocation7 + $0x3]]  ;;  %s2182_s30 = sld [smem:[#allocation10]]  ;;  %v2185_v15 = vstv %s1506_s19 }
  0x68   :  { %v2187_v16 = vstv %s1507_s1  ;;  %s378_s5 = sld [smem:[#allocation9]]  ;;  %s2189_s25 = sld [smem:[#allocation9 + $0x1]]  ;;  %v2196_v21 = vstv %s2133_s2 }
  0x69   :  { %v131_v0 = vld [vmem:[%s3973_s22] sm:$0xff]  ;;  %v2140_v1 = vld [vmem:[%s3973_s22 + $0x8] sm:$0xff]  ;;  %v1497_v2 = vld [vmem:[%s3973_s22 + $0x18] sm:$0xff]  ;;  %s2198_s0 = sld [smem:[#allocation9 + $0x2]]  ;;  %s2200_s6 = sld [smem:[#allocation9 + $0x3]]  ;;  %v2203_v22 = vstv %s2135_s4 }
  0x6a   :  { %v1500_v3 = vld [vmem:[%s3973_s22 + $0x30] sm:$0xff]  ;;  %v2161_v5 = vld [vmem:[%s3973_s22 + $0x20] sm:$0xff]  ;;  %v144_v6 = vmul.f32 %v2152_v4, %v131_v0  ;;  %v145_v9 = vmul.f32 %v2152_v4, %v2140_v1  ;;  %v149_v10 = vmul.f32 %v1497_v2, %v2164_v7  ;;  %v202_v14 = vmul.f32 %v2178_v13, %v131_v0  ;;  %v1501_v46 = vld [vmem:[%s3973_s22 + $0x38] sm:$0xff]  ;;  %s2346_s19 = sld [smem:[#allocation10 + $0x1]]  ;;  %s2348_s1 = sld [smem:[#allocation9 + $0x4]] }
  0x6b   :  { %v157_v11 = vmul.f32 %v1500_v3, %v2166_v8  ;;  %v150_v17 = vmul.f32 %v2161_v5, %v2164_v7  ;;  %v207_v19 = vmul.f32 %v1497_v2, %v2185_v15  ;;  %v215_v20 = vmul.f32 %v1500_v3, %v2187_v16  ;;  %s2359_s26 = sld [smem:[#allocation9 + $0x5]]  ;;  %s2380_s24 = sld [smem:[#allocation9 + $0x8]] }
  0x6c   :  { %v152_v18 = vadd.f32 %v149_v10, %v144_v6  ;;  %v2206_v23 = vstv %s2148_s27  ;;  %v2209_v24 = vstv %s2150_s28  ;;  %v261_v28 = vmul.f32 %v2203_v22, %v131_v0  ;;  %v133_v10 = vld [vmem:[%s3973_s22 + $0x10] sm:$0x3]  ;;  %s2361_s27 = sld [smem:[#allocation9 + $0x6]]  ;;  %s2367_s28 = sld [smem:[#allocation9 + $0x7]] }
  0x6d   :  { %v153_v25 = vadd.f32 %v150_v17, %v145_v9  ;;  %v210_v27 = vadd.f32 %v207_v19, %v202_v14  ;;  %v266_v29 = vmul.f32 %v1497_v2, %v2206_v23  ;;  %v274_v30 = vmul.f32 %v1500_v3, %v2209_v24  ;;  %v2307_v19 = vld [vmem:[%s3973_s22 + $0x28] sm:$0x3]  ;;  %s2412_s2 = sld [smem:[#allocation9 + $0xd]]  ;;  %s2420_s4 = sld [smem:[#allocation9 + $0xe]] }
  0x6e   :  { %v160_v26 = vadd.f32 %v157_v11, %v152_v18  ;;  %v2215_v31 = vstv %s2154_s20  ;;  %v2218_v32 = vstv %s2156_s21  ;;  %v2221_v33 = vstv %s2168_s3  ;;  %s2369_s20 = sld [smem:[#allocation10 + $0x2]]  ;;  %s2383_s3 = sld [smem:[#allocation9 + $0x9]] }
  0x6f   :  { %v218_v35 = vadd.f32 %v215_v20, %v210_v27  ;;  %v269_v36 = vadd.f32 %v266_v29, %v261_v28  ;;  %v320_v37 = vmul.f32 %v2218_v32, %v131_v0  ;;  %v325_v38 = vmul.f32 %v1497_v2, %v2221_v33  ;;  %v2312_v20 = vld [vmem:[%s3973_s22 + $0x40] sm:$0x3]  ;;  %s2422_s21 = sld [smem:[#allocation9 + $0xf]]  ;;  %s2811_s22 = sld [smem:[#allocation10 + $0x5]] }
  0x70   :  { %v2224_v34 = vadd.f32 %v2176_v12, %v160_v26  ;;  %v2229_v39 = vstv %s2170_s7  ;;  %v2232_v40 = vstv %s2180_s29  ;;  %v2234_v41 = vstv %s378_s5  ;;  %s2385_s7 = sld [smem:[#allocation9 + $0xa]]  ;;  %s2396_s5 = sld [smem:[#allocation9 + $0xb]] }
  0x71   :  { %v2243_v43 = vadd.f32 %v2196_v21, %v218_v35  ;;  %v277_v44 = vadd.f32 %v274_v30, %v269_v36  ;;  %v333_v45 = vmul.f32 %v1500_v3, %v2229_v39  ;;  %v328_v47 = vadd.f32 %v325_v38, %v320_v37  ;;  %s2439_s29 = sld [smem:[#allocation9 + $0x10]] }
  0x72   :  { %v168_v42 = vsub.f32 0.0, %v2224_v34  ;;  %190 = vst.msk [vmem:[%s3951_s11] sm:$0xff] %vm189_vm0, %v2224_v34  ;;  %v2250_v48 = vstv %s2182_s30  ;;  %v2253_v49 = vstv %s2189_s25  ;;  %v2256_v50 = vstv %s2198_s0  ;;  %s2400_s25 = sld [smem:[#allocation10 + $0x3]]  ;;  %s2402_s0 = sld [smem:[#allocation9 + $0xc]] }
  0x73   :  { %v226_v52 = vsub.f32 0.0, %v2243_v43  ;;  %1509 = vst.msk [vmem:[%s3951_s11 + $0x18] sm:$0xff] %vm189_vm0, %v2243_v43  ;;  %v2265_v53 = vadd.f32 %v2215_v31, %v277_v44  ;;  %v2268_v54 = vstv %s2200_s6  ;;  %v336_v55 = vadd.f32 %v333_v45, %v328_v47  ;;  %s2824_s6 = sld [smem:[#allocation9 + $0x15]]  ;;  %s2865_s23 = sld [smem:[#allocation9 + $0x18]] }
  0x74   :  { %v171_v51 = vmul.f32 1.442695, %v168_v42  ;;  %v158_v56 = vmul.f32 %v1501_v46, %v2166_v8  ;;  %v203_v57 = vmul.f32 %v2178_v13, %v2140_v1  ;;  %v208_v58 = vmul.f32 %v2161_v5, %v2185_v15  ;;  %s3022_s30 = sld [smem:[#allocation13 + $0x1]]  ;;  %433 = vst.msk [vmem:[%s3954_s14] sm:$0xff] %vm432_vm2, %v2250_v48  ;;  %434 = vst.msk [vmem:[%s3954_s14 + $0x8] sm:$0xff] %vm432_vm2, %v2250_v48 }
  0x75   :  { %v229_v59 = vmul.f32 1.442695, %v226_v52  ;;  %v285_v60 = vsub.f32 0.0, %v2265_v53  ;;  %1522 = vst.msk [vmem:[%s3951_s11 + $0x30] sm:$0xff] %vm189_vm0, %v2265_v53  ;;  %v216_v61 = vmul.f32 %v1501_v46, %v2187_v16  ;;  %v2283_v62 = vadd.f32 %v2232_v40, %v336_v55 }
  0x76   :  { %1758 = vpow2.f32 %v171_v51  ;;  %v161_v63 = vadd.f32 %v158_v56, %v153_v25  ;;  %v211_v0 = vadd.f32 %v208_v58, %v203_v57  ;;  %v262_v2 = vmul.f32 %v2203_v22, %v2140_v1  ;;  %436 = vst.msk [vmem:[%s3954_s14 + $0x10] sm:$0xf] %vm435_vm3, %v2250_v48 }
  0x77   :  { %1760 = vpow2.f32 %v229_v59  ;;  %v288_v3 = vmul.f32 1.442695, %v285_v60  ;;  %v267_v6 = vmul.f32 %v2161_v5, %v2206_v23  ;;  %v275_v9 = vmul.f32 %v1501_v46, %v2209_v24  ;;  %1535 = vst.msk [vmem:[%s3951_s11 + $0x48] sm:$0xff] %vm189_vm0, %v2283_v62 }
  0x78   :  { %v344_v11 = vsub.f32 0.0, %v2283_v62  ;;  %v2300_v14 = vadd.f32 %v2176_v12, %v161_v63  ;;  %v219_v17 = vadd.f32 %v216_v61, %v211_v0  ;;  %v321_v18 = vmul.f32 %v2218_v32, %v2140_v1 }
  0x79   :  { %1762 = vpow2.f32 %v288_v3  ;;  %v270_v25 = vadd.f32 %v267_v6, %v262_v2  ;;  %v326_v26 = vmul.f32 %v2161_v5, %v2221_v33  ;;  %v334_v27 = vmul.f32 %v1501_v46, %v2229_v39 }
  0x7a   :  { %v347_v28 = vmul.f32 1.442695, %v344_v11  ;;  %v169_v1 = vsub.f32 0.0, %v2300_v14  ;;  %191 = vst.msk [vmem:[%s3951_s11 + $0x8] sm:$0xff] %vm189_vm0, %v2300_v14  ;;  %v2324_v29 = vadd.f32 %v2196_v21, %v219_v17  ;;  %v146_v30 = vmul.f32 %v2152_v4, %v133_v10 }
  0x7b   :  { %v278_v35 = vadd.f32 %v275_v9, %v270_v25  ;;  %v329_v36 = vadd.f32 %v326_v26, %v321_v18  ;;  %v151_v5 = vmul.f32 %v2307_v19, %v2164_v7  ;;  %v159_v37 = vmul.f32 %v2312_v20, %v2166_v8 }
  0x7c   :  { %1764 = vpow2.f32 %v347_v28  ;;  %v173_v38 = vmul.f32 1.442695, %v169_v1  ;;  %v227_v42 = vsub.f32 0.0, %v2324_v29  ;;  %1510 = vst.msk [vmem:[%s3951_s11 + $0x20] sm:$0xff] %vm189_vm0, %v2324_v29  ;;  %v204_v4 = vmul.f32 %v2178_v13, %v133_v10 }
  0x7d   :  { %v2339_v44 = vadd.f32 %v2215_v31, %v278_v35  ;;  %v337_v45 = vadd.f32 %v334_v27, %v329_v36  ;;  %v154_v7 = vadd.f32 %v151_v5, %v146_v30  ;;  %v209_v8 = vmul.f32 %v2307_v19, %v2185_v15 }
  0x7e   :  { %1766 = vpow2.f32 %v173_v38  ;;  %v231_v46 = vmul.f32 1.442695, %v227_v42  ;;  %v217_v47 = vmul.f32 %v2312_v20, %v2187_v16  ;;  %v263_v51 = vmul.f32 %v2203_v22, %v133_v10 }
  0x7f   :  { %v286_v52 = vsub.f32 0.0, %v2339_v44  ;;  %1523 = vst.msk [vmem:[%s3951_s11 + $0x38] sm:$0xff] %vm189_vm0, %v2339_v44  ;;  %v2357_v15 = vadd.f32 %v2232_v40, %v337_v45  ;;  %v162_v55 = vadd.f32 %v159_v37, %v154_v7  ;;  %v212_v16 = vadd.f32 %v209_v8, %v204_v4 }
  0x80   :  { %v1759_v13 = vpop.eup %1758  ;;  %1768 = vpow2.f32 %v231_v46  ;;  %v268_v56 = vmul.f32 %v2307_v19, %v2206_v23  ;;  %v276_v57 = vmul.f32 %v2312_v20, %v2209_v24  ;;  %v322_v0 = vmul.f32 %v2218_v32, %v133_v10 }
  0x81   :  { %v177_v22 = vadd.f32 1.0, %v1759_v13  ;;  %v1761_v58 = vpop.eup %1760  ;;  %v290_v59 = vmul.f32 1.442695, %v286_v52  ;;  %v345_v60 = vsub.f32 0.0, %v2357_v15  ;;  %1536 = vst.msk [vmem:[%s3951_s11 + $0x50] sm:$0xff] %vm189_vm0, %v2357_v15  ;;  %v2378_v61 = vadd.f32 %v2176_v12, %v162_v55 }
  0x82   :  { %v220_v23 = vadd.f32 %v217_v47, %v212_v16  ;;  %v235_v24 = vadd.f32 1.0, %v1761_v58  ;;  %v271_v63 = vadd.f32 %v268_v56, %v263_v51  ;;  %v327_v10 = vmul.f32 %v2307_v19, %v2221_v33 }
  0x83   :  { %1770 = vrcp.f32 %v177_v22  ;;  %v1763_v2 = vpop.eup %1762  ;;  %v349_v3 = vmul.f32 1.442695, %v345_v60  ;;  %v170_v6 = vsub.f32 0.0, %v2378_v61  ;;  %193 = vst.msk [vmem:[%s3951_s11 + $0x10] sm:$0x3] %vm192_vm1, %v2378_v61  ;;  %v2418_v25 = vstv %s2348_s1  ;;  %s2878_s1 = sld [smem:[#allocation9 + $0x19]] }
  0x84   :  { %1772 = vpow2.f32 %v290_v59  ;;  %v2394_v12 = vadd.f32 %v2196_v21, %v220_v23  ;;  %v294_v32 = vadd.f32 1.0, %v1763_v2  ;;  %v279_v9 = vadd.f32 %v276_v57, %v271_v63 }
  0x85   :  { %1774 = vrcp.f32 %v235_v24  ;;  %v175_v11 = vmul.f32 1.442695, %v170_v6  ;;  %v335_v21 = vmul.f32 %v2312_v20, %v2229_v39  ;;  %v330_v19 = vadd.f32 %v327_v10, %v322_v0 }
  0x86   :  { %1776 = vpow2.f32 %v349_v3  ;;  %v228_v17 = vsub.f32 0.0, %v2394_v12  ;;  %1511 = vst.msk [vmem:[%s3951_s11 + $0x28] sm:$0x3] %vm192_vm1, %v2394_v12  ;;  %v1765_v33 = vpop.eup %1764  ;;  %v2415_v18 = vadd.f32 %v2215_v31, %v279_v9  ;;  %v2425_v20 = vstv %s2346_s19  ;;  %s2895_s19 = sld [smem:[#allocation9 + $0x1b]] }
  0x87   :  { %1778 = vrcp.f32 %v294_v32  ;;  %v353_v26 = vadd.f32 1.0, %v1765_v33  ;;  %v338_v31 = vadd.f32 %v335_v21, %v330_v19  ;;  %v2434_v1 = vstv %s2359_s26  ;;  %s2932_s26 = sld [smem:[#allocation9 + $0x1c]]  ;;  %1552 = vst.msk [vmem:[%s3954_s14 + $0x18] sm:$0xff] %vm432_vm2, %v2425_v20  ;;  %1553 = vst.msk [vmem:[%s3954_s14 + $0x20] sm:$0xff] %vm432_vm2, %v2425_v20 }
  0x88   :  { %1780 = vpow2.f32 %v175_v11  ;;  %v233_v39 = vmul.f32 1.442695, %v228_v17  ;;  %v1767_v27 = vpop.eup %1766  ;;  %v287_v28 = vsub.f32 0.0, %v2415_v18  ;;  %1524 = vst.msk [vmem:[%s3951_s11 + $0x40] sm:$0x3] %vm192_vm1, %v2415_v18  ;;  %v2437_v30 = vstv %s2361_s27  ;;  %s2940_s27 = sld [smem:[#allocation10 + $0x7]] }
  0x89   :  { %1782 = vrcp.f32 %v353_v26  ;;  %v178_v35 = vadd.f32 1.0, %v1767_v27  ;;  %v2442_v36 = vstv %s2367_s28  ;;  %v2445_v5 = vstv %s2380_s24  ;;  %s2013_s28 = smov 1   ;;  %s2959_s24 = sld [smem:[#allocation9 + $0x1f]]  ;;  %1554 = vst.msk [vmem:[%s3954_s14 + $0x28] sm:$0xf] %vm435_vm3, %v2425_v20 }
  0x8a   :  { %v1769_v37 = vpop.eup %1768  ;;  %1784 = vpow2.f32 %v233_v39  ;;  %v292_v38 = vmul.f32 1.442695, %v287_v28  ;;  %v2448_v42 = vadd.f32 %v2232_v40, %v338_v31  ;;  %v2451_v4 = vstv %s2369_s20  ;;  %s2954_s20 = sld [smem:[#allocation9 + $0x1e]] }
  0x8b   :  { %1786 = vrcp.f32 %v178_v35  ;;  %v236_v45 = vadd.f32 1.0, %v1769_v37  ;;  %v2454_v7 = vstv %s2383_s3  ;;  %v2457_v8 = vstv %s2385_s7  ;;  %s3006_s3 = sld [smem:[#allocation12]]  ;;  %1577 = vst.msk [vmem:[%s3954_s14 + $0x30] sm:$0xff] %vm432_vm2, %v2451_v4  ;;  %1578 = vst.msk [vmem:[%s3954_s14 + $0x38] sm:$0xff] %vm432_vm2, %v2451_v4 }
  0x8c   :  { %1788 = vpow2.f32 %v292_v38  ;;  %v346_v47 = vsub.f32 0.0, %v2448_v42  ;;  %1537 = vst.msk [vmem:[%s3951_s11 + $0x58] sm:$0x3] %vm192_vm1, %v2448_v42  ;;  %v2466_v40 = vstv %s2396_s5  ;;  %v2469_v51 = vstv %s2402_s0  ;;  %s2764_s5 = sld [smem:[#allocation9 + $0x12]]  ;;  %s2801_s0 = sld [smem:[#allocation9 + $0x14]] }
  0x8d   :  { %v1771_v46 = vpop.eup %1770  ;;  %1790 = vrcp.f32 %v236_v45  ;;  %v2479_v55 = vstv %s2400_s25  ;;  %v2482_v16 = vstv %s2412_s2  ;;  %v2485_v58 = vstv %s2420_s4  ;;  %s2778_s25 = sld [smem:[#allocation9 + $0x13]]  ;;  %s2835_s2 = sld [smem:[#allocation9 + $0x16]]  ;;  %1579 = vst.msk [vmem:[%s3954_s14 + $0x40] sm:$0xf] %vm435_vm3, %v2451_v4 }
  0x8e   :  { %v1773_v13 = vpop.eup %1772  ;;  %v2472_v52 = vmul.f32 %v1771_v46, %v2224_v34  ;;  %194 = vst.msk [vmem:[%s3952_s12] sm:$0xff] %vm189_vm0, %v1771_v46  ;;  %v351_v57 = vmul.f32 1.442695, %v346_v47  ;;  %v2488_v59 = vstv %s2422_s21  ;;  %v2511_v3 = vstv %s2439_s29  ;;  %s2837_s4 = sld [smem:[#allocation9 + $0x17]]  ;;  %s2863_s21 = sld [smem:[#allocation10 + $0x6]] }
  0x8f   :  { %v1775_v22 = vpop.eup %1774  ;;  %v295_v56 = vadd.f32 1.0, %v1773_v13  ;;  %s2889_s29 = sld [smem:[#allocation9 + $0x1a]]  ;;  %s2942_s11 = sld [smem:[#allocation9 + $0x1d]]  ;;  %1602 = vst.msk [vmem:[%s3954_s14 + $0x48] sm:$0xff] %vm432_vm2, %v2479_v55  ;;  %1603 = vst.msk [vmem:[%s3954_s14 + $0x50] sm:$0xff] %vm432_vm2, %v2479_v55 }
  0x90   :  { %v1777_v34 = vpop.eup %1776  ;;  %v2491_v60 = vmul.f32 %v1775_v22, %v2243_v43  ;;  %1512 = vst.msk [vmem:[%s3952_s12 + $0x18] sm:$0xff] %vm189_vm0, %v1775_v22  ;;  %v380_v23 = vmul.f32 %v2234_v41, %v2472_v52  ;;  %197 = vst.msk [vmem:[%s3953_s13] sm:$0xff] %vm189_vm0, %v2472_v52  ;;  %v497_v24 = vmul.f32 %v2418_v25, %v2472_v52  ;;  %s3012_s7 = sld [smem:[#allocation13]] }
  0x91   :  { %v613_v43 = vmul.f32 %v2445_v5, %v2472_v52  ;;  %v1779_v63 = vpop.eup %1778  ;;  %1792 = vrcp.f32 %v295_v56  ;;  %v354_v0 = vadd.f32 1.0, %v1777_v34  ;;  %v729_v2 = vmul.f32 %v2469_v51, %v2472_v52  ;;  %1604 = vst.msk [vmem:[%s3954_s14 + $0x58] sm:$0xf] %vm435_vm3, %v2479_v55 }
  0x92   :  { %v1781_v6 = vpop.eup %1780  ;;  %1515 = vst.msk [vmem:[%s3953_s13 + $0x18] sm:$0xff] %vm189_vm0, %v2491_v60  ;;  %v2519_v32 = vmul.f32 %v1779_v63, %v2265_v53  ;;  %1525 = vst.msk [vmem:[%s3952_s12 + $0x30] sm:$0xff] %vm189_vm0, %v1779_v63  ;;  %v384_v9 = vadd.f32 %v2250_v48, %v380_v23  ;;  %v389_v10 = vmul.f32 %v2253_v49, %v2491_v60  ;;  %1794 = vpow2.f32 %v351_v57 }
  0x93   :  { %1796 = vrcp.f32 %v354_v0  ;;  %v179_v11 = vadd.f32 1.0, %v1781_v6  ;;  %v501_v17 = vadd.f32 %v2425_v20, %v497_v24  ;;  %v506_v21 = vmul.f32 %v2434_v1, %v2491_v60  ;;  %v1783_v53 = vpop.eup %1782 }
  0x94   :  { %1528 = vst.msk [vmem:[%s3953_s13 + $0x30] sm:$0xff] %vm189_vm0, %v2519_v32  ;;  %v392_v33 = vadd.f32 %v389_v10, %v384_v9  ;;  %v397_v19 = vmul.f32 %v2256_v50, %v2519_v32  ;;  %v514_v26 = vmul.f32 %v2437_v30, %v2519_v32  ;;  %v617_v39 = vadd.f32 %v2451_v4, %v613_v43  ;;  %v1785_v27 = vpop.eup %1784 }
  0x95   :  { %v2542_v28 = vmul.f32 %v1783_v53, %v2283_v62  ;;  %1538 = vst.msk [vmem:[%s3952_s12 + $0x48] sm:$0xff] %vm189_vm0, %v1783_v53  ;;  %1798 = vrcp.f32 %v179_v11  ;;  %v509_v31 = vadd.f32 %v506_v21, %v501_v17  ;;  %v622_v35 = vmul.f32 %v2454_v7, %v2491_v60  ;;  %v1787_v37 = vpop.eup %1786 }
  0x96   :  { %v400_v38 = vadd.f32 %v397_v19, %v392_v33  ;;  %v237_v45 = vadd.f32 1.0, %v1785_v27  ;;  %v630_v46 = vmul.f32 %v2457_v8, %v2519_v32  ;;  %v2553_v47 = vadd.f32 %v2479_v55, %v729_v2  ;;  %v1789_v62 = vpop.eup %1788  ;;  %195 = vst.msk [vmem:[%s3952_s12 + $0x8] sm:$0xff] %vm189_vm0, %v1787_v37 }
  0x97   :  { %1541 = vst.msk [vmem:[%s3953_s13 + $0x48] sm:$0xff] %vm189_vm0, %v2542_v28  ;;  %v405_v13 = vmul.f32 %v2268_v54, %v2542_v28  ;;  %v2563_v22 = vmul.f32 %v1787_v37, %v2300_v14  ;;  %v517_v56 = vadd.f32 %v514_v26, %v509_v31  ;;  %v522_v57 = vmul.f32 %v2442_v36, %v2542_v28  ;;  %v1791_v34 = vpop.eup %1790 }
  0x98   :  { %1800 = vrcp.f32 %v237_v45  ;;  %v296_v23 = vadd.f32 1.0, %v1789_v62  ;;  %v625_v24 = vadd.f32 %v622_v35, %v617_v39  ;;  %v638_v43 = vmul.f32 %v2466_v40, %v2542_v28  ;;  %1513 = vst.msk [vmem:[%s3952_s12 + $0x20] sm:$0xff] %vm189_vm0, %v1791_v34 }
  0x99   :  { %v2573_v63 = vadd.f32 %v405_v13, %v400_v38  ;;  %v2576_v14 = vmul.f32 %v1791_v34, %v2324_v29  ;;  %v381_v0 = vmul.f32 %v2234_v41, %v2563_v22  ;;  %198 = vst.msk [vmem:[%s3953_s13 + $0x8] sm:$0xff] %vm189_vm0, %v2563_v22  ;;  %v2589_v2 = vadd.f32 %v522_v57, %v517_v56 }
  0x9a   :  { %1802 = vrcp.f32 %v296_v23  ;;  %v498_v29 = vmul.f32 %v2418_v25, %v2563_v22  ;;  %v633_v6 = vadd.f32 %v630_v46, %v625_v24  ;;  %v614_v9 = vmul.f32 %v2445_v5, %v2563_v22 }
  0x9b   :  { %v1793_v10 = vpop.eup %1792  ;;  %450 = vrot.lane.b32.xlu0 %v2573_v63, %s2013_s28  ;;  %v411_v11 = vsub.f32 0.0, %v2573_v63  ;;  %1516 = vst.msk [vmem:[%s3953_s13 + $0x20] sm:$0xff] %vm189_vm0, %v2576_v14  ;;  %v385_v17 = vadd.f32 %v2250_v48, %v381_v0  ;;  %v390_v21 = vmul.f32 %v2253_v49, %v2576_v14  ;;  %v528_v53 = vsub.f32 0.0, %v2589_v2 }
  0x9c   :  { %v1795_v33 = vpop.eup %1794  ;;  %v2608_v19 = vmul.f32 %v1793_v10, %v2339_v44  ;;  %1526 = vst.msk [vmem:[%s3952_s12 + $0x38] sm:$0xff] %vm189_vm0, %v1793_v10  ;;  %v502_v26 = vadd.f32 %v2425_v20, %v498_v29  ;;  %v507_v39 = vmul.f32 %v2434_v1, %v2576_v14  ;;  %v2617_v27 = vadd.f32 %v638_v43, %v633_v6 }
  0x9d   :  { %v1797_v31 = vpop.eup %1796  ;;  %v414_v35 = vmul.f32 1.442695, %v411_v11  ;;  %v393_v37 = vadd.f32 %v390_v21, %v385_v17  ;;  %v355_v38 = vadd.f32 1.0, %v1795_v33  ;;  %v531_v45 = vmul.f32 1.442695, %v528_v53 }
  0x9e   :  { %1529 = vst.msk [vmem:[%s3953_s13 + $0x38] sm:$0xff] %vm189_vm0, %v2608_v19  ;;  %v2625_v44 = vmul.f32 %v1797_v31, %v2357_v15  ;;  %1539 = vst.msk [vmem:[%s3952_s12 + $0x50] sm:$0xff] %vm189_vm0, %v1797_v31  ;;  %v398_v46 = vmul.f32 %v2256_v50, %v2608_v19  ;;  %v510_v62 = vadd.f32 %v507_v39, %v502_v26  ;;  %v644_v57 = vsub.f32 0.0, %v2617_v27 }
  0x9f   :  { %v515_v13 = vmul.f32 %v2437_v30, %v2608_v19  ;;  %v1799_v56 = vpop.eup %1798  ;;  %1804 = vpow2.f32 %v414_v35  ;;  %v618_v34 = vadd.f32 %v2451_v4, %v614_v9  ;;  %v623_v15 = vmul.f32 %v2454_v7, %v2576_v14 }
  0xa0   :  { %1542 = vst.msk [vmem:[%s3953_s13 + $0x50] sm:$0xff] %vm189_vm0, %v2625_v44  ;;  %v401_v23 = vadd.f32 %v398_v46, %v393_v37  ;;  %v406_v24 = vmul.f32 %v2268_v54, %v2625_v44  ;;  %v2647_v43 = vmul.f32 %v1799_v56, %v2378_v61  ;;  %1806 = vrcp.f32 %v355_v38 }
  0xa1   :  { %196 = vst.msk [vmem:[%s3952_s12 + $0x10] sm:$0x3] %vm192_vm1, %v1799_v56  ;;  %1808 = vpow2.f32 %v531_v45  ;;  %v518_v0 = vadd.f32 %v515_v13, %v510_v62  ;;  %v523_v29 = vmul.f32 %v2442_v36, %v2625_v44  ;;  %v647_v6 = vmul.f32 1.442695, %v644_v57 }
  0xa2   :  { %v1801_v9 = vpop.eup %1800  ;;  %v2655_v10 = vadd.f32 %v406_v24, %v401_v23  ;;  %199 = vst.msk [vmem:[%s3953_s13 + $0x10] sm:$0x3] %vm192_vm1, %v2647_v43  ;;  %v382_v61 = vmul.f32 %v2234_v41, %v2647_v43  ;;  %v499_v11 = vmul.f32 %v2418_v25, %v2647_v43  ;;  %v626_v17 = vadd.f32 %v623_v15, %v618_v34 }
  0xa3   :  { %v2667_v21 = vmul.f32 %v1801_v9, %v2394_v12  ;;  %1514 = vst.msk [vmem:[%s3952_s12 + $0x28] sm:$0x3] %vm192_vm1, %v1801_v9  ;;  %v2673_v53 = vadd.f32 %v523_v29, %v518_v0  ;;  %1810 = vpow2.f32 %v647_v6  ;;  %v631_v33 = vmul.f32 %v2457_v8, %v2608_v19 }
  0xa4   :  { %v1803_v26 = vpop.eup %1802  ;;  %452 = vrot.lane.b32.xlu1 %v2655_v10, %s2013_s28  ;;  %v412_v41 = vsub.f32 0.0, %v2655_v10  ;;  %v386_v12 = vadd.f32 %v2250_v48, %v382_v61  ;;  %v503_v25 = vadd.f32 %v2425_v20, %v499_v11  ;;  %v639_v39 = vmul.f32 %v2466_v40, %v2625_v44 }
  0xa5   :  { %1517 = vst.msk [vmem:[%s3953_s13 + $0x28] sm:$0x3] %vm192_vm1, %v2667_v21  ;;  %v2690_v31 = vmul.f32 %v1803_v26, %v2415_v18  ;;  %1527 = vst.msk [vmem:[%s3952_s12 + $0x40] sm:$0x3] %vm192_vm1, %v1803_v26  ;;  %v391_v35 = vmul.f32 %v2253_v49, %v2667_v21  ;;  %v529_v37 = vsub.f32 0.0, %v2673_v53  ;;  %v508_v38 = vmul.f32 %v2434_v1, %v2667_v21 }
  0xa6   :  { %v416_v45 = vmul.f32 1.442695, %v412_v41  ;;  %v634_v46 = vadd.f32 %v631_v33, %v626_v17  ;;  %v615_v62 = vmul.f32 %v2445_v5, %v2647_v43  ;;  %v624_v18 = vmul.f32 %v2454_v7, %v2667_v21 }
  0xa7   :  { %1530 = vst.msk [vmem:[%s3953_s13 + $0x40] sm:$0x3] %vm192_vm1, %v2690_v31  ;;  %v394_v49 = vadd.f32 %v391_v35, %v386_v12  ;;  %v399_v13 = vmul.f32 %v2256_v50, %v2690_v31  ;;  %v533_v56 = vmul.f32 1.442695, %v529_v37  ;;  %v511_v1 = vadd.f32 %v508_v38, %v503_v25 }
  0xa8   :  { %1812 = vpow2.f32 %v416_v45  ;;  %v516_v57 = vmul.f32 %v2437_v30, %v2690_v31  ;;  %v2714_v5 = vadd.f32 %v639_v39, %v634_v46  ;;  %v619_v7 = vadd.f32 %v2451_v4, %v615_v62 }
  0xa9   :  { %v1805_v34 = vpop.eup %1804  ;;  %v402_v15 = vadd.f32 %v399_v13, %v394_v49  ;;  %1814 = vpow2.f32 %v533_v56  ;;  %v632_v23 = vmul.f32 %v2457_v8, %v2690_v31  ;;  %v738_v24 = vmul.f32 %v2482_v16, %v2491_v60 }
  0xaa   :  { %v1807_v50 = vpop.eup %1806  ;;  %v420_v0 = vadd.f32 1.0, %v1805_v34  ;;  %v519_v29 = vadd.f32 %v516_v57, %v511_v1  ;;  %v645_v6 = vsub.f32 0.0, %v2714_v5  ;;  %v627_v9 = vadd.f32 %v624_v18, %v619_v7 }
  0xab   :  { %v1809_v30 = vpop.eup %1808  ;;  %v2723_v61 = vmul.f32 %v1807_v50, %v2448_v42  ;;  %1540 = vst.msk [vmem:[%s3952_s12 + $0x58] sm:$0x3] %vm192_vm1, %v1807_v50  ;;  %v741_v8 = vadd.f32 %v738_v24, %v2553_v47  ;;  %v746_v11 = vmul.f32 %v2485_v58, %v2519_v32  ;;  %v754_v17 = vmul.f32 %v2488_v59, %v2542_v28  ;;  %s2749_s12 = sld [smem:[#allocation10 + $0x4]] }
  0xac   :  { %1816 = vrcp.f32 %v420_v0  ;;  %v537_v33 = vadd.f32 1.0, %v1809_v30  ;;  %v649_v26 = vmul.f32 1.442695, %v645_v6  ;;  %v635_v41 = vadd.f32 %v632_v23, %v627_v9 }
  0xad   :  { %v1811_v12 = vpop.eup %1810  ;;  %1543 = vst.msk [vmem:[%s3953_s13 + $0x58] sm:$0x3] %vm192_vm1, %v2723_v61  ;;  %v407_v42 = vmul.f32 %v2268_v54, %v2723_v61  ;;  %v524_v47 = vmul.f32 %v2442_v36, %v2723_v61  ;;  %v640_v25 = vmul.f32 %v2466_v40, %v2723_v61  ;;  %v749_v39 = vadd.f32 %v746_v11, %v741_v8  ;;  %s2751_s13 = sld [smem:[#allocation9 + $0x11]] }
  0xae   :  { %1818 = vrcp.f32 %v537_v33  ;;  %v653_v35 = vadd.f32 1.0, %v1811_v12  ;;  %v730_v37 = vmul.f32 %v2469_v51, %v2563_v22  ;;  %v739_v38 = vmul.f32 %v2482_v16, %v2576_v14 }
  0xaf   :  { %v2753_v54 = vadd.f32 %v407_v42, %v402_v15  ;;  %v2755_v45 = vadd.f32 %v524_v47, %v519_v29  ;;  %1820 = vpow2.f32 %v649_v26  ;;  %v2757_v36 = vadd.f32 %v640_v25, %v635_v41 }
  0xb0   :  { %1822 = vrcp.f32 %v653_v35  ;;  %v2759_v40 = vadd.f32 %v754_v17, %v749_v39  ;;  %v734_v46 = vadd.f32 %v2479_v55, %v730_v37  ;;  %v747_v62 = vmul.f32 %v2485_v58, %v2608_v19 }
  0xb1   :  { %v413_v18 = vsub.f32 0.0, %v2753_v54  ;;  %454 = vrot.lane.b32.xlu0 %v2753_v54, %s2013_s28  ;;  %v530_v49 = vsub.f32 0.0, %v2755_v45  ;;  %v646_v13 = vsub.f32 0.0, %v2757_v36  ;;  %v755_v56 = vmul.f32 %v2488_v59, %v2625_v44 }
  0xb2   :  { %3974 = vst [vmem:[#allocation20_spill] sm:$0xff] %v2759_v40  ;;  %v1813_v1 = vpop.eup %1812  ;;  %v760_v57 = vsub.f32 0.0, %v2759_v40  ;;  %v742_v7 = vadd.f32 %v739_v38, %v734_v46  ;;  %v731_v34 = vmul.f32 %v2469_v51, %v2647_v43  ;;  %v740_v15 = vmul.f32 %v2482_v16, %v2667_v21 }
  0xb3   :  { %v1815_v23 = vpop.eup %1814  ;;  %v421_v24 = vadd.f32 1.0, %v1813_v1  ;;  %v418_v50 = vmul.f32 1.442695, %v413_v18  ;;  %v535_v0 = vmul.f32 1.442695, %v530_v49  ;;  %v748_v29 = vmul.f32 %v2485_v58, %v2690_v31 }
  0xb4   :  { %v538_v6 = vadd.f32 1.0, %v1815_v23  ;;  %v651_v9 = vmul.f32 1.442695, %v646_v13  ;;  %v763_v30 = vmul.f32 1.442695, %v760_v57  ;;  %v750_v8 = vadd.f32 %v747_v62, %v742_v7 }
  0xb5   :  { %1824 = vrcp.f32 %v421_v24  ;;  %v735_v51 = vadd.f32 %v2479_v55, %v731_v34  ;;  %v756_v16 = vmul.f32 %v2488_v59, %v2723_v61  ;;  %v845_v11 = vmul.f32 %v2511_v3, %v2472_v52 }
  0xb6   :  { %v1817_v17 = vpop.eup %1816  ;;  %1826 = vpow2.f32 %v418_v50  ;;  %v2787_v33 = vadd.f32 %v755_v56, %v750_v8  ;;  %v2790_v26 = vstv %s2749_s12  ;;  %v853_v58 = vstv %s2751_s13  ;;  %s3024_s12 = sld [smem:[#allocation13 + $0x2]]  ;;  %s3030_s13 = sld [smem:[#allocation13 + $0x3]] }
  0xb7   :  { %467 = vrot.lane.b32.xlu1 %v1817_v17, %s2013_s28  ;;  %v429_v41 = vmul.f32 %v1817_v17, %v2573_v63  ;;  %1828 = vrcp.f32 %v538_v6  ;;  %v743_v12 = vadd.f32 %v740_v15, %v735_v51  ;;  %v849_v42 = vadd.f32 %v2790_v26, %v845_v11  ;;  %1627 = vst.msk [vmem:[%s3954_s14 + $0x60] sm:$0xff] %vm432_vm2, %v2790_v26 }
  0xb8   :  { %3975 = vst [vmem:[#allocation21_spill] sm:$0xff] %v2787_v33  ;;  %v2796_v59 = vpop.eup %1818  ;;  %1830 = vpow2.f32 %v535_v0  ;;  %v761_v47 = vsub.f32 0.0, %v2787_v33  ;;  %v854_v25 = vmul.f32 %v853_v58, %v2491_v60  ;;  %v861_v39 = vstv %s2764_s5  ;;  %s3033_s5 = sld [smem:[#allocation13 + $0x4]]  ;;  %1628 = vst.msk [vmem:[%s3954_s14 + $0x68] sm:$0xff] %vm432_vm2, %v2790_v26 }
  0xb9   :  { %v1821_v35 = vpop.eup %1820  ;;  %482 = vrot.lane.b32.xlu0 %v429_v41, %s2013_s28  ;;  %v2806_v63 = vmul.f32 %v2796_v59, %v2589_v2  ;;  %1832 = vpow2.f32 %v651_v9  ;;  %v751_v37 = vadd.f32 %v748_v29, %v743_v12  ;;  %v862_v38 = vmul.f32 %v861_v39, %v2519_v32  ;;  %1629 = vst.msk [vmem:[%s3954_s14 + $0x70] sm:$0xf] %vm435_vm3, %v2790_v26 }
  0xba   :  { %v2809_v46 = vpop.eup %1822  ;;  %v654_v62 = vadd.f32 1.0, %v1821_v35  ;;  %1834 = vpow2.f32 %v763_v30  ;;  %v765_v18 = vmul.f32 1.442695, %v761_v47  ;;  %v857_v49 = vadd.f32 %v854_v25, %v849_v42 }
  0xbb   :  { %v2815_v13 = vmul.f32 %v2809_v46, %v2617_v27  ;;  %v2817_v56 = vadd.f32 %v756_v16, %v751_v37  ;;  %v869_v1 = vstv %s2778_s25  ;;  %v846_v57 = vmul.f32 %v2511_v3, %v2563_v22  ;;  %s3037_s25 = sld [smem:[#allocation13 + $0x5]] }
  0xbc   :  { %1836 = vrcp.f32 %v654_v62  ;;  %v865_v7 = vadd.f32 %v862_v38, %v857_v49  ;;  %v870_v34 = vmul.f32 %v869_v1, %v2542_v28  ;;  %v855_v15 = vmul.f32 %v853_v58, %v2576_v14 }
  0xbd   :  { %3976 = vst [vmem:[#allocation22_spill] sm:$0xff] %v2817_v56  ;;  %1838 = vpow2.f32 %v765_v18  ;;  %v762_v23 = vsub.f32 0.0, %v2817_v56  ;;  %v850_v24 = vadd.f32 %v2790_v26, %v846_v57  ;;  %v863_v50 = vmul.f32 %v861_v39, %v2608_v19 }
  0xbe   :  { %v2829_v0 = vadd.f32 %v870_v34, %v865_v7  ;;  %v871_v29 = vmul.f32 %v869_v1, %v2625_v44  ;;  %v847_v6 = vmul.f32 %v2511_v3, %v2647_v43  ;;  %v856_v9 = vmul.f32 %v853_v58, %v2667_v21 }
  0xbf   :  { %v2839_v30 = vpop.eup %1824  ;;  %v767_v8 = vmul.f32 1.442695, %v762_v23  ;;  %v858_v51 = vadd.f32 %v855_v15, %v850_v24  ;;  %v864_v16 = vmul.f32 %v861_v39, %v2690_v31  ;;  %v872_v11 = vmul.f32 %v869_v1, %v2723_v61 }
  0xc0   :  { %v1827_v17 = vpop.eup %1826  ;;  %v430_v41 = vmul.f32 %v2839_v30, %v2655_v10  ;;  %v876_v3 = vsub.f32 0.0, %v2829_v0  ;;  %v851_v58 = vadd.f32 %v2790_v26, %v847_v6  ;;  %v960_v12 = vstv %s2801_s0 }
  0xc1   :  { %v2848_v42 = vpop.eup %1828  ;;  %v422_v47 = vadd.f32 1.0, %v1827_v17  ;;  %1840 = vpow2.f32 %v767_v8  ;;  %v866_v25 = vadd.f32 %v863_v50, %v858_v51  ;;  %v961_v35 = vmul.f32 %v960_v12, %v2472_v52 }
  0xc2   :  { %v1831_v39 = vpop.eup %1830  ;;  %484 = vrot.lane.b32.xlu0 %v430_v41, %s2013_s28  ;;  %v547_v37 = vmul.f32 %v2848_v42, %v2673_v53  ;;  %v879_v10 = vmul.f32 1.442695, %v876_v3  ;;  %v859_v38 = vadd.f32 %v856_v9, %v851_v58  ;;  %v2855_v62 = vstv %s2811_s22 }
  0xc3   :  { %v1833_v18 = vpop.eup %1832  ;;  %1842 = vrcp.f32 %v422_v47  ;;  %v539_v49 = vadd.f32 1.0, %v1831_v39  ;;  %v2857_v1 = vadd.f32 %v871_v29, %v866_v25  ;;  %v965_v57 = vadd.f32 %v2855_v62, %v961_v35  ;;  %1652 = vst.msk [vmem:[%s3954_s14 + $0x78] sm:$0xff] %vm432_vm2, %v2855_v62  ;;  %1653 = vst.msk [vmem:[%s3954_s14 + $0x80] sm:$0xff] %vm432_vm2, %v2855_v62 }
  0xc4   :  { %v1835_v7 = vpop.eup %1834  ;;  %v655_v34 = vadd.f32 1.0, %v1833_v18  ;;  %1844 = vpow2.f32 %v879_v10  ;;  %v867_v15 = vadd.f32 %v864_v16, %v859_v38  ;;  %v969_v23 = vstv %s2824_s6  ;;  %1654 = vst.msk [vmem:[%s3954_s14 + $0x88] sm:$0xf] %vm435_vm3, %v2855_v62 }
  0xc5   :  { %1846 = vrcp.f32 %v539_v49  ;;  %v769_v24 = vadd.f32 1.0, %v1835_v7  ;;  %v877_v50 = vsub.f32 0.0, %v2857_v1  ;;  %v970_v6 = vmul.f32 %v969_v23, %v2491_v60 }
  0xc6   :  { %v2867_v29 = vpop.eup %1836  ;;  %600 = vrot.lane.b32.xlu0 %v547_v37, %s2013_s28  ;;  %1848 = vrcp.f32 %v655_v34  ;;  %v2870_v9 = vadd.f32 %v872_v11, %v867_v15  ;;  %v977_v8 = vstv %s2835_s2  ;;  %v985_v51 = vstv %s2837_s4  ;;  %s1331_s4 = sld [smem:[#allocation15]] }
  0xc7   :  { %v1839_v16 = vpop.eup %1838  ;;  %v2876_v17 = vmul.f32 %v2867_v29, %v2714_v5  ;;  %1850 = vrcp.f32 %v769_v24  ;;  %v881_v41 = vmul.f32 1.442695, %v877_v50  ;;  %v973_v3 = vadd.f32 %v970_v6, %v965_v57 }
  0xc8   :  { %v770_v58 = vadd.f32 1.0, %v1839_v16  ;;  %v878_v47 = vsub.f32 0.0, %v2870_v9  ;;  %v978_v25 = vmul.f32 %v977_v8, %v2519_v32  ;;  %v986_v11 = vmul.f32 %v985_v51, %v2542_v28 }
  0xc9   :  { %1852 = vpow2.f32 %v881_v41  ;;  %v962_v35 = vmul.f32 %v960_v12, %v2563_v22  ;;  %v971_v39 = vmul.f32 %v969_v23, %v2576_v14  ;;  %v979_v37 = vmul.f32 %v977_v8, %v2608_v19 }
  0xca   :  { %714 = vrot.lane.b32.xlu0 %v2815_v13, %s2013_s28  ;;  %1854 = vrcp.f32 %v770_v58  ;;  %v883_v10 = vmul.f32 1.442695, %v878_v47  ;;  %v981_v38 = vadd.f32 %v978_v25, %v973_v3  ;;  %v987_v18 = vmul.f32 %v985_v51, %v2625_v44 }
  0xcb   :  { %v1841_v49 = vpop.eup %1840  ;;  %v966_v57 = vadd.f32 %v2855_v62, %v962_v35  ;;  %v963_v7 = vmul.f32 %v960_v12, %v2647_v43  ;;  %v972_v34 = vmul.f32 %v969_v23, %v2667_v21  ;;  %v980_v15 = vmul.f32 %v977_v8, %v2690_v31 }
  0xcc   :  { %v771_v13 = vadd.f32 1.0, %v1841_v49  ;;  %1856 = vpow2.f32 %v883_v10  ;;  %v2897_v24 = vadd.f32 %v986_v11, %v981_v38  ;;  %v988_v50 = vmul.f32 %v985_v51, %v2723_v61 }
  0xcd   :  { %v2900_v6 = vpop.eup %1842  ;;  %v974_v16 = vadd.f32 %v971_v39, %v966_v57  ;;  %v967_v41 = vadd.f32 %v2855_v62, %v963_v7  ;;  %v1076_v3 = vstv %s2865_s23  ;;  %v2905_v12 = vstv %s2863_s21  ;;  %s1555_s23 = sld [smem:[#allocation12 + $0x1]]  ;;  %s1680_s21 = sld [smem:[#allocation12 + $0x6]] }
  0xce   :  { %v1845_v23 = vpop.eup %1844  ;;  %v431_v8 = vmul.f32 %v2900_v6, %v2753_v54  ;;  %1858 = vrcp.f32 %v771_v13  ;;  %v992_v58 = vsub.f32 0.0, %v2897_v24  ;;  %v1077_v47 = vmul.f32 %v1076_v3, %v2472_v52  ;;  %1677 = vst.msk [vmem:[%s3954_s14 + $0x90] sm:$0xff] %vm432_vm2, %v2905_v12  ;;  %1678 = vst.msk [vmem:[%s3954_s14 + $0x98] sm:$0xff] %vm432_vm2, %v2905_v12 }
  0xcf   :  { %v2911_v25 = vpop.eup %1846  ;;  %v885_v51 = vadd.f32 1.0, %v1845_v23  ;;  %v982_v11 = vadd.f32 %v979_v37, %v974_v16  ;;  %v975_v35 = vadd.f32 %v972_v34, %v967_v41  ;;  %v1085_v39 = vstv %s2878_s1  ;;  %1679 = vst.msk [vmem:[%s3954_s14 + $0xa0] sm:$0xf] %vm435_vm3, %v2905_v12  ;;  %s1605_s1 = sld [smem:[#allocation12 + $0x3]] }
  0xd0   :  { %v2914_v10 = vpop.eup %1848  ;;  %486 = vrot.lane.b32.xlu1 %v431_v8, %s2013_s28  ;;  %v548_v38 = vmul.f32 %v2911_v25, %v2755_v45  ;;  %v995_v54 = vmul.f32 1.442695, %v992_v58  ;;  %v1081_v49 = vadd.f32 %v2905_v12, %v1077_v47  ;;  %v1086_v57 = vmul.f32 %v1085_v39, %v2491_v60 }
  0xd1   :  { %3977 = vst [vmem:[#allocation23_spill] sm:$0xff] %v2914_v10  ;;  %v2921_v7 = vpop.eup %1850  ;;  %v664_v37 = vmul.f32 %v2914_v10, %v2757_v36  ;;  %1860 = vrcp.f32 %v885_v51  ;;  %v2925_v34 = vadd.f32 %v987_v18, %v982_v11  ;;  %v983_v13 = vadd.f32 %v980_v15, %v975_v35 }
  0xd2   :  { %3978 = vst [vmem:[#allocation24_spill] sm:$0xff] %v2921_v7  ;;  %v2929_v16 = vmul.f32 %v2921_v7, %v2759_v40  ;;  %1862 = vpow2.f32 %v995_v54  ;;  %v1089_v41 = vadd.f32 %v1086_v57, %v1081_v49  ;;  %v1093_v23 = vstv %s2889_s29  ;;  %s1630_s29 = sld [smem:[#allocation12 + $0x4]] }
  0xd3   :  { %v1853_v8 = vpop.eup %1852  ;;  %718 = vrot.lane.b32.xlu0 %v664_v37, %s2013_s28  ;;  %v993_v58 = vsub.f32 0.0, %v2925_v34  ;;  %v2936_v47 = vadd.f32 %v988_v50, %v983_v13  ;;  %v1094_v18 = vmul.f32 %v1093_v23, %v2519_v32  ;;  %v1101_v51 = vstv %s2895_s19  ;;  %s1745_s19 = sld [smem:[#allocation15 + $0x3]] }
  0xd4   :  { %v2944_v15 = vpop.eup %1854  ;;  %598 = vrot.lane.b32.xlu1 %v2806_v63, %s2013_s28  ;;  %v886_v11 = vadd.f32 1.0, %v1853_v8  ;;  %v1102_v35 = vmul.f32 %v1101_v51, %v2542_v28  ;;  %v1078_v54 = vmul.f32 %v1076_v3, %v2563_v22  ;;  %v1087_v50 = vmul.f32 %v1085_v39, %v2576_v14 }
  0xd5   :  { %3979 = vst [vmem:[#allocation25_spill] sm:$0xff] %v2944_v15  ;;  %v779_v49 = vmul.f32 %v2944_v15, %v2787_v33  ;;  %v997_v57 = vmul.f32 1.442695, %v993_v58  ;;  %v994_v37 = vsub.f32 0.0, %v2936_v47  ;;  %v1097_v13 = vadd.f32 %v1094_v18, %v1089_v41 }
  0xd6   :  { %v1857_v7 = vpop.eup %1856  ;;  %1864 = vrcp.f32 %v886_v11  ;;  %v1082_v63 = vadd.f32 %v2905_v12, %v1078_v54  ;;  %v1095_v8 = vmul.f32 %v1093_v23, %v2608_v19  ;;  %v1103_v40 = vmul.f32 %v1101_v51, %v2625_v44 }
  0xd7   :  { %832 = vrot.lane.b32.xlu0 %v779_v49, %s2013_s28  ;;  %v887_v10 = vadd.f32 1.0, %v1857_v7  ;;  %1866 = vpow2.f32 %v997_v57  ;;  %v999_v58 = vmul.f32 1.442695, %v994_v37  ;;  %v2962_v15 = vadd.f32 %v1102_v35, %v1097_v13 }
  0xd8   :  { %v2964_v41 = vpop.eup %1858  ;;  %602 = vrot.lane.b32.xlu1 %v548_v38, %s2013_s28  ;;  %v1090_v18 = vadd.f32 %v1087_v50, %v1082_v63  ;;  %v1079_v11 = vmul.f32 %v1076_v3, %v2647_v43  ;;  %v1088_v54 = vmul.f32 %v1085_v39, %v2667_v21  ;;  %v1096_v33 = vmul.f32 %v1093_v23, %v2690_v31 }
  0xd9   :  { %3980 = vst [vmem:[#allocation26_spill] sm:$0xff] %v2964_v41  ;;  %v780_v7 = vmul.f32 %v2964_v41, %v2817_v56  ;;  %1868 = vrcp.f32 %v887_v10  ;;  %v1108_v35 = vsub.f32 0.0, %v2962_v15  ;;  %v1104_v49 = vmul.f32 %v1101_v51, %v2723_v61 }
  0xda   :  { %1870 = vpow2.f32 %v999_v58  ;;  %v1098_v57 = vadd.f32 %v1095_v8, %v1090_v18  ;;  %v1083_v38 = vadd.f32 %v2905_v12, %v1079_v11  ;;  %v1192_v50 = vstv %s2932_s26 }
  0xdb   :  { %v2976_v37 = vpop.eup %1860  ;;  %v1111_v3 = vmul.f32 1.442695, %v1108_v35  ;;  %v1193_v39 = vmul.f32 %v1192_v50, %v2472_v52  ;;  %v2980_v23 = vstv %s2940_s27  ;;  %v1201_v13 = vstv %s2942_s11 }
  0xdc   :  { %3981 = vst [vmem:[#allocation27_spill] sm:$0xff] %v2976_v37  ;;  %v1863_v10 = vpop.eup %1862  ;;  %716 = vrot.lane.b32.xlu1 %v2876_v17, %s2013_s28  ;;  %v894_v51 = vmul.f32 %v2976_v37, %v2829_v0  ;;  %v2987_v63 = vadd.f32 %v1103_v40, %v1098_v57  ;;  %v1091_v8 = vadd.f32 %v1088_v54, %v1083_v38  ;;  %v1209_v11 = vstv %s2954_s20  ;;  %s3197_s20 = sld [smem:[#allocation13 + $0x6]] }
  0xdd   :  { %v1202_v58 = vmul.f32 %v1201_v13, %v2491_v60  ;;  %v1001_v18 = vadd.f32 1.0, %v1863_v10  ;;  %1872 = vpow2.f32 %v1111_v3  ;;  %v1197_v52 = vadd.f32 %v2980_v23, %v1193_v39  ;;  %1702 = vst.msk [vmem:[%s3954_s14 + $0xa8] sm:$0xff] %vm432_vm2, %v2980_v23  ;;  %1703 = vst.msk [vmem:[%s3954_s14 + $0xb0] sm:$0xff] %vm432_vm2, %v2980_v23 }
  0xde   :  { %946 = vrot.lane.b32.xlu0 %v894_v51, %s2013_s28  ;;  %v1109_v35 = vsub.f32 0.0, %v2987_v63  ;;  %v1099_v41 = vadd.f32 %v1096_v33, %v1091_v8  ;;  %v1210_v17 = vmul.f32 %v1209_v11, %v2519_v32  ;;  %v1217_v56 = vstv %s2959_s24  ;;  %1704 = vst.msk [vmem:[%s3954_s14 + $0xb8] sm:$0xf] %vm435_vm3, %v2980_v23  ;;  %s3650_s24 = sld [smem:[#allocation15 + $0x7]] }
  0xdf   :  { %1874 = vrcp.f32 %v1001_v18  ;;  %v1205_v37 = vadd.f32 %v1202_v58, %v1197_v52  ;;  %v1218_v40 = vmul.f32 %v1217_v56, %v2542_v28  ;;  %v1194_v54 = vmul.f32 %v1192_v50, %v2563_v22 }
  0xe0   :  { %v2998_v60 = vpop.eup %1864  ;;  %830 = vrot.lane.b32.xlu1 %v2929_v16, %s2013_s28  ;;  %v1113_v57 = vmul.f32 1.442695, %v1109_v35  ;;  %v3002_v38 = vadd.f32 %v1104_v49, %v1099_v41  ;;  %v1203_v3 = vmul.f32 %v1201_v13, %v2576_v14  ;;  %v1211_v33 = vmul.f32 %v1209_v11, %v2608_v19 }
  0xe1   :  { %v1867_v32 = vpop.eup %1866  ;;  %v895_v28 = vmul.f32 %v2998_v60, %v2857_v1  ;;  %v1213_v39 = vadd.f32 %v1210_v17, %v1205_v37  ;;  %v1198_v22 = vadd.f32 %v2980_v23, %v1194_v54  ;;  %v1219_v10 = vmul.f32 %v1217_v56, %v2625_v44 }
  0xe2   :  { %v1002_v16 = vadd.f32 1.0, %v1867_v32  ;;  %1876 = vpow2.f32 %v1113_v57  ;;  %v1110_v41 = vsub.f32 0.0, %v3002_v38  ;;  %v1195_v14 = vmul.f32 %v1192_v50, %v2647_v43 }
  0xe3   :  { %v3016_v19 = vpop.eup %1868  ;;  %v3018_v49 = vadd.f32 %v1218_v40, %v1213_v39  ;;  %v1206_v51 = vadd.f32 %v1203_v3, %v1198_v22  ;;  %v1204_v8 = vmul.f32 %v1201_v13, %v2667_v21  ;;  %v1212_v37 = vmul.f32 %v1209_v11, %v2690_v31 }
  0xe4   :  { %v1871_v44 = vpop.eup %1870  ;;  %834 = vrot.lane.b32.xlu1 %v780_v7, %s2013_s28  ;;  %v896_v58 = vmul.f32 %v3016_v19, %v2870_v9  ;;  %1878 = vrcp.f32 %v1002_v16  ;;  %v1115_v43 = vmul.f32 1.442695, %v1110_v41  ;;  %v1199_v50 = vadd.f32 %v2980_v23, %v1195_v14 }
  0xe5   :  { %v1003_v18 = vadd.f32 1.0, %v1871_v44  ;;  %v1224_v21 = vsub.f32 0.0, %v3018_v49  ;;  %v1214_v31 = vadd.f32 %v1211_v33, %v1206_v51  ;;  %v1220_v7 = vmul.f32 %v1217_v56, %v2723_v61 }
  0xe6   :  { %950 = vrot.lane.b32.xlu0 %v896_v58, %s2013_s28  ;;  %1880 = vpow2.f32 %v1115_v43  ;;  %v1207_v13 = vadd.f32 %v1204_v8, %v1199_v50  ;;  %v438_v48 = vstv %s3006_s3  ;;  %v443_v55 = vstv %s3012_s7  ;;  %s1655_s7 = sld [smem:[#allocation12 + $0x5]] }
  0xe7   :  { %v1873_v52 = vpop.eup %1872  ;;  %1882 = vrcp.f32 %v1003_v18  ;;  %v1227_v11 = vmul.f32 1.442695, %v1224_v21  ;;  %v3039_v35 = vadd.f32 %v1219_v10, %v1214_v31  ;;  %439 = vst.msk [vmem:[%s3955_s15] sm:$0xff] %vm432_vm2, %v438_v48  ;;  %440 = vst.msk [vmem:[%s3955_s15 + $0x8] sm:$0xff] %vm432_vm2, %v438_v48  ;;  %v560_v23 = vstv %s3022_s30  ;;  %s1705_s30 = sld [smem:[#allocation12 + $0x7]] }
  0xe8   :  { %948 = vrot.lane.b32.xlu1 %v895_v28, %s2013_s28  ;;  %v1117_v61 = vadd.f32 1.0, %v1873_v52  ;;  %v1215_v56 = vadd.f32 %v1212_v37, %v1207_v13  ;;  %441 = vst.msk [vmem:[%s3955_s15 + $0x10] sm:$0xf] %vm435_vm3, %v438_v48  ;;  %446 = vst.msk [vmem:[%s3956_s16 + $0x10] sm:$0xf] %vm435_vm3, %v443_v55  ;;  %v676_v17 = vstv %s3024_s12 }
  0xe9   :  { %v3163_v20 = vpop.eup %1874  ;;  %1884 = vpow2.f32 %v1227_v11  ;;  %v1225_v4 = vsub.f32 0.0, %v3039_v35  ;;  %444 = vst.msk [vmem:[%s3956_s16] sm:$0xff] %vm432_vm2, %v443_v55  ;;  %445 = vst.msk [vmem:[%s3956_s16 + $0x8] sm:$0xff] %vm432_vm2, %v443_v55  ;;  %v792_v57 = vstv %s3030_s13  ;;  %v908_v33 = vstv %s3033_s5 }
  0xea   :  { %v1010_v26 = vmul.f32 %v3163_v20, %v2897_v24  ;;  %1886 = vrcp.f32 %v1117_v61  ;;  %v3181_v62 = vadd.f32 %v1220_v7, %v1215_v56  ;;  %1560 = vst.msk [vmem:[%s3956_s16 + $0x18] sm:$0xff] %vm432_vm2, %v560_v23  ;;  %1561 = vst.msk [vmem:[%s3956_s16 + $0x20] sm:$0xff] %vm432_vm2, %v560_v23  ;;  %v1024_v39 = vstv %s3037_s25  ;;  %s1709_s25 = sld [smem:[#allocation13 + $0x7]] }
  0xeb   :  { %v1229_v12 = vmul.f32 1.442695, %v1225_v4  ;;  %1562 = vst.msk [vmem:[%s3956_s16 + $0x28] sm:$0xf] %vm435_vm3, %v560_v23  ;;  %1587 = vst.msk [vmem:[%s3956_s16 + $0x40] sm:$0xf] %vm435_vm3, %v676_v17  ;;  %v1140_v14 = vstv %s3197_s20 }
  0xec   :  { %v1877_v40 = vpop.eup %1876  ;;  %1062 = vrot.lane.b32.xlu1 %v1010_v26, %s2013_s28  ;;  %v1226_v54 = vsub.f32 0.0, %v3181_v62  ;;  %1585 = vst.msk [vmem:[%s3956_s16 + $0x30] sm:$0xff] %vm432_vm2, %v676_v17  ;;  %1586 = vst.msk [vmem:[%s3956_s16 + $0x38] sm:$0xff] %vm432_vm2, %v676_v17  ;;  %v3988_v17 = vld [vmem:[#allocation26_spill] sm:$0xff] }
  0xed   :  { %v1118_v3 = vadd.f32 1.0, %v1877_v40  ;;  %1888 = vpow2.f32 %v1229_v12  ;;  %1610 = vst.msk [vmem:[%s3956_s16 + $0x48] sm:$0xff] %vm432_vm2, %v792_v57  ;;  %1611 = vst.msk [vmem:[%s3956_s16 + $0x50] sm:$0xff] %vm432_vm2, %v792_v57 }
  0xee   :  { %1612 = vst.msk [vmem:[%s3956_s16 + $0x58] sm:$0xf] %vm435_vm3, %v792_v57  ;;  %v3239_v32 = vpop.eup %1878  ;;  %v1231_v28 = vmul.f32 1.442695, %v1226_v54  ;;  %1637 = vst.msk [vmem:[%s3956_s16 + $0x70] sm:$0xf] %vm435_vm3, %v908_v33 }
  0xef   :  { %1635 = vst.msk [vmem:[%s3956_s16 + $0x60] sm:$0xff] %vm432_vm2, %v908_v33  ;;  %1636 = vst.msk [vmem:[%s3956_s16 + $0x68] sm:$0xff] %vm432_vm2, %v908_v33  ;;  %v1011_v22 = vmul.f32 %v3239_v32, %v2925_v34  ;;  %1890 = vrcp.f32 %v1118_v3  ;;  %v1018_v3 = vstv %s1655_s7  ;;  %s1746_s7 = sld [smem:[#allocation15 + $0x4]] }
  0xf0   :  { %1660 = vst.msk [vmem:[%s3956_s16 + $0x78] sm:$0xff] %vm432_vm2, %v1024_v39  ;;  %1661 = vst.msk [vmem:[%s3956_s16 + $0x80] sm:$0xff] %vm432_vm2, %v1024_v39  ;;  %v1881_v10 = vpop.eup %1880  ;;  %1892 = vpow2.f32 %v1231_v28  ;;  %v1256_v50 = vstv %s1709_s25  ;;  %s1580_s25 = sld [smem:[#allocation12 + $0x2]] }
  0xf1   :  { %1662 = vst.msk [vmem:[%s3956_s16 + $0x88] sm:$0xf] %vm435_vm3, %v1024_v39  ;;  %v3268_v16 = vpop.eup %1882  ;;  %1064 = vrot.lane.b32.xlu0 %v1011_v22, %s2013_s28  ;;  %v1119_v41 = vadd.f32 1.0, %v1881_v10  ;;  %1687 = vst.msk [vmem:[%s3956_s16 + $0xa0] sm:$0xf] %vm435_vm3, %v1140_v14  ;;  %v1332_v22 = vstv %s1331_s4 }
  0xf2   :  { %v1012_v51 = vmul.f32 %v3268_v16, %v2936_v47  ;;  %1685 = vst.msk [vmem:[%s3956_s16 + $0x90] sm:$0xff] %vm432_vm2, %v1140_v14  ;;  %1686 = vst.msk [vmem:[%s3956_s16 + $0x98] sm:$0xff] %vm432_vm2, %v1140_v14 }
  0xf3   :  { %v1885_v8 = vpop.eup %1884  ;;  %1894 = vrcp.f32 %v1119_v41  ;;  %1710 = vst.msk [vmem:[%s3956_s16 + $0xa8] sm:$0xff] %vm432_vm2, %v1256_v50  ;;  %1711 = vst.msk [vmem:[%s3956_s16 + $0xb0] sm:$0xff] %vm432_vm2, %v1256_v50 }
  0xf4   :  { %v3286_v37 = vpop.eup %1886  ;;  %1066 = vrot.lane.b32.xlu1 %v1012_v51, %s2013_s28  ;;  %v1233_v44 = vadd.f32 1.0, %v1885_v8  ;;  %1712 = vst.msk [vmem:[%s3956_s16 + $0xb8] sm:$0xf] %vm435_vm3, %v1256_v50  ;;  %1658 = vst.msk [vmem:[%s3955_s15 + $0x88] sm:$0xf] %vm435_vm3, %v1018_v3  ;;  %v1336_v8 = vstv %s3948_s8 }
  0xf5   :  { %v1126_v58 = vmul.f32 %v3286_v37, %v2962_v15  ;;  %1656 = vst.msk [vmem:[%s3955_s15 + $0x78] sm:$0xff] %vm432_vm2, %v1018_v3  ;;  %1657 = vst.msk [vmem:[%s3955_s15 + $0x80] sm:$0xff] %vm432_vm2, %v1018_v3 }
  0xf6   :  { %1896 = vrcp.f32 %v1233_v44 }
  0xf7   :  { %v1889_v43 = vpop.eup %1888  ;;  %1178 = vrot.lane.b32.xlu0 %v1126_v58, %s2013_s28 }
  0xf8   :  { %v1234_v18 = vadd.f32 1.0, %v1889_v43 }
  0xf9   :  { %v3304_v21 = vpop.eup %1890 }
  0xfa   :  { %v1893_v31 = vpop.eup %1892  ;;  %v1127_v13 = vmul.f32 %v3304_v21, %v2987_v63  ;;  %1898 = vrcp.f32 %v1234_v18  ;;  %v1357_v18 = vstv %s1745_s19 }
  0xfb   :  { %v1235_v7 = vadd.f32 1.0, %v1893_v31 }
  0xfc   :  { %1180 = vrot.lane.b32.xlu1 %v1127_v13, %s2013_s28 }
  0xfd   :  { %v3309_v52 = vpop.eup %1894  ;;  %1900 = vrcp.f32 %v1235_v7 }
  0xfe   :  { %v1128_v11 = vmul.f32 %v3309_v52, %v3002_v38 }
 0x100   :  { %v3313_v61 = vpop.eup %1896  ;;  %1182 = vrot.lane.b32.xlu0 %v1128_v11, %s2013_s28 }
 0x101   :  { %v1242_v56 = vmul.f32 %v3313_v61, %v3018_v49 }
 0x103   :  { %1294 = vrot.lane.b32.xlu1 %v1242_v56, %s2013_s28  ;;  %v1365_v56 = vstv %s1746_s7 }
 0x104   :  { %v3319_v48 = vpop.eup %1898 }
 0x105   :  { %v1243_v4 = vmul.f32 %v3319_v48, %v3039_v35 }
 0x107   :  { %v3323_v55 = vpop.eup %1900  ;;  %1296 = vrot.lane.b32.xlu0 %v1243_v4, %s2013_s28 }
 0x108   :  { %v1244_v26 = vmul.f32 %v3323_v55, %v3181_v62 }
 0x10a   :  { %1298 = vrot.lane.b32.xlu1 %v1244_v26, %s2013_s28 }
 0x10b   :  { %469 = vrot.lane.b32.xlu0 %v2839_v30, %s2013_s28  ;;  %v3987_v30 = vld [vmem:[#allocation25_spill] sm:$0xff] }
 0x10d   :  { %v451_v12 = vpop.permute.xlu0 %450 }
 0x10e   :  { %460 = vst.msk [vmem:[%s3954_s14 + $0x1] sm:$0xff] %vm459_vm4, %v451_v12  ;;  %471 = vrot.lane.b32.xlu1 %v2900_v6, %s2013_s28  ;;  %v786_v6 = vstv %s1605_s1  ;;  %s1744_s1 = sld [smem:[#allocation15 + $0x2]] }
 0x10f   :  { %568 = vrot.lane.b32.xlu0 %v2589_v2, %s2013_s28  ;;  %1606 = vst.msk [vmem:[%s3955_s15 + $0x48] sm:$0xff] %vm432_vm2, %v786_v6  ;;  %1607 = vst.msk [vmem:[%s3955_s15 + $0x50] sm:$0xff] %vm432_vm2, %v786_v6 }
 0x110   :  { %1608 = vst.msk [vmem:[%s3955_s15 + $0x58] sm:$0xf] %vm435_vm3, %v786_v6 }
 0x112   :  { %570 = vrot.lane.b32.xlu1 %v2673_v53, %s2013_s28  ;;  %v3983_v53 = vld [vmem:[#allocation20_spill] sm:$0xff] }
 0x113   :  { %572 = vrot.lane.b32.xlu0 %v2755_v45, %s2013_s28  ;;  %v3984_v45 = vld [vmem:[#allocation21_spill] sm:$0xff] }
 0x114   :  { %v1349_v44 = vstv %s1744_s1 }
 0x116   :  { %v453_v23 = vpop.permute.xlu1 %452  ;;  %583 = vrot.lane.b32.xlu1 %v2796_v59, %s2013_s28  ;;  %v3985_v59 = vld [vmem:[#allocation22_spill] sm:$0xff] }
 0x117   :  { %461 = vst.msk [vmem:[%s3954_s14 + $0x9] sm:$0xff] %vm459_vm4, %v453_v23  ;;  %585 = vrot.lane.b32.xlu0 %v2848_v42, %s2013_s28  ;;  %v554_v42 = vstv %s1555_s23 }
 0x118   :  { %1556 = vst.msk [vmem:[%s3955_s15 + $0x18] sm:$0xff] %vm432_vm2, %v554_v42  ;;  %1557 = vst.msk [vmem:[%s3955_s15 + $0x20] sm:$0xff] %vm432_vm2, %v554_v42 }
 0x119   :  { %1558 = vst.msk [vmem:[%s3955_s15 + $0x28] sm:$0xf] %vm435_vm3, %v554_v42 }
 0x11a   :  { %587 = vrot.lane.b32.xlu1 %v2911_v25, %s2013_s28  ;;  %v902_v25 = vstv %s1630_s29 }
 0x11b   :  { %684 = vrot.lane.b32.xlu0 %v2617_v27, %s2013_s28  ;;  %v3982_v27 = vld [vmem:[#allocation23_spill] sm:$0xff]  ;;  %1631 = vst.msk [vmem:[%s3955_s15 + $0x60] sm:$0xff] %vm432_vm2, %v902_v25  ;;  %1632 = vst.msk [vmem:[%s3955_s15 + $0x68] sm:$0xff] %vm432_vm2, %v902_v25 }
 0x11c   :  { %1633 = vst.msk [vmem:[%s3955_s15 + $0x70] sm:$0xf] %vm435_vm3, %v902_v25 }
 0x11e   :  { %686 = vrot.lane.b32.xlu1 %v2714_v5, %s2013_s28 }
 0x11f   :  { %688 = vrot.lane.b32.xlu0 %v2757_v36, %s2013_s28 }
 0x122   :  { %699 = vrot.lane.b32.xlu1 %v2809_v46, %s2013_s28  ;;  %v3986_v46 = vld [vmem:[#allocation24_spill] sm:$0xff] }
 0x123   :  { %v455_v2 = vpop.permute.xlu0 %454  ;;  %701 = vrot.lane.b32.xlu0 %v2867_v29, %s2013_s28  ;;  %v670_v29 = vstv %s1580_s25  ;;  %s1743_s25 = sld [smem:[#allocation15 + $0x1]] }
 0x124   :  { %463 = vst.msk [vmem:[%s3954_s14 + $0x11] sm:$0x3] %vm462_vm5, %v455_v2 }
 0x125   :  { %1581 = vst.msk [vmem:[%s3955_s15 + $0x30] sm:$0xff] %vm432_vm2, %v670_v29  ;;  %1582 = vst.msk [vmem:[%s3955_s15 + $0x38] sm:$0xff] %vm432_vm2, %v670_v29 }
 0x126   :  { %703 = vrot.lane.b32.xlu1 %v3982_v27, %s2013_s28  ;;  %1583 = vst.msk [vmem:[%s3955_s15 + $0x40] sm:$0xf] %vm435_vm3, %v670_v29 }
 0x127   :  { %800 = vrot.lane.b32.xlu0 %v3983_v53, %s2013_s28 }
 0x129   :  { %v468_v5 = vpop.permute.xlu1 %467 }
 0x12a   :  { %476 = vst.msk [vmem:[%s3955_s15 + $0x1] sm:$0xff] %vm459_vm4, %v468_v5  ;;  %802 = vrot.lane.b32.xlu1 %v3984_v45, %s2013_s28 }
 0x12b   :  { %v483_v36 = vpop.permute.xlu0 %482  ;;  %804 = vrot.lane.b32.xlu0 %v3985_v59, %s2013_s28 }
 0x12c   :  { %491 = vst.msk [vmem:[%s3956_s16 + $0x1] sm:$0xff] %vm459_vm4, %v483_v36 }
 0x12e   :  { %815 = vrot.lane.b32.xlu1 %v3986_v46, %s2013_s28 }
 0x12f   :  { %817 = vrot.lane.b32.xlu0 %v3987_v30, %s2013_s28 }
 0x132   :  { %819 = vrot.lane.b32.xlu1 %v3988_v17, %s2013_s28 }
 0x133   :  { %916 = vrot.lane.b32.xlu0 %v2829_v0, %s2013_s28  ;;  %v3989_v0 = vld [vmem:[#allocation27_spill] sm:$0xff]  ;;  %v1306_v10 = vld [vmem:[%s3956_s16] sm:$0xff] }
 0x134   :  { %v485_v40 = vpop.permute.xlu0 %484  ;;  %v1333_v14 = vmul.f32 %v1332_v22, %v1306_v10 }
 0x135   :  { %492 = vst.msk [vmem:[%s3956_s16 + $0x9] sm:$0xff] %vm459_vm4, %v485_v40 }
 0x136   :  { %918 = vrot.lane.b32.xlu1 %v2857_v1, %s2013_s28  ;;  %v1337_v31 = vadd.f32 %v1336_v8, %v1333_v14 }
 0x137   :  { %920 = vrot.lane.b32.xlu0 %v2870_v9, %s2013_s28 }
 0x138   :  { %v601_v54 = vpop.permute.xlu0 %600 }
 0x139   :  { %1570 = vst.msk [vmem:[%s3956_s16 + $0x21] sm:$0xff] %vm459_vm4, %v601_v54 }
 0x13a   :  { %931 = vrot.lane.b32.xlu1 %v3989_v0, %s2013_s28 }
 0x13b   :  { %933 = vrot.lane.b32.xlu0 %v2998_v60, %s2013_s28 }
 0x13c   :  { %v715_v57 = vpop.permute.xlu0 %714 }
 0x13d   :  { %1594 = vst.msk [vmem:[%s3956_s16 + $0x31] sm:$0xff] %vm459_vm4, %v715_v57 }
 0x13e   :  { %935 = vrot.lane.b32.xlu1 %v3016_v19, %s2013_s28 }
 0x13f   :  { %1032 = vrot.lane.b32.xlu0 %v2897_v24, %s2013_s28  ;;  %v1134_v24 = vstv %s1680_s21  ;;  %s3629_s21 = sld [smem:[#allocation15 + $0x6]] }
 0x140   :  { %1681 = vst.msk [vmem:[%s3955_s15 + $0x90] sm:$0xff] %vm432_vm2, %v1134_v24  ;;  %1682 = vst.msk [vmem:[%s3955_s15 + $0x98] sm:$0xff] %vm432_vm2, %v1134_v24 }
 0x141   :  { %1683 = vst.msk [vmem:[%s3955_s15 + $0xa0] sm:$0xf] %vm435_vm3, %v1134_v24 }
 0x142   :  { %v487_v1 = vpop.permute.xlu1 %486  ;;  %1034 = vrot.lane.b32.xlu1 %v2925_v34, %s2013_s28 }
 0x143   :  { %493 = vst.msk [vmem:[%s3956_s16 + $0x11] sm:$0x3] %vm462_vm5, %v487_v1  ;;  %1036 = vrot.lane.b32.xlu0 %v2936_v47, %s2013_s28 }
 0x144   :  { %v1725_v58 = vld [vmem:[%s3956_s16 + $0x30] sm:$0xff] }
 0x145   :  { %v719_v9 = vpop.permute.xlu0 %718  ;;  %v1381_v25 = vstv %s3629_s21 }
 0x146   :  { %v599_v60 = vpop.permute.xlu1 %598  ;;  %1596 = vst.msk [vmem:[%s3956_s16 + $0x41] sm:$0x3] %vm462_vm5, %v719_v9  ;;  %1047 = vrot.lane.b32.xlu1 %v3163_v20, %s2013_s28 }
 0x147   :  { %1569 = vst.msk [vmem:[%s3956_s16 + $0x19] sm:$0xff] %vm459_vm4, %v599_v60  ;;  %1049 = vrot.lane.b32.xlu0 %v3239_v32, %s2013_s28 }
 0x149   :  { %v833_v34 = vpop.permute.xlu0 %832 }
 0x14a   :  { %v603_v47 = vpop.permute.xlu1 %602  ;;  %1620 = vst.msk [vmem:[%s3956_s16 + $0x51] sm:$0xff] %vm459_vm4, %v833_v34  ;;  %1051 = vrot.lane.b32.xlu1 %v3268_v16, %s2013_s28  ;;  %v1341_v16 = vstv %s1743_s25  ;;  %v1308_v13 = vld [vmem:[%s3956_s16 + $0x10] sm:$0xf] }
 0x14b   :  { %1571 = vst.msk [vmem:[%s3956_s16 + $0x29] sm:$0x3] %vm462_vm5, %v603_v47  ;;  %1148 = vrot.lane.b32.xlu0 %v2962_v15, %s2013_s28  ;;  %v1335_v23 = vmul.f32 %v1332_v22, %v1308_v13 }
 0x14d   :  { %v1339_v3 = vadd.f32 %v1336_v8, %v1335_v23 }
 0x14e   :  { %v717_v19 = vpop.permute.xlu1 %716  ;;  %1150 = vrot.lane.b32.xlu1 %v2987_v63, %s2013_s28  ;;  %v1250_v63 = vstv %s1705_s30  ;;  %v1722_v41 = vld [vmem:[%s3956_s16 + $0x18] sm:$0xff]  ;;  %v1723_v50 = vld [vmem:[%s3956_s16 + $0x20] sm:$0xff] }
 0x14f   :  { %1595 = vst.msk [vmem:[%s3956_s16 + $0x39] sm:$0xff] %vm459_vm4, %v717_v19  ;;  %1152 = vrot.lane.b32.xlu0 %v3002_v38, %s2013_s28  ;;  %v3554_v38 = vstv %s3949_s9  ;;  %s3614_s9 = sld [smem:[#allocation15 + $0x5]]  ;;  %v1342_v43 = vmul.f32 %v1722_v41, %v1341_v16 }
 0x150   :  { %v947_v20 = vpop.permute.xlu0 %946  ;;  %1706 = vst.msk [vmem:[%s3955_s15 + $0xa8] sm:$0xff] %vm432_vm2, %v1250_v63  ;;  %1707 = vst.msk [vmem:[%s3955_s15 + $0xb0] sm:$0xff] %vm432_vm2, %v1250_v63 }
 0x151   :  { %1644 = vst.msk [vmem:[%s3956_s16 + $0x61] sm:$0xff] %vm459_vm4, %v947_v20  ;;  %v1345_v4 = vadd.f32 %v1342_v43, %v1337_v31 }
 0x152   :  { %v831_v15 = vpop.permute.xlu1 %830  ;;  %1163 = vrot.lane.b32.xlu1 %v3286_v37, %s2013_s28  ;;  %1708 = vst.msk [vmem:[%s3955_s15 + $0xb8] sm:$0xf] %vm435_vm3, %v1250_v63  ;;  %v1307_v37 = vld [vmem:[%s3956_s16 + $0x8] sm:$0xff] }
 0x153   :  { %1619 = vst.msk [vmem:[%s3956_s16 + $0x49] sm:$0xff] %vm459_vm4, %v831_v15  ;;  %1165 = vrot.lane.b32.xlu0 %v3304_v21, %s2013_s28  ;;  %v1334_v7 = vmul.f32 %v1332_v22, %v1307_v37  ;;  %v1724_v26 = vld [vmem:[%s3956_s16 + $0x28] sm:$0xf] }
 0x154   :  { %1420 = vst.msk [vmem:[%s3957_s17] sm:$0xff] %vm1419_vm6, %v3554_v38  ;;  %1421 = vst.msk [vmem:[%s3957_s17 + $0x8] sm:$0xff] %vm1419_vm6, %v3554_v38  ;;  %v1344_v42 = vmul.f32 %v1724_v26, %v1341_v16 }
 0x155   :  { %v1373_v53 = vstv %s3614_s9  ;;  %v1338_v45 = vadd.f32 %v1336_v8, %v1334_v7  ;;  %1423 = vst.msk [vmem:[%s3957_s17 + $0x10] sm:$0x3f] %vm1422_vm7, %v3554_v38  ;;  %v1425_v38 = vstv %s3950_s10 }
 0x156   :  { %v835_v33 = vpop.permute.xlu1 %834  ;;  %1167 = vrot.lane.b32.xlu1 %v3309_v52, %s2013_s28  ;;  %v1350_v52 = vmul.f32 %v1725_v58, %v1349_v44  ;;  %v1727_v46 = vld [vmem:[%s3956_s16 + $0x40] sm:$0xf]  ;;  %v1347_v15 = vadd.f32 %v1344_v42, %v1339_v3  ;;  %1426 = vst.msk [vmem:[%s3958_s18] sm:$0xff] %vm1419_vm6, %v1425_v38  ;;  %1427 = vst.msk [vmem:[%s3958_s18 + $0x8] sm:$0xff] %vm1419_vm6, %v1425_v38 }
 0x157   :  { %1621 = vst.msk [vmem:[%s3956_s16 + $0x59] sm:$0x3] %vm462_vm5, %v835_v33  ;;  %1264 = vrot.lane.b32.xlu0 %v3018_v49, %s2013_s28  ;;  %v1352_v1 = vmul.f32 %v1727_v46, %v1349_v44  ;;  %v1389_v33 = vstv %s3650_s24 }
 0x158   :  { %v951_v32 = vpop.permute.xlu0 %950  ;;  %v1353_v36 = vadd.f32 %v1350_v52, %v1345_v4  ;;  %1428 = vst.msk [vmem:[%s3958_s18 + $0x10] sm:$0x3f] %vm1422_vm7, %v1425_v38 }
 0x159   :  { %1646 = vst.msk [vmem:[%s3956_s16 + $0x71] sm:$0x3] %vm462_vm5, %v951_v32  ;;  %v1355_v22 = vadd.f32 %v1352_v1, %v1347_v15 }
 0x15a   :  { %v949_v28 = vpop.permute.xlu1 %948  ;;  %1266 = vrot.lane.b32.xlu1 %v3039_v35, %s2013_s28  ;;  %v1728_v21 = vld [vmem:[%s3956_s16 + $0x48] sm:$0xff]  ;;  %v1729_v2 = vld [vmem:[%s3956_s16 + $0x50] sm:$0xff] }
 0x15b   :  { %1645 = vst.msk [vmem:[%s3956_s16 + $0x69] sm:$0xff] %vm459_vm4, %v949_v28  ;;  %1268 = vrot.lane.b32.xlu0 %v3181_v62, %s2013_s28  ;;  %v1358_v12 = vmul.f32 %v1728_v21, %v1357_v18  ;;  %v1359_v40 = vmul.f32 %v1729_v2, %v1357_v18 }
 0x15d   :  { %v1361_v0 = vadd.f32 %v1358_v12, %v1353_v36 }
 0x15e   :  { %v1063_v39 = vpop.permute.xlu1 %1062  ;;  %1279 = vrot.lane.b32.xlu1 %v3313_v61, %s2013_s28  ;;  %v1726_v61 = vld [vmem:[%s3956_s16 + $0x38] sm:$0xff] }
 0x15f   :  { %1669 = vst.msk [vmem:[%s3956_s16 + $0x79] sm:$0xff] %vm459_vm4, %v1063_v39  ;;  %1281 = vrot.lane.b32.xlu0 %v3319_v48, %s2013_s28  ;;  %v1731_v48 = vld [vmem:[%s3956_s16 + $0x60] sm:$0xff]  ;;  %v1351_v59 = vmul.f32 %v1726_v61, %v1349_v44  ;;  %v1730_v54 = vld [vmem:[%s3956_s16 + $0x58] sm:$0xf] }
 0x160   :  { %v1366_v30 = vmul.f32 %v1731_v48, %v1365_v56  ;;  %v1360_v63 = vmul.f32 %v1730_v54, %v1357_v18 }
 0x162   :  { %1283 = vrot.lane.b32.xlu1 %v3323_v55, %s2013_s28  ;;  %v1343_v55 = vmul.f32 %v1723_v50, %v1341_v16  ;;  %v1732_v29 = vld [vmem:[%s3956_s16 + $0x68] sm:$0xff]  ;;  %v1733_v47 = vld [vmem:[%s3956_s16 + $0x70] sm:$0xf]  ;;  %v1369_v19 = vadd.f32 %v1366_v30, %v1361_v0  ;;  %v1363_v58 = vadd.f32 %v1360_v63, %v1355_v22 }
 0x163   :  { %v1065_v49 = vpop.permute.xlu0 %1064  ;;  %v1367_v34 = vmul.f32 %v1732_v29, %v1365_v56  ;;  %v1368_v10 = vmul.f32 %v1733_v47, %v1365_v56 }
 0x164   :  { %1670 = vst.msk [vmem:[%s3956_s16 + $0x81] sm:$0xff] %vm459_vm4, %v1065_v49  ;;  %v1346_v17 = vadd.f32 %v1343_v55, %v1338_v45 }
 0x165   :  { %v1371_v13 = vadd.f32 %v1368_v10, %v1363_v58 }
 0x166   :  { %v1067_v35 = vpop.permute.xlu1 %1066  ;;  %v1734_v27 = vld [vmem:[%s3956_s16 + $0x78] sm:$0xff]  ;;  %v1354_v24 = vadd.f32 %v1351_v59, %v1346_v17 }
 0x167   :  { %1671 = vst.msk [vmem:[%s3956_s16 + $0x89] sm:$0x3] %vm462_vm5, %v1067_v35  ;;  %v1374_v57 = vmul.f32 %v1734_v27, %v1373_v53 }
 0x168   :  { %v1362_v35 = vadd.f32 %v1359_v40, %v1354_v24 }
 0x169   :  { %v1179_v62 = vpop.permute.xlu0 %1178  ;;  %v1377_v49 = vadd.f32 %v1374_v57, %v1369_v19 }
 0x16a   :  { %1694 = vst.msk [vmem:[%s3956_s16 + $0x91] sm:$0xff] %vm459_vm4, %v1179_v62  ;;  %v1370_v37 = vadd.f32 %v1367_v34, %v1362_v35 }
 0x16b   :  { %v1735_v9 = vld [vmem:[%s3956_s16 + $0x80] sm:$0xff] }
 0x16c   :  { %v1375_v62 = vmul.f32 %v1735_v9, %v1373_v53 }
 0x16e   :  { %v1181_v51 = vpop.permute.xlu1 %1180  ;;  %v1736_v28 = vld [vmem:[%s3956_s16 + $0x88] sm:$0xf]  ;;  %v1378_v18 = vadd.f32 %v1375_v62, %v1370_v37 }
 0x16f   :  { %1695 = vst.msk [vmem:[%s3956_s16 + $0x99] sm:$0xff] %vm459_vm4, %v1181_v51  ;;  %v1376_v43 = vmul.f32 %v1736_v28, %v1373_v53 }
 0x171   :  { %v1737_v6 = vld [vmem:[%s3956_s16 + $0x90] sm:$0xff]  ;;  %v1379_v48 = vadd.f32 %v1376_v43, %v1371_v13 }
 0x172   :  { %v1183_v11 = vpop.permute.xlu0 %1182  ;;  %v1382_v20 = vmul.f32 %v1737_v6, %v1381_v25 }
 0x173   :  { %1696 = vst.msk [vmem:[%s3956_s16 + $0xa1] sm:$0x3] %vm462_vm5, %v1183_v11 }
 0x174   :  { %v1385_v51 = vadd.f32 %v1382_v20, %v1377_v49 }
 0x175   :  { %v1295_v5 = vpop.permute.xlu1 %1294 }
 0x176   :  { %1719 = vst.msk [vmem:[%s3956_s16 + $0xa9] sm:$0xff] %vm459_vm4, %v1295_v5  ;;  %v1738_v32 = vld [vmem:[%s3956_s16 + $0x98] sm:$0xff] }
 0x177   :  { %v1383_v44 = vmul.f32 %v1738_v32, %v1381_v25 }
 0x179   :  { %v1297_v60 = vpop.permute.xlu0 %1296  ;;  %v1386_v61 = vadd.f32 %v1383_v44, %v1378_v18 }
 0x17a   :  { %1720 = vst.msk [vmem:[%s3956_s16 + $0xb1] sm:$0xff] %vm459_vm4, %v1297_v60  ;;  %v1739_v14 = vld [vmem:[%s3956_s16 + $0xa0] sm:$0xf] }
 0x17b   :  { %v1384_v7 = vmul.f32 %v1739_v14, %v1381_v25 }
 0x17c   :  { %v1299_v39 = vpop.permute.xlu1 %1298 }
 0x17d   :  { %1721 = vst.msk [vmem:[%s3956_s16 + $0xb9] sm:$0x3] %vm462_vm5, %v1299_v39  ;;  %v1740_v16 = vld [vmem:[%s3956_s16 + $0xa8] sm:$0xff]  ;;  %v470_v41 = vpop.permute.xlu0 %469  ;;  %v1387_v23 = vadd.f32 %v1384_v7, %v1379_v48 }
 0x17e   :  { %v1390_v8 = vmul.f32 %v1740_v16, %v1389_v33  ;;  %477 = vst.msk [vmem:[%s3955_s15 + $0x9] sm:$0xff] %vm459_vm4, %v470_v41 }
 0x180   :  { %v3710_v50 = vadd.f32 %v1390_v8, %v1385_v51  ;;  %v472_v21 = vpop.permute.xlu1 %471 }
 0x181   :  { %v1741_v31 = vld [vmem:[%s3956_s16 + $0xb0] sm:$0xff]  ;;  %478 = vst.msk [vmem:[%s3955_s15 + $0x11] sm:$0x3] %vm462_vm5, %v472_v21  ;;  %v569_v52 = vpop.permute.xlu0 %568 }
 0x182   :  { %v1396_v11 = vsub.f32 0.0, %v3710_v50  ;;  %v1391_v56 = vmul.f32 %v1741_v31, %v1389_v33  ;;  %1563 = vst.msk [vmem:[%s3954_s14 + $0x19] sm:$0xff] %vm459_vm4, %v569_v52 }
 0x184   :  { %v1399_v4 = vmul.f32 1.442695, %v1396_v11  ;;  %v3724_v55 = vadd.f32 %v1391_v56, %v1386_v61  ;;  %v1742_v26 = vld [vmem:[%s3956_s16 + $0xb8] sm:$0xf]  ;;  %v571_v12 = vpop.permute.xlu1 %570 }
 0x185   :  { %v1392_v2 = vmul.f32 %v1742_v26, %v1389_v33  ;;  %1564 = vst.msk [vmem:[%s3954_s14 + $0x21] sm:$0xff] %vm459_vm4, %v571_v12  ;;  %v573_v27 = vpop.permute.xlu0 %572 }
 0x186   :  { %1902 = vpow2.f32 %v1399_v4  ;;  %v1397_v53 = vsub.f32 0.0, %v3724_v55  ;;  %1565 = vst.msk [vmem:[%s3954_s14 + $0x29] sm:$0x3] %vm462_vm5, %v573_v27 }
 0x187   :  { %v1395_v5 = vadd.f32 %v1392_v2, %v1387_v23 }
 0x188   :  { %v1401_v45 = vmul.f32 1.442695, %v1397_v53  ;;  %v584_v36 = vpop.permute.xlu1 %583 }
 0x189   :  { %v1398_v59 = vsub.f32 0.0, %v1395_v5  ;;  %1566 = vst.msk [vmem:[%s3955_s15 + $0x19] sm:$0xff] %vm459_vm4, %v584_v36  ;;  %v586_v46 = vpop.permute.xlu0 %585 }
 0x18a   :  { %1904 = vpow2.f32 %v1401_v45  ;;  %1567 = vst.msk [vmem:[%s3955_s15 + $0x21] sm:$0xff] %vm459_vm4, %v586_v46 }
 0x18b   :  { %v1403_v30 = vmul.f32 1.442695, %v1398_v59 }
 0x18c   :  { %v588_v42 = vpop.permute.xlu1 %587 }
 0x18d   :  { %1906 = vpow2.f32 %v1403_v30  ;;  %1568 = vst.msk [vmem:[%s3955_s15 + $0x29] sm:$0x3] %vm462_vm5, %v588_v42  ;;  %v685_v29 = vpop.permute.xlu0 %684 }
 0x18e   :  { %1588 = vst.msk [vmem:[%s3954_s14 + $0x31] sm:$0xff] %vm459_vm4, %v685_v29 }
 0x190   :  { %v1903_v6 = vpop.eup %1902  ;;  %v687_v25 = vpop.permute.xlu1 %686 }
 0x191   :  { %v1405_v17 = vadd.f32 1.0, %v1903_v6  ;;  %1589 = vst.msk [vmem:[%s3954_s14 + $0x39] sm:$0xff] %vm459_vm4, %v687_v25  ;;  %v689_v40 = vpop.permute.xlu0 %688 }
 0x192   :  { %1590 = vst.msk [vmem:[%s3954_s14 + $0x41] sm:$0x3] %vm462_vm5, %v689_v40 }
 0x193   :  { %1908 = vrcp.f32 %v1405_v17 }
 0x194   :  { %v1905_v54 = vpop.eup %1904  ;;  %v700_v0 = vpop.permute.xlu1 %699 }
 0x195   :  { %v1406_v57 = vadd.f32 1.0, %v1905_v54  ;;  %1591 = vst.msk [vmem:[%s3955_s15 + $0x31] sm:$0xff] %vm459_vm4, %v700_v0  ;;  %v702_v3 = vpop.permute.xlu0 %701 }
 0x196   :  { %1592 = vst.msk [vmem:[%s3955_s15 + $0x39] sm:$0xff] %vm459_vm4, %v702_v3 }
 0x197   :  { %v1907_v1 = vpop.eup %1906  ;;  %1910 = vrcp.f32 %v1406_v57 }
 0x198   :  { %v1407_v9 = vadd.f32 1.0, %v1907_v1  ;;  %v704_v60 = vpop.permute.xlu1 %703 }
 0x199   :  { %1593 = vst.msk [vmem:[%s3955_s15 + $0x41] sm:$0x3] %vm462_vm5, %v704_v60  ;;  %v801_v24 = vpop.permute.xlu0 %800 }
 0x19a   :  { %1912 = vrcp.f32 %v1407_v9  ;;  %1613 = vst.msk [vmem:[%s3954_s14 + $0x49] sm:$0xff] %vm459_vm4, %v801_v24 }
 0x19c   :  { %v803_v34 = vpop.permute.xlu1 %802 }
 0x19d   :  { %v1909_v47 = vpop.eup %1908  ;;  %1614 = vst.msk [vmem:[%s3954_s14 + $0x51] sm:$0xff] %vm459_vm4, %v803_v34  ;;  %v805_v19 = vpop.permute.xlu0 %804 }
 0x19e   :  { %1432 = vrot.lane.b32.xlu0 %v1909_v47, %s2013_s28  ;;  %1615 = vst.msk [vmem:[%s3954_s14 + $0x59] sm:$0x3] %vm462_vm5, %v805_v19  ;;  %v1414_v32 = vmul.f32 %v1909_v47, %v3710_v50 }
 0x1a0   :  { %v816_v20 = vpop.permute.xlu1 %815 }
 0x1a1   :  { %v1911_v15 = vpop.eup %1910  ;;  %1616 = vst.msk [vmem:[%s3955_s15 + $0x49] sm:$0xff] %vm459_vm4, %v816_v20  ;;  %v818_v63 = vpop.permute.xlu0 %817 }
 0x1a2   :  { %1434 = vrot.lane.b32.xlu1 %v1911_v15, %s2013_s28  ;;  %1617 = vst.msk [vmem:[%s3955_s15 + $0x51] sm:$0xff] %vm459_vm4, %v818_v63  ;;  %v1415_v49 = vmul.f32 %v1911_v15, %v3724_v55 }
 0x1a4   :  { %v1913_v33 = vpop.eup %1912  ;;  %v820_v28 = vpop.permute.xlu1 %819 }
 0x1a5   :  { %1436 = vrot.lane.b32.xlu0 %v1913_v33, %s2013_s28  ;;  %1618 = vst.msk [vmem:[%s3955_s15 + $0x59] sm:$0x3] %vm462_vm5, %v820_v28  ;;  %v917_v39 = vpop.permute.xlu0 %916  ;;  %v1416_v35 = vmul.f32 %v1913_v33, %v1395_v5 }
 0x1a6   :  { %1449 = vrot.lane.b32.xlu1 %v1414_v32, %s2013_s28  ;;  %1638 = vst.msk [vmem:[%s3954_s14 + $0x61] sm:$0xff] %vm459_vm4, %v917_v39 }
 0x1a8   :  { %v919_v62 = vpop.permute.xlu1 %918 }
 0x1a9   :  { %1451 = vrot.lane.b32.xlu0 %v1415_v49, %s2013_s28  ;;  %1639 = vst.msk [vmem:[%s3954_s14 + $0x69] sm:$0xff] %vm459_vm4, %v919_v62  ;;  %v921_v22 = vpop.permute.xlu0 %920 }
 0x1aa   :  { %1453 = vrot.lane.b32.xlu1 %v1416_v35, %s2013_s28  ;;  %1640 = vst.msk [vmem:[%s3954_s14 + $0x71] sm:$0x3] %vm462_vm5, %v921_v22 }
 0x1ac   :  { %v932_v10 = vpop.permute.xlu1 %931 }
 0x1ad   :  { %1641 = vst.msk [vmem:[%s3955_s15 + $0x61] sm:$0xff] %vm459_vm4, %v932_v10  ;;  %v934_v16 = vpop.permute.xlu0 %933 }
 0x1ae   :  { %1642 = vst.msk [vmem:[%s3955_s15 + $0x69] sm:$0xff] %vm459_vm4, %v934_v16 }
 0x1b0   :  { %v936_v41 = vpop.permute.xlu1 %935 }
 0x1b1   :  { %1643 = vst.msk [vmem:[%s3955_s15 + $0x71] sm:$0x3] %vm462_vm5, %v936_v41  ;;  %v1033_v14 = vpop.permute.xlu0 %1032 }
 0x1b2   :  { %1663 = vst.msk [vmem:[%s3954_s14 + $0x79] sm:$0xff] %vm459_vm4, %v1033_v14 }
 0x1b4   :  { %v1035_v51 = vpop.permute.xlu1 %1034 }
 0x1b5   :  { %1664 = vst.msk [vmem:[%s3954_s14 + $0x81] sm:$0xff] %vm459_vm4, %v1035_v51  ;;  %v1037_v8 = vpop.permute.xlu0 %1036 }
 0x1b6   :  { %1665 = vst.msk [vmem:[%s3954_s14 + $0x89] sm:$0x3] %vm462_vm5, %v1037_v8 }
 0x1b8   :  { %v1048_v37 = vpop.permute.xlu1 %1047 }
 0x1b9   :  { %1666 = vst.msk [vmem:[%s3955_s15 + $0x79] sm:$0xff] %vm459_vm4, %v1048_v37  ;;  %v1050_v44 = vpop.permute.xlu0 %1049 }
 0x1ba   :  { %1667 = vst.msk [vmem:[%s3955_s15 + $0x81] sm:$0xff] %vm459_vm4, %v1050_v44 }
 0x1bc   :  { %v1052_v58 = vpop.permute.xlu1 %1051 }
 0x1bd   :  { %1668 = vst.msk [vmem:[%s3955_s15 + $0x89] sm:$0x3] %vm462_vm5, %v1052_v58  ;;  %v1149_v43 = vpop.permute.xlu0 %1148 }
 0x1be   :  { %1688 = vst.msk [vmem:[%s3954_s14 + $0x91] sm:$0xff] %vm459_vm4, %v1149_v43 }
 0x1c0   :  { %v1151_v50 = vpop.permute.xlu1 %1150 }
 0x1c1   :  { %1689 = vst.msk [vmem:[%s3954_s14 + $0x99] sm:$0xff] %vm459_vm4, %v1151_v50  ;;  %v1153_v18 = vpop.permute.xlu0 %1152 }
 0x1c2   :  { %1690 = vst.msk [vmem:[%s3954_s14 + $0xa1] sm:$0x3] %vm462_vm5, %v1153_v18 }
 0x1c4   :  { %v1164_v21 = vpop.permute.xlu1 %1163 }
 0x1c5   :  { %1691 = vst.msk [vmem:[%s3955_s15 + $0x91] sm:$0xff] %vm459_vm4, %v1164_v21  ;;  %v1166_v31 = vpop.permute.xlu0 %1165 }
 0x1c6   :  { %1692 = vst.msk [vmem:[%s3955_s15 + $0x99] sm:$0xff] %vm459_vm4, %v1166_v31 }
 0x1c8   :  { %v1168_v13 = vpop.permute.xlu1 %1167 }
 0x1c9   :  { %1693 = vst.msk [vmem:[%s3955_s15 + $0xa1] sm:$0x3] %vm462_vm5, %v1168_v13  ;;  %v1265_v7 = vpop.permute.xlu0 %1264 }
 0x1ca   :  { %1713 = vst.msk [vmem:[%s3954_s14 + $0xa9] sm:$0xff] %vm459_vm4, %v1265_v7 }
 0x1cc   :  { %v1267_v52 = vpop.permute.xlu1 %1266 }
 0x1cd   :  { %1714 = vst.msk [vmem:[%s3954_s14 + $0xb1] sm:$0xff] %vm459_vm4, %v1267_v52  ;;  %v1269_v11 = vpop.permute.xlu0 %1268 }
 0x1ce   :  { %1715 = vst.msk [vmem:[%s3954_s14 + $0xb9] sm:$0x3] %vm462_vm5, %v1269_v11 }
 0x1d0   :  { %v1280_v61 = vpop.permute.xlu1 %1279 }
 0x1d1   :  { %1716 = vst.msk [vmem:[%s3955_s15 + $0xa9] sm:$0xff] %vm459_vm4, %v1280_v61  ;;  %v1282_v56 = vpop.permute.xlu0 %1281 }
 0x1d2   :  { %1717 = vst.msk [vmem:[%s3955_s15 + $0xb1] sm:$0xff] %vm459_vm4, %v1282_v56 }
 0x1d4   :  { %v1284_v48 = vpop.permute.xlu1 %1283 }
 0x1d5   :  { %1718 = vst.msk [vmem:[%s3955_s15 + $0xb9] sm:$0x3] %vm462_vm5, %v1284_v48 }
 0x210   :  { %v1433_v4 = vpop.permute.xlu0 %1432 }
 0x211   :  { %1442 = vst.msk [vmem:[%s3957_s17 + $0x1] sm:$0xff] %vm1441_vm8, %v1433_v4 }
 0x214   :  { %v1435_v55 = vpop.permute.xlu1 %1434 }
 0x215   :  { %1443 = vst.msk [vmem:[%s3957_s17 + $0x9] sm:$0xff] %vm1441_vm8, %v1435_v55 }
 0x217   :  { %v1437_v26 = vpop.permute.xlu0 %1436 }
 0x218   :  { %1445 = vst.msk [vmem:[%s3957_s17 + $0x11] sm:$0xf] %vm1444_vm9, %v1437_v26  ;;  %v1450_v12 = vpop.permute.xlu1 %1449 }
 0x219   :  { %1458 = vst.msk [vmem:[%s3958_s18 + $0x1] sm:$0xff] %vm1441_vm8, %v1450_v12 }
 0x21b   :  { %v1452_v23 = vpop.permute.xlu0 %1451 }
 0x21c   :  { %1459 = vst.msk [vmem:[%s3958_s18 + $0x9] sm:$0xff] %vm1441_vm8, %v1452_v23  ;;  %v1454_v2 = vpop.permute.xlu1 %1453 }
 0x21d   :  { %1460 = vst.msk [vmem:[%s3958_s18 + $0x11] sm:$0xf] %vm1444_vm9, %v1454_v2 }
 0x21e   :  { %1493 = vsyncpa [#allocation6], 1 }
 0x21f   :  { %1494 = vsyncpa [#allocation8], 1 }
 0x220   :  { %1495 = vsyncpa [#allocation11], 1 }
 0x221   :  { %1496 = vsyncpa [#allocation14], 1 }

</bundles_post_ra>
